<compile_context>
chip_gen: v6e
topology: v6e:2x2x1
jax: 0.10.0
libtpu: 0.0.40
codegen_flags: <defaults>
</compile_context>

<pallas_src>
import functools

import numpy as np

import jax
import jax.numpy as jnp
from jax.experimental import pallas as pl
from jax.experimental.pallas import tpu as pltpu

EPS = 1e-5                    # nn.InstanceNorm3d default
NEG_SLOPE = 0.01              # nnf.leaky_relu default
MATMUL_DTYPE = jnp.bfloat16   # MXU input dtype (accumulation stays f32)


# --------------------------------------------------------------------------------------
# helpers
# --------------------------------------------------------------------------------------
def _tap_shifts_and_masks(D, H, W):
    """Static flattened-lane shifts and zero-pad masks for the 27 conv taps."""
    d = np.arange(D)[:, None, None]
    h = np.arange(H)[None, :, None]
    w = np.arange(W)[None, None, :]
    shifts, masks = [], []
    for kd in range(3):
        for kh in range(3):
            for kw in range(3):
                dd, dh, dw = kd - 1, kh - 1, kw - 1
                shifts.append(dd * H * W + dh * W + dw)
                valid = ((d + dd >= 0) & (d + dd < D) &
                         (h + dh >= 0) & (h + dh < H) &
                         (w + dw >= 0) & (w + dw < W))
                masks.append(valid.reshape(-1))
    return shifts, np.stack(masks).astype(np.float32)      # (27, D*H*W)


def _shift_lanes(x, delta):
    """y[:, p] = x[:, (p + delta) % P].  Wrapped entries are zeroed by the caller's mask.

    Implemented with static lane slices + concat (direction-exact); the slabs are tiny
    so this shuffle is negligible next to the MXU matmul.
    """
    P = x.shape[-1]
    s = delta % P
    if s == 0:
        return x
    return jnp.concatenate([x[:, s:], x[:, :s]], axis=1)


def _pack_weight(w, dtype):
    """(3,3,3,Cin,Cout) -> (Cout, 27*Cin), row order = (tap-major, cin-minor)."""
    kd, kh, kw, cin, cout = w.shape
    return jnp.transpose(w, (4, 0, 1, 2, 3)).reshape(cout, kd * kh * kw * cin).astype(dtype)


# --------------------------------------------------------------------------------------
# kernel
# --------------------------------------------------------------------------------------
def _conv_in_lrelu(x, k_ref, m_ref, w_ref, b_ref, g_ref, bt_ref, shifts):
    """One conv(3,pad=1) + InstanceNorm(affine) + LeakyReLU in (C, D*H*W) layout.

    x     : (Cin, P) f32 value
    k_ref : (27*Cmax, P) f32 VMEM scratch (im2col patch matrix; first 27*Cin rows used)
    m_ref : (27, P) f32 zero-padding masks
    w_ref : (Cout, 27*Cin) bf16 packed conv weights
    b/g/bt: (Cout, 1) f32 conv bias / IN gamma / IN beta
    """
    c_in, P = x.shape
    n_taps = len(shifts)

    # Build the im2col matrix: 27 lane-shifted, zero-masked slabs (static unrolled).
    for t, delta in enumerate(shifts):
        shifted = _shift_lanes(x, delta)                      # (Cin, P)
        k_ref[t * c_in:(t + 1) * c_in, :] = shifted * m_ref[t:t + 1, :]

    # Single big-K MXU matmul in bf16, f32 accumulation.
    kmat = k_ref[0:n_taps * c_in, :].astype(MATMUL_DTYPE)     # (27*Cin, P)
    acc = jnp.dot(w_ref[...], kmat,
                  preferred_element_type=jnp.float32)         # (Cout, P) f32
    acc = acc + b_ref[...]                                    # bias (cheap lane broadcast)

    # InstanceNorm3d: per-channel stats over all spatial positions (lane reduce),
    # affine folded into one scale/offset pass.
    mean = jnp.mean(acc, axis=1, keepdims=True)               # (Cout, 1)
    var = jnp.mean(jnp.square(acc - mean), axis=1, keepdims=True)
    scale = jax.lax.rsqrt(var + EPS) * g_ref[...]             # (Cout, 1)
    offset = bt_ref[...] - mean * scale                       # (Cout, 1)
    z = acc * scale + offset

    # LeakyReLU(0.01)
    return jnp.where(z >= 0, z, NEG_SLOPE * z)


def _double_conv_kernel(x_ref, m_ref,
                        w1_ref, b1_ref, g1_ref, bt1_ref,
                        w2_ref, b2_ref, g2_ref, bt2_ref,
                        o_ref, k_ref, *, shifts):
    x = x_ref[0]                                              # (Cin, P) f32
    y1 = _conv_in_lrelu(x, k_ref, m_ref, w1_ref, b1_ref, g1_ref, bt1_ref, shifts)
    y2 = _conv_in_lrelu(y1, k_ref, m_ref, w2_ref, b2_ref, g2_ref, bt2_ref, shifts)
    o_ref[0] = y2.astype(o_ref.dtype)                         # lane-dense (Cout, P) store


# --------------------------------------------------------------------------------------
# wrapper
# --------------------------------------------------------------------------------------
@jax.jit
def double_conv3d(x_ncdhw, params):
    """Forward pass matching the PyTorch DoubleConv3d module (NCDHW in / NCDHW out)."""
    N, Cin, D, H, W = x_ncdhw.shape
    P = D * H * W
    Cmid = params["w1"].shape[-1]
    Cout = params["w2"].shape[-1]

    shifts, masks_np = _tap_shifts_and_masks(D, H, W)
    masks = jnp.asarray(masks_np, dtype=jnp.float32)          # (27, P)

    x = x_ncdhw.reshape(N, Cin, P)                            # free reshape, no transpose
    w1p = _pack_weight(params["w1"], MATMUL_DTYPE)            # (Cmid, 27*Cin)  bf16
    w2p = _pack_weight(params["w2"], MATMUL_DTYPE)            # (Cout, 27*Cmid) bf16
    b1 = params["b1"].reshape(Cmid, 1).astype(jnp.float32)
    g1 = params["g1"].reshape(Cmid, 1).astype(jnp.float32)
    bt1 = params["bt1"].reshape(Cmid, 1).astype(jnp.float32)
    b2 = params["b2"].reshape(Cout, 1).astype(jnp.float32)
    g2 = params["g2"].reshape(Cout, 1).astype(jnp.float32)
    bt2 = params["bt2"].reshape(Cout, 1).astype(jnp.float32)

    kernel = functools.partial(_double_conv_kernel, shifts=tuple(shifts))
    c_scratch = 27 * max(Cin, Cmid)                           # one scratch reused by both layers

    out = pl.pallas_call(
        kernel,
        out_shape=jax.ShapeDtypeStruct((N, Cout, P), x_ncdhw.dtype),
        grid=(N,),
        in_specs=[
            pl.BlockSpec((1, Cin, P), lambda n: (n, 0, 0)),        # x (one batch element)
            pl.BlockSpec((27, P), lambda n: (0, 0)),               # zero-pad masks
            pl.BlockSpec((Cmid, 27 * Cin), lambda n: (0, 0)),      # packed W1 (bf16)
            pl.BlockSpec((Cmid, 1), lambda n: (0, 0)),             # b1
            pl.BlockSpec((Cmid, 1), lambda n: (0, 0)),             # gamma1
            pl.BlockSpec((Cmid, 1), lambda n: (0, 0)),             # beta1
            pl.BlockSpec((Cout, 27 * Cmid), lambda n: (0, 0)),     # packed W2 (bf16)
            pl.BlockSpec((Cout, 1), lambda n: (0, 0)),             # b2
            pl.BlockSpec((Cout, 1), lambda n: (0, 0)),             # gamma2
            pl.BlockSpec((Cout, 1), lambda n: (0, 0)),             # beta2
        ],
        out_specs=pl.BlockSpec((1, Cout, P), lambda n: (n, 0, 0)), # lane-dense output slab
        scratch_shapes=[
            pltpu.VMEM((c_scratch, P), jnp.float32),               # shared im2col scratch
        ],
        compiler_params=pltpu.CompilerParams(
            dimension_semantics=("parallel",),
        ),
    )(x, masks, w1p, b1, g1, bt1, w2p, b2, g2, bt2)

    return out.reshape(N, Cout, D, H, W)


# --------------------------------------------------------------------------------------
# pure-JAX references
# --------------------------------------------------------------------------------------
def _ref_forward(x_ncdhw, params, conv_dtype=jnp.float32):
    """Reference DoubleConv3d.  conv_dtype controls the matmul input precision
    (f32 = exact PyTorch semantics; bf16 = apples-to-apples with the MXU kernel)."""
    def conv(x, w, b):
        w_oidhw = jnp.transpose(w, (4, 3, 0, 1, 2))
        y = jax.lax.conv_general_dilated(
            x.astype(conv_dtype), w_oidhw.astype(conv_dtype),
            window_strides=(1, 1, 1), padding=((1, 1), (1, 1), (1, 1)),
            dimension_numbers=("NCDHW", "OIDHW", "NCDHW"),
            preferred_element_type=jnp.float32)
        return y + b[None, :, None, None, None]

    def inorm(x, g, bt):
        mean = jnp.mean(x, axis=(2, 3, 4), keepdims=True)
        var = jnp.mean(jnp.square(x - mean), axis=(2, 3, 4), keepdims=True)
        xh = (x - mean) * jax.lax.rsqrt(var + EPS)
        return xh * g[None, :, None, None, None] + bt[None, :, None, None, None]

    def lrelu(x):
        return jnp.where(x >= 0, x, NEG_SLOPE * x)

    y = lrelu(inorm(conv(x_ncdhw, params["w1"], params["b1"]),
                    params["g1"], params["bt1"]))
    y = lrelu(inorm(conv(y, params["w2"], params["b2"]),
                    params["g2"], params["bt2"]))
    return y


def _init_params(key, in_ch, mid_ch, out_ch):
    ks = jax.random.split(key, 6)
    fan1 = in_ch * 27
    fan2 = mid_ch * 27
    return {
        # conv weights stored as (kd, kh, kw, Cin, Cout)
        "w1": jax.random.normal(ks[0], (3, 3, 3, in_ch, mid_ch), jnp.float32)
        / jnp.sqrt(fan1),
        "b1": 0.05 * jax.random.normal(ks[1], (mid_ch,), jnp.float32),
        "g1": 1.0 + 0.1 * jax.random.normal(ks[2], (mid_ch,), jnp.float32),
        "bt1": 0.1 * jax.random.normal(ks[3], (mid_ch,), jnp.float32),
        "w2": jax.random.normal(ks[4], (3, 3, 3, mid_ch, out_ch), jnp.float32)
        / jnp.sqrt(fan2),
        "b2": 0.05 * jax.random.normal(ks[5], (out_ch,), jnp.float32),
        "g2": jnp.ones((out_ch,), jnp.float32),
        "bt2": jnp.zeros((out_ch,), jnp.float32),
    }


if __name__ == "__main__":
    key = jax.random.PRNGKey(0)
    k_x, k_p = jax.random.split(key)

    N, C_IN, C_MID, C_OUT = 2, 4, 6, 8
    D = H = W = 8

    x = jax.random.normal(k_x, (N, C_IN, D, H, W), jnp.float32)   # NCDHW
    params = _init_params(k_p, C_IN, C_MID, C_OUT)

    out = double_conv3d(x, params)
    out = jax.block_until_ready(out)
    assert out.shape == (N, C_OUT, D, H, W), out.shape

    # apples-to-apples check: reference conv also uses bf16 matmul inputs, f32 accumulation
    ref_mixed = _ref_forward(x, params, conv_dtype=MATMUL_DTYPE)
    err_mixed = float(jnp.max(jnp.abs(out - ref_mixed)))
    assert jnp.allclose(out, ref_mixed, atol=1e-2, rtol=1e-2), err_mixed

    # semantic check against the pure-f32 PyTorch-equivalent reference
    # (looser tolerance only accounts for bf16 MXU inputs; accumulation/norm are f32)
    ref_f32 = _ref_forward(x, params, conv_dtype=jnp.float32)
    err_f32 = float(jnp.max(jnp.abs(out - ref_f32)))
    assert jnp.allclose(out, ref_f32, atol=5e-2, rtol=5e-2), err_f32

    print("KERNEL_OK")
</pallas_src>

<mosaic_0001>
module attributes {stable_mosaic.version = 11 : i64} {
  func.func @_double_conv_kernel(%arg0: i32, %arg1: memref<1x4x512xf32, #tpu.memory_space<vmem>>, %arg2: memref<27x512xf32, #tpu.memory_space<vmem>>, %arg3: memref<6x108xbf16, #tpu.memory_space<vmem>>, %arg4: memref<6x1xf32, #tpu.memory_space<vmem>>, %arg5: memref<6x1xf32, #tpu.memory_space<vmem>>, %arg6: memref<6x1xf32, #tpu.memory_space<vmem>>, %arg7: memref<8x162xbf16, #tpu.memory_space<vmem>>, %arg8: memref<8x1xf32, #tpu.memory_space<vmem>>, %arg9: memref<8x1xf32, #tpu.memory_space<vmem>>, %arg10: memref<8x1xf32, #tpu.memory_space<vmem>>, %arg11: memref<1x8x512xf32, #tpu.memory_space<vmem>>, %arg12: memref<162x512xf32, #tpu.memory_space<vmem>>) attributes {dimension_semantics = [#tpu.dimension_semantics<parallel>], iteration_bounds = array<i64: 2>, scalar_prefetch = 0 : i64, scratch_operands = 1 : i64, tpu.core_type = #tpu.core_type<tc>, window_params = [{transform_indices = @transform_0, window_bounds = array<i64: 1, 4, 512>}, {pipeline_mode = #tpu.pipeline_mode<synchronous>, transform_indices = @transform_1, window_bounds = array<i64: 27, 512>}, {pipeline_mode = #tpu.pipeline_mode<synchronous>, transform_indices = @transform_2, window_bounds = array<i64: 6, 108>}, {pipeline_mode = #tpu.pipeline_mode<synchronous>, transform_indices = @transform_3, window_bounds = array<i64: 6, 1>}, {pipeline_mode = #tpu.pipeline_mode<synchronous>, transform_indices = @transform_4, window_bounds = array<i64: 6, 1>}, {pipeline_mode = #tpu.pipeline_mode<synchronous>, transform_indices = @transform_5, window_bounds = array<i64: 6, 1>}, {pipeline_mode = #tpu.pipeline_mode<synchronous>, transform_indices = @transform_6, window_bounds = array<i64: 8, 162>}, {pipeline_mode = #tpu.pipeline_mode<synchronous>, transform_indices = @transform_7, window_bounds = array<i64: 8, 1>}, {pipeline_mode = #tpu.pipeline_mode<synchronous>, transform_indices = @transform_8, window_bounds = array<i64: 8, 1>}, {pipeline_mode = #tpu.pipeline_mode<synchronous>, transform_indices = @transform_9, window_bounds = array<i64: 8, 1>}, {transform_indices = @transform_10, window_bounds = array<i64: 1, 8, 512>}]} {
    %c0 = arith.constant 0 : index
    %c0_0 = arith.constant 0 : index
    %c0_1 = arith.constant 0 : index
    %0 = vector.load %arg1[%c0, %c0_0, %c0_1] : memref<1x4x512xf32, #tpu.memory_space<vmem>>, vector<1x4x512xf32>
    %1 = vector.shape_cast %0 : vector<1x4x512xf32> to vector<4x512xf32>
    %2 = vector.extract_strided_slice %1 {offsets = [0, 439], sizes = [4, 73], strides = [1, 1]} : vector<4x512xf32> to vector<4x73xf32>
    %3 = vector.extract_strided_slice %1 {offsets = [0, 0], sizes = [4, 439], strides = [1, 1]} : vector<4x512xf32> to vector<4x439xf32>
    %4 = tpu.concatenate %2, %3 in 1 : vector<4x73xf32>, vector<4x439xf32> -> vector<4x512xf32>
    %c0_2 = arith.constant 0 : index
    %c0_3 = arith.constant 0 : index
    %5 = vector.load %arg2[%c0_2, %c0_3] : memref<27x512xf32, #tpu.memory_space<vmem>>, vector<1x512xf32>
    %6 = vector.broadcast %5 : vector<1x512xf32> to vector<4x512xf32>
    %7 = arith.mulf %4, %6 : vector<4x512xf32>
    %c0_4 = arith.constant 0 : index
    %c0_5 = arith.constant 0 : index
    %8 = vector.load %arg12[%c0_4, %c0_5] : memref<162x512xf32, #tpu.memory_space<vmem>>, vector<4x512xf32>
    tpu.vector_store %arg12[%c0_4, %c0_5], %7 {strides = array<i32>} : memref<162x512xf32, #tpu.memory_space<vmem>>, vector<4x512xf32>,
    %9 = vector.extract_strided_slice %1 {offsets = [0, 440], sizes = [4, 72], strides = [1, 1]} : vector<4x512xf32> to vector<4x72xf32>
    %10 = vector.extract_strided_slice %1 {offsets = [0, 0], sizes = [4, 440], strides = [1, 1]} : vector<4x512xf32> to vector<4x440xf32>
    %11 = tpu.concatenate %9, %10 in 1 : vector<4x72xf32>, vector<4x440xf32> -> vector<4x512xf32>
    %c1 = arith.constant 1 : index
    %c0_6 = arith.constant 0 : index
    %12 = vector.load %arg2[%c1, %c0_6] : memref<27x512xf32, #tpu.memory_space<vmem>>, vector<1x512xf32>
    %13 = vector.broadcast %12 : vector<1x512xf32> to vector<4x512xf32>
    %14 = arith.mulf %11, %13 : vector<4x512xf32>
    %c4 = arith.constant 4 : index
    %c0_7 = arith.constant 0 : index
    %15 = vector.load %arg12[%c4, %c0_7] : memref<162x512xf32, #tpu.memory_space<vmem>>, vector<4x512xf32>
    tpu.vector_store %arg12[%c4, %c0_7], %14 {strides = array<i32>} : memref<162x512xf32, #tpu.memory_space<vmem>>, vector<4x512xf32>,
    %16 = vector.extract_strided_slice %1 {offsets = [0, 441], sizes = [4, 71], strides = [1, 1]} : vector<4x512xf32> to vector<4x71xf32>
    %17 = vector.extract_strided_slice %1 {offsets = [0, 0], sizes = [4, 441], strides = [1, 1]} : vector<4x512xf32> to vector<4x441xf32>
    %18 = tpu.concatenate %16, %17 in 1 : vector<4x71xf32>, vector<4x441xf32> -> vector<4x512xf32>
    %c2 = arith.constant 2 : index
    %c0_8 = arith.constant 0 : index
    %19 = vector.load %arg2[%c2, %c0_8] : memref<27x512xf32, #tpu.memory_space<vmem>>, vector<1x512xf32>
    %20 = vector.broadcast %19 : vector<1x512xf32> to vector<4x512xf32>
    %21 = arith.mulf %18, %20 : vector<4x512xf32>
    %c8 = arith.constant 8 : index
    %c0_9 = arith.constant 0 : index
    %22 = vector.load %arg12[%c8, %c0_9] : memref<162x512xf32, #tpu.memory_space<vmem>>, vector<4x512xf32>
    tpu.vector_store %arg12[%c8, %c0_9], %21 {strides = array<i32>} : memref<162x512xf32, #tpu.memory_space<vmem>>, vector<4x512xf32>,
    %23 = vector.extract_strided_slice %1 {offsets = [0, 447], sizes = [4, 65], strides = [1, 1]} : vector<4x512xf32> to vector<4x65xf32>
    %24 = vector.extract_strided_slice %1 {offsets = [0, 0], sizes = [4, 447], strides = [1, 1]} : vector<4x512xf32> to vector<4x447xf32>
    %25 = tpu.concatenate %23, %24 in 1 : vector<4x65xf32>, vector<4x447xf32> -> vector<4x512xf32>
    %c3 = arith.constant 3 : index
    %c0_10 = arith.constant 0 : index
    %26 = vector.load %arg2[%c3, %c0_10] : memref<27x512xf32, #tpu.memory_space<vmem>>, vector<1x512xf32>
    %27 = vector.broadcast %26 : vector<1x512xf32> to vector<4x512xf32>
    %28 = arith.mulf %25, %27 : vector<4x512xf32>
    %c12 = arith.constant 12 : index
    %c0_11 = arith.constant 0 : index
    %29 = vector.load %arg12[%c12, %c0_11] : memref<162x512xf32, #tpu.memory_space<vmem>>, vector<4x512xf32>
    tpu.vector_store %arg12[%c12, %c0_11], %28 {strides = array<i32>} : memref<162x512xf32, #tpu.memory_space<vmem>>, vector<4x512xf32>,
    %30 = vector.extract_strided_slice %1 {offsets = [0, 448], sizes = [4, 64], strides = [1, 1]} : vector<4x512xf32> to vector<4x64xf32>
    %31 = vector.extract_strided_slice %1 {offsets = [0, 0], sizes = [4, 448], strides = [1, 1]} : vector<4x512xf32> to vector<4x448xf32>
    %32 = tpu.concatenate %30, %31 in 1 : vector<4x64xf32>, vector<4x448xf32> -> vector<4x512xf32>
    %c4_12 = arith.constant 4 : index
    %c0_13 = arith.constant 0 : index
    %33 = vector.load %arg2[%c4_12, %c0_13] : memref<27x512xf32, #tpu.memory_space<vmem>>, vector<1x512xf32>
    %34 = vector.broadcast %33 : vector<1x512xf32> to vector<4x512xf32>
    %35 = arith.mulf %32, %34 : vector<4x512xf32>
    %c16 = arith.constant 16 : index
    %c0_14 = arith.constant 0 : index
    %36 = vector.load %arg12[%c16, %c0_14] : memref<162x512xf32, #tpu.memory_space<vmem>>, vector<4x512xf32>
    tpu.vector_store %arg12[%c16, %c0_14], %35 {strides = array<i32>} : memref<162x512xf32, #tpu.memory_space<vmem>>, vector<4x512xf32>,
    %37 = vector.extract_strided_slice %1 {offsets = [0, 449], sizes = [4, 63], strides = [1, 1]} : vector<4x512xf32> to vector<4x63xf32>
    %38 = vector.extract_strided_slice %1 {offsets = [0, 0], sizes = [4, 449], strides = [1, 1]} : vector<4x512xf32> to vector<4x449xf32>
    %39 = tpu.concatenate %37, %38 in 1 : vector<4x63xf32>, vector<4x449xf32> -> vector<4x512xf32>
    %c5 = arith.constant 5 : index
    %c0_15 = arith.constant 0 : index
    %40 = vector.load %arg2[%c5, %c0_15] : memref<27x512xf32, #tpu.memory_space<vmem>>, vector<1x512xf32>
    %41 = vector.broadcast %40 : vector<1x512xf32> to vector<4x512xf32>
    %42 = arith.mulf %39, %41 : vector<4x512xf32>
    %c20 = arith.constant 20 : index
    %c0_16 = arith.constant 0 : index
    %43 = vector.load %arg12[%c20, %c0_16] : memref<162x512xf32, #tpu.memory_space<vmem>>, vector<4x512xf32>
    tpu.vector_store %arg12[%c20, %c0_16], %42 {strides = array<i32>} : memref<162x512xf32, #tpu.memory_space<vmem>>, vector<4x512xf32>,
    %44 = vector.extract_strided_slice %1 {offsets = [0, 455], sizes = [4, 57], strides = [1, 1]} : vector<4x512xf32> to vector<4x57xf32>
    %45 = vector.extract_strided_slice %1 {offsets = [0, 0], sizes = [4, 455], strides = [1, 1]} : vector<4x512xf32> to vector<4x455xf32>
    %46 = tpu.concatenate %44, %45 in 1 : vector<4x57xf32>, vector<4x455xf32> -> vector<4x512xf32>
    %c6 = arith.constant 6 : index
    %c0_17 = arith.constant 0 : index
    %47 = vector.load %arg2[%c6, %c0_17] : memref<27x512xf32, #tpu.memory_space<vmem>>, vector<1x512xf32>
    %48 = vector.broadcast %47 : vector<1x512xf32> to vector<4x512xf32>
    %49 = arith.mulf %46, %48 : vector<4x512xf32>
    %c24 = arith.constant 24 : index
    %c0_18 = arith.constant 0 : index
    %50 = vector.load %arg12[%c24, %c0_18] : memref<162x512xf32, #tpu.memory_space<vmem>>, vector<4x512xf32>
    tpu.vector_store %arg12[%c24, %c0_18], %49 {strides = array<i32>} : memref<162x512xf32, #tpu.memory_space<vmem>>, vector<4x512xf32>,
    %51 = vector.extract_strided_slice %1 {offsets = [0, 456], sizes = [4, 56], strides = [1, 1]} : vector<4x512xf32> to vector<4x56xf32>
    %52 = vector.extract_strided_slice %1 {offsets = [0, 0], sizes = [4, 456], strides = [1, 1]} : vector<4x512xf32> to vector<4x456xf32>
    %53 = tpu.concatenate %51, %52 in 1 : vector<4x56xf32>, vector<4x456xf32> -> vector<4x512xf32>
    %c7 = arith.constant 7 : index
    %c0_19 = arith.constant 0 : index
    %54 = vector.load %arg2[%c7, %c0_19] : memref<27x512xf32, #tpu.memory_space<vmem>>, vector<1x512xf32>
    %55 = vector.broadcast %54 : vector<1x512xf32> to vector<4x512xf32>
    %56 = arith.mulf %53, %55 : vector<4x512xf32>
    %c28 = arith.constant 28 : index
    %c0_20 = arith.constant 0 : index
    %57 = vector.load %arg12[%c28, %c0_20] : memref<162x512xf32, #tpu.memory_space<vmem>>, vector<4x512xf32>
    tpu.vector_store %arg12[%c28, %c0_20], %56 {strides = array<i32>} : memref<162x512xf32, #tpu.memory_space<vmem>>, vector<4x512xf32>,
    %58 = vector.extract_strided_slice %1 {offsets = [0, 457], sizes = [4, 55], strides = [1, 1]} : vector<4x512xf32> to vector<4x55xf32>
    %59 = vector.extract_strided_slice %1 {offsets = [0, 0], sizes = [4, 457], strides = [1, 1]} : vector<4x512xf32> to vector<4x457xf32>
    %60 = tpu.concatenate %58, %59 in 1 : vector<4x55xf32>, vector<4x457xf32> -> vector<4x512xf32>
    %c8_21 = arith.constant 8 : index
    %c0_22 = arith.constant 0 : index
    %61 = vector.load %arg2[%c8_21, %c0_22] : memref<27x512xf32, #tpu.memory_space<vmem>>, vector<1x512xf32>
    %62 = vector.broadcast %61 : vector<1x512xf32> to vector<4x512xf32>
    %63 = arith.mulf %60, %62 : vector<4x512xf32>
    %c32 = arith.constant 32 : index
    %c0_23 = arith.constant 0 : index
    %64 = vector.load %arg12[%c32, %c0_23] : memref<162x512xf32, #tpu.memory_space<vmem>>, vector<4x512xf32>
    tpu.vector_store %arg12[%c32, %c0_23], %63 {strides = array<i32>} : memref<162x512xf32, #tpu.memory_space<vmem>>, vector<4x512xf32>,
    %65 = vector.extract_strided_slice %1 {offsets = [0, 503], sizes = [4, 9], strides = [1, 1]} : vector<4x512xf32> to vector<4x9xf32>
    %66 = vector.extract_strided_slice %1 {offsets = [0, 0], sizes = [4, 503], strides = [1, 1]} : vector<4x512xf32> to vector<4x503xf32>
    %67 = tpu.concatenate %65, %66 in 1 : vector<4x9xf32>, vector<4x503xf32> -> vector<4x512xf32>
    %c9 = arith.constant 9 : index
    %c0_24 = arith.constant 0 : index
    %68 = vector.load %arg2[%c9, %c0_24] : memref<27x512xf32, #tpu.memory_space<vmem>>, vector<1x512xf32>
    %69 = vector.broadcast %68 : vector<1x512xf32> to vector<4x512xf32>
    %70 = arith.mulf %67, %69 : vector<4x512xf32>
    %c36 = arith.constant 36 : index
    %c0_25 = arith.constant 0 : index
    %71 = vector.load %arg12[%c36, %c0_25] : memref<162x512xf32, #tpu.memory_space<vmem>>, vector<4x512xf32>
    tpu.vector_store %arg12[%c36, %c0_25], %70 {strides = array<i32>} : memref<162x512xf32, #tpu.memory_space<vmem>>, vector<4x512xf32>,
    %72 = vector.extract_strided_slice %1 {offsets = [0, 504], sizes = [4, 8], strides = [1, 1]} : vector<4x512xf32> to vector<4x8xf32>
    %73 = vector.extract_strided_slice %1 {offsets = [0, 0], sizes = [4, 504], strides = [1, 1]} : vector<4x512xf32> to vector<4x504xf32>
    %74 = tpu.concatenate %72, %73 in 1 : vector<4x8xf32>, vector<4x504xf32> -> vector<4x512xf32>
    %c10 = arith.constant 10 : index
    %c0_26 = arith.constant 0 : index
    %75 = vector.load %arg2[%c10, %c0_26] : memref<27x512xf32, #tpu.memory_space<vmem>>, vector<1x512xf32>
    %76 = vector.broadcast %75 : vector<1x512xf32> to vector<4x512xf32>
    %77 = arith.mulf %74, %76 : vector<4x512xf32>
    %c40 = arith.constant 40 : index
    %c0_27 = arith.constant 0 : index
    %78 = vector.load %arg12[%c40, %c0_27] : memref<162x512xf32, #tpu.memory_space<vmem>>, vector<4x512xf32>
    tpu.vector_store %arg12[%c40, %c0_27], %77 {strides = array<i32>} : memref<162x512xf32, #tpu.memory_space<vmem>>, vector<4x512xf32>,
    %79 = vector.extract_strided_slice %1 {offsets = [0, 505], sizes = [4, 7], strides = [1, 1]} : vector<4x512xf32> to vector<4x7xf32>
    %80 = vector.extract_strided_slice %1 {offsets = [0, 0], sizes = [4, 505], strides = [1, 1]} : vector<4x512xf32> to vector<4x505xf32>
    %81 = tpu.concatenate %79, %80 in 1 : vector<4x7xf32>, vector<4x505xf32> -> vector<4x512xf32>
    %c11 = arith.constant 11 : index
    %c0_28 = arith.constant 0 : index
    %82 = vector.load %arg2[%c11, %c0_28] : memref<27x512xf32, #tpu.memory_space<vmem>>, vector<1x512xf32>
    %83 = vector.broadcast %82 : vector<1x512xf32> to vector<4x512xf32>
    %84 = arith.mulf %81, %83 : vector<4x512xf32>
    %c44 = arith.constant 44 : index
    %c0_29 = arith.constant 0 : index
    %85 = vector.load %arg12[%c44, %c0_29] : memref<162x512xf32, #tpu.memory_space<vmem>>, vector<4x512xf32>
    tpu.vector_store %arg12[%c44, %c0_29], %84 {strides = array<i32>} : memref<162x512xf32, #tpu.memory_space<vmem>>, vector<4x512xf32>,
    %86 = vector.extract_strided_slice %1 {offsets = [0, 511], sizes = [4, 1], strides = [1, 1]} : vector<4x512xf32> to vector<4x1xf32>
    %87 = vector.extract_strided_slice %1 {offsets = [0, 0], sizes = [4, 511], strides = [1, 1]} : vector<4x512xf32> to vector<4x511xf32>
    %88 = tpu.concatenate %86, %87 in 1 : vector<4x1xf32>, vector<4x511xf32> -> vector<4x512xf32>
    %c12_30 = arith.constant 12 : index
    %c0_31 = arith.constant 0 : index
    %89 = vector.load %arg2[%c12_30, %c0_31] : memref<27x512xf32, #tpu.memory_space<vmem>>, vector<1x512xf32>
    %90 = vector.broadcast %89 : vector<1x512xf32> to vector<4x512xf32>
    %91 = arith.mulf %88, %90 : vector<4x512xf32>
    %c48 = arith.constant 48 : index
    %c0_32 = arith.constant 0 : index
    %92 = vector.load %arg12[%c48, %c0_32] : memref<162x512xf32, #tpu.memory_space<vmem>>, vector<4x512xf32>
    tpu.vector_store %arg12[%c48, %c0_32], %91 {strides = array<i32>} : memref<162x512xf32, #tpu.memory_space<vmem>>, vector<4x512xf32>,
    %c13 = arith.constant 13 : index
    %c0_33 = arith.constant 0 : index
    %93 = vector.load %arg2[%c13, %c0_33] : memref<27x512xf32, #tpu.memory_space<vmem>>, vector<1x512xf32>
    %94 = vector.broadcast %93 : vector<1x512xf32> to vector<4x512xf32>
    %95 = arith.mulf %1, %94 : vector<4x512xf32>
    %c52 = arith.constant 52 : index
    %c0_34 = arith.constant 0 : index
    %96 = vector.load %arg12[%c52, %c0_34] : memref<162x512xf32, #tpu.memory_space<vmem>>, vector<4x512xf32>
    tpu.vector_store %arg12[%c52, %c0_34], %95 {strides = array<i32>} : memref<162x512xf32, #tpu.memory_space<vmem>>, vector<4x512xf32>,
    %97 = vector.extract_strided_slice %1 {offsets = [0, 1], sizes = [4, 511], strides = [1, 1]} : vector<4x512xf32> to vector<4x511xf32>
    %98 = vector.extract_strided_slice %1 {offsets = [0, 0], sizes = [4, 1], strides = [1, 1]} : vector<4x512xf32> to vector<4x1xf32>
    %99 = tpu.concatenate %97, %98 in 1 : vector<4x511xf32>, vector<4x1xf32> -> vector<4x512xf32>
    %c14 = arith.constant 14 : index
    %c0_35 = arith.constant 0 : index
    %100 = vector.load %arg2[%c14, %c0_35] : memref<27x512xf32, #tpu.memory_space<vmem>>, vector<1x512xf32>
    %101 = vector.broadcast %100 : vector<1x512xf32> to vector<4x512xf32>
    %102 = arith.mulf %99, %101 : vector<4x512xf32>
    %c56 = arith.constant 56 : index
    %c0_36 = arith.constant 0 : index
    %103 = vector.load %arg12[%c56, %c0_36] : memref<162x512xf32, #tpu.memory_space<vmem>>, vector<4x512xf32>
    tpu.vector_store %arg12[%c56, %c0_36], %102 {strides = array<i32>} : memref<162x512xf32, #tpu.memory_space<vmem>>, vector<4x512xf32>,
    %104 = vector.extract_strided_slice %1 {offsets = [0, 7], sizes = [4, 505], strides = [1, 1]} : vector<4x512xf32> to vector<4x505xf32>
    %105 = vector.extract_strided_slice %1 {offsets = [0, 0], sizes = [4, 7], strides = [1, 1]} : vector<4x512xf32> to vector<4x7xf32>
    %106 = tpu.concatenate %104, %105 in 1 : vector<4x505xf32>, vector<4x7xf32> -> vector<4x512xf32>
    %c15 = arith.constant 15 : index
    %c0_37 = arith.constant 0 : index
    %107 = vector.load %arg2[%c15, %c0_37] : memref<27x512xf32, #tpu.memory_space<vmem>>, vector<1x512xf32>
    %108 = vector.broadcast %107 : vector<1x512xf32> to vector<4x512xf32>
    %109 = arith.mulf %106, %108 : vector<4x512xf32>
    %c60 = arith.constant 60 : index
    %c0_38 = arith.constant 0 : index
    %110 = vector.load %arg12[%c60, %c0_38] : memref<162x512xf32, #tpu.memory_space<vmem>>, vector<4x512xf32>
    tpu.vector_store %arg12[%c60, %c0_38], %109 {strides = array<i32>} : memref<162x512xf32, #tpu.memory_space<vmem>>, vector<4x512xf32>,
    %111 = vector.extract_strided_slice %1 {offsets = [0, 8], sizes = [4, 504], strides = [1, 1]} : vector<4x512xf32> to vector<4x504xf32>
    %112 = vector.extract_strided_slice %1 {offsets = [0, 0], sizes = [4, 8], strides = [1, 1]} : vector<4x512xf32> to vector<4x8xf32>
    %113 = tpu.concatenate %111, %112 in 1 : vector<4x504xf32>, vector<4x8xf32> -> vector<4x512xf32>
    %c16_39 = arith.constant 16 : index
    %c0_40 = arith.constant 0 : index
    %114 = vector.load %arg2[%c16_39, %c0_40] : memref<27x512xf32, #tpu.memory_space<vmem>>, vector<1x512xf32>
    %115 = vector.broadcast %114 : vector<1x512xf32> to vector<4x512xf32>
    %116 = arith.mulf %113, %115 : vector<4x512xf32>
    %c64 = arith.constant 64 : index
    %c0_41 = arith.constant 0 : index
    %117 = vector.load %arg12[%c64, %c0_41] : memref<162x512xf32, #tpu.memory_space<vmem>>, vector<4x512xf32>
    tpu.vector_store %arg12[%c64, %c0_41], %116 {strides = array<i32>} : memref<162x512xf32, #tpu.memory_space<vmem>>, vector<4x512xf32>,
    %118 = vector.extract_strided_slice %1 {offsets = [0, 9], sizes = [4, 503], strides = [1, 1]} : vector<4x512xf32> to vector<4x503xf32>
    %119 = vector.extract_strided_slice %1 {offsets = [0, 0], sizes = [4, 9], strides = [1, 1]} : vector<4x512xf32> to vector<4x9xf32>
    %120 = tpu.concatenate %118, %119 in 1 : vector<4x503xf32>, vector<4x9xf32> -> vector<4x512xf32>
    %c17 = arith.constant 17 : index
    %c0_42 = arith.constant 0 : index
    %121 = vector.load %arg2[%c17, %c0_42] : memref<27x512xf32, #tpu.memory_space<vmem>>, vector<1x512xf32>
    %122 = vector.broadcast %121 : vector<1x512xf32> to vector<4x512xf32>
    %123 = arith.mulf %120, %122 : vector<4x512xf32>
    %c68 = arith.constant 68 : index
    %c0_43 = arith.constant 0 : index
    %124 = vector.load %arg12[%c68, %c0_43] : memref<162x512xf32, #tpu.memory_space<vmem>>, vector<4x512xf32>
    tpu.vector_store %arg12[%c68, %c0_43], %123 {strides = array<i32>} : memref<162x512xf32, #tpu.memory_space<vmem>>, vector<4x512xf32>,
    %125 = vector.extract_strided_slice %1 {offsets = [0, 55], sizes = [4, 457], strides = [1, 1]} : vector<4x512xf32> to vector<4x457xf32>
    %126 = vector.extract_strided_slice %1 {offsets = [0, 0], sizes = [4, 55], strides = [1, 1]} : vector<4x512xf32> to vector<4x55xf32>
    %127 = tpu.concatenate %125, %126 in 1 : vector<4x457xf32>, vector<4x55xf32> -> vector<4x512xf32>
    %c18 = arith.constant 18 : index
    %c0_44 = arith.constant 0 : index
    %128 = vector.load %arg2[%c18, %c0_44] : memref<27x512xf32, #tpu.memory_space<vmem>>, vector<1x512xf32>
    %129 = vector.broadcast %128 : vector<1x512xf32> to vector<4x512xf32>
    %130 = arith.mulf %127, %129 : vector<4x512xf32>
    %c72 = arith.constant 72 : index
    %c0_45 = arith.constant 0 : index
    %131 = vector.load %arg12[%c72, %c0_45] : memref<162x512xf32, #tpu.memory_space<vmem>>, vector<4x512xf32>
    tpu.vector_store %arg12[%c72, %c0_45], %130 {strides = array<i32>} : memref<162x512xf32, #tpu.memory_space<vmem>>, vector<4x512xf32>,
    %132 = vector.extract_strided_slice %1 {offsets = [0, 56], sizes = [4, 456], strides = [1, 1]} : vector<4x512xf32> to vector<4x456xf32>
    %133 = vector.extract_strided_slice %1 {offsets = [0, 0], sizes = [4, 56], strides = [1, 1]} : vector<4x512xf32> to vector<4x56xf32>
    %134 = tpu.concatenate %132, %133 in 1 : vector<4x456xf32>, vector<4x56xf32> -> vector<4x512xf32>
    %c19 = arith.constant 19 : index
    %c0_46 = arith.constant 0 : index
    %135 = vector.load %arg2[%c19, %c0_46] : memref<27x512xf32, #tpu.memory_space<vmem>>, vector<1x512xf32>
    %136 = vector.broadcast %135 : vector<1x512xf32> to vector<4x512xf32>
    %137 = arith.mulf %134, %136 : vector<4x512xf32>
    %c76 = arith.constant 76 : index
    %c0_47 = arith.constant 0 : index
    %138 = vector.load %arg12[%c76, %c0_47] : memref<162x512xf32, #tpu.memory_space<vmem>>, vector<4x512xf32>
    tpu.vector_store %arg12[%c76, %c0_47], %137 {strides = array<i32>} : memref<162x512xf32, #tpu.memory_space<vmem>>, vector<4x512xf32>,
    %139 = vector.extract_strided_slice %1 {offsets = [0, 57], sizes = [4, 455], strides = [1, 1]} : vector<4x512xf32> to vector<4x455xf32>
    %140 = vector.extract_strided_slice %1 {offsets = [0, 0], sizes = [4, 57], strides = [1, 1]} : vector<4x512xf32> to vector<4x57xf32>
    %141 = tpu.concatenate %139, %140 in 1 : vector<4x455xf32>, vector<4x57xf32> -> vector<4x512xf32>
    %c20_48 = arith.constant 20 : index
    %c0_49 = arith.constant 0 : index
    %142 = vector.load %arg2[%c20_48, %c0_49] : memref<27x512xf32, #tpu.memory_space<vmem>>, vector<1x512xf32>
    %143 = vector.broadcast %142 : vector<1x512xf32> to vector<4x512xf32>
    %144 = arith.mulf %141, %143 : vector<4x512xf32>
    %c80 = arith.constant 80 : index
    %c0_50 = arith.constant 0 : index
    %145 = vector.load %arg12[%c80, %c0_50] : memref<162x512xf32, #tpu.memory_space<vmem>>, vector<4x512xf32>
    tpu.vector_store %arg12[%c80, %c0_50], %144 {strides = array<i32>} : memref<162x512xf32, #tpu.memory_space<vmem>>, vector<4x512xf32>,
    %146 = vector.extract_strided_slice %1 {offsets = [0, 63], sizes = [4, 449], strides = [1, 1]} : vector<4x512xf32> to vector<4x449xf32>
    %147 = vector.extract_strided_slice %1 {offsets = [0, 0], sizes = [4, 63], strides = [1, 1]} : vector<4x512xf32> to vector<4x63xf32>
    %148 = tpu.concatenate %146, %147 in 1 : vector<4x449xf32>, vector<4x63xf32> -> vector<4x512xf32>
    %c21 = arith.constant 21 : index
    %c0_51 = arith.constant 0 : index
    %149 = vector.load %arg2[%c21, %c0_51] : memref<27x512xf32, #tpu.memory_space<vmem>>, vector<1x512xf32>
    %150 = vector.broadcast %149 : vector<1x512xf32> to vector<4x512xf32>
    %151 = arith.mulf %148, %150 : vector<4x512xf32>
    %c84 = arith.constant 84 : index
    %c0_52 = arith.constant 0 : index
    %152 = vector.load %arg12[%c84, %c0_52] : memref<162x512xf32, #tpu.memory_space<vmem>>, vector<4x512xf32>
    tpu.vector_store %arg12[%c84, %c0_52], %151 {strides = array<i32>} : memref<162x512xf32, #tpu.memory_space<vmem>>, vector<4x512xf32>,
    %153 = vector.extract_strided_slice %1 {offsets = [0, 64], sizes = [4, 448], strides = [1, 1]} : vector<4x512xf32> to vector<4x448xf32>
    %154 = vector.extract_strided_slice %1 {offsets = [0, 0], sizes = [4, 64], strides = [1, 1]} : vector<4x512xf32> to vector<4x64xf32>
    %155 = tpu.concatenate %153, %154 in 1 : vector<4x448xf32>, vector<4x64xf32> -> vector<4x512xf32>
    %c22 = arith.constant 22 : index
    %c0_53 = arith.constant 0 : index
    %156 = vector.load %arg2[%c22, %c0_53] : memref<27x512xf32, #tpu.memory_space<vmem>>, vector<1x512xf32>
    %157 = vector.broadcast %156 : vector<1x512xf32> to vector<4x512xf32>
    %158 = arith.mulf %155, %157 : vector<4x512xf32>
    %c88 = arith.constant 88 : index
    %c0_54 = arith.constant 0 : index
    %159 = vector.load %arg12[%c88, %c0_54] : memref<162x512xf32, #tpu.memory_space<vmem>>, vector<4x512xf32>
    tpu.vector_store %arg12[%c88, %c0_54], %158 {strides = array<i32>} : memref<162x512xf32, #tpu.memory_space<vmem>>, vector<4x512xf32>,
    %160 = vector.extract_strided_slice %1 {offsets = [0, 65], sizes = [4, 447], strides = [1, 1]} : vector<4x512xf32> to vector<4x447xf32>
    %161 = vector.extract_strided_slice %1 {offsets = [0, 0], sizes = [4, 65], strides = [1, 1]} : vector<4x512xf32> to vector<4x65xf32>
    %162 = tpu.concatenate %160, %161 in 1 : vector<4x447xf32>, vector<4x65xf32> -> vector<4x512xf32>
    %c23 = arith.constant 23 : index
    %c0_55 = arith.constant 0 : index
    %163 = vector.load %arg2[%c23, %c0_55] : memref<27x512xf32, #tpu.memory_space<vmem>>, vector<1x512xf32>
    %164 = vector.broadcast %163 : vector<1x512xf32> to vector<4x512xf32>
    %165 = arith.mulf %162, %164 : vector<4x512xf32>
    %c92 = arith.constant 92 : index
    %c0_56 = arith.constant 0 : index
    %166 = vector.load %arg12[%c92, %c0_56] : memref<162x512xf32, #tpu.memory_space<vmem>>, vector<4x512xf32>
    tpu.vector_store %arg12[%c92, %c0_56], %165 {strides = array<i32>} : memref<162x512xf32, #tpu.memory_space<vmem>>, vector<4x512xf32>,
    %167 = vector.extract_strided_slice %1 {offsets = [0, 71], sizes = [4, 441], strides = [1, 1]} : vector<4x512xf32> to vector<4x441xf32>
    %168 = vector.extract_strided_slice %1 {offsets = [0, 0], sizes = [4, 71], strides = [1, 1]} : vector<4x512xf32> to vector<4x71xf32>
    %169 = tpu.concatenate %167, %168 in 1 : vector<4x441xf32>, vector<4x71xf32> -> vector<4x512xf32>
    %c24_57 = arith.constant 24 : index
    %c0_58 = arith.constant 0 : index
    %170 = vector.load %arg2[%c24_57, %c0_58] : memref<27x512xf32, #tpu.memory_space<vmem>>, vector<1x512xf32>
    %171 = vector.broadcast %170 : vector<1x512xf32> to vector<4x512xf32>
    %172 = arith.mulf %169, %171 : vector<4x512xf32>
    %c96 = arith.constant 96 : index
    %c0_59 = arith.constant 0 : index
    %173 = vector.load %arg12[%c96, %c0_59] : memref<162x512xf32, #tpu.memory_space<vmem>>, vector<4x512xf32>
    tpu.vector_store %arg12[%c96, %c0_59], %172 {strides = array<i32>} : memref<162x512xf32, #tpu.memory_space<vmem>>, vector<4x512xf32>,
    %174 = vector.extract_strided_slice %1 {offsets = [0, 72], sizes = [4, 440], strides = [1, 1]} : vector<4x512xf32> to vector<4x440xf32>
    %175 = vector.extract_strided_slice %1 {offsets = [0, 0], sizes = [4, 72], strides = [1, 1]} : vector<4x512xf32> to vector<4x72xf32>
    %176 = tpu.concatenate %174, %175 in 1 : vector<4x440xf32>, vector<4x72xf32> -> vector<4x512xf32>
    %c25 = arith.constant 25 : index
    %c0_60 = arith.constant 0 : index
    %177 = vector.load %arg2[%c25, %c0_60] : memref<27x512xf32, #tpu.memory_space<vmem>>, vector<1x512xf32>
    %178 = vector.broadcast %177 : vector<1x512xf32> to vector<4x512xf32>
    %179 = arith.mulf %176, %178 : vector<4x512xf32>
    %c100 = arith.constant 100 : index
    %c0_61 = arith.constant 0 : index
    %180 = vector.load %arg12[%c100, %c0_61] : memref<162x512xf32, #tpu.memory_space<vmem>>, vector<4x512xf32>
    tpu.vector_store %arg12[%c100, %c0_61], %179 {strides = array<i32>} : memref<162x512xf32, #tpu.memory_space<vmem>>, vector<4x512xf32>,
    %181 = vector.extract_strided_slice %1 {offsets = [0, 73], sizes = [4, 439], strides = [1, 1]} : vector<4x512xf32> to vector<4x439xf32>
    %182 = vector.extract_strided_slice %1 {offsets = [0, 0], sizes = [4, 73], strides = [1, 1]} : vector<4x512xf32> to vector<4x73xf32>
    %183 = tpu.concatenate %181, %182 in 1 : vector<4x439xf32>, vector<4x73xf32> -> vector<4x512xf32>
    %c26 = arith.constant 26 : index
    %c0_62 = arith.constant 0 : index
    %184 = vector.load %arg2[%c26, %c0_62] : memref<27x512xf32, #tpu.memory_space<vmem>>, vector<1x512xf32>
    %185 = vector.broadcast %184 : vector<1x512xf32> to vector<4x512xf32>
    %186 = arith.mulf %183, %185 : vector<4x512xf32>
    %c104 = arith.constant 104 : index
    %c0_63 = arith.constant 0 : index
    %187 = vector.load %arg12[%c104, %c0_63] : memref<162x512xf32, #tpu.memory_space<vmem>>, vector<4x512xf32>
    tpu.vector_store %arg12[%c104, %c0_63], %186 {strides = array<i32>} : memref<162x512xf32, #tpu.memory_space<vmem>>, vector<4x512xf32>,
    %c0_64 = arith.constant 0 : index
    %c0_65 = arith.constant 0 : index
    %188 = vector.load %arg12[%c0_64, %c0_65] : memref<162x512xf32, #tpu.memory_space<vmem>>, vector<108x512xf32>
    %189 = arith.truncf %188 : vector<108x512xf32> to vector<108x512xbf16>
    %c0_66 = arith.constant 0 : index
    %c0_67 = arith.constant 0 : index
    %190 = vector.load %arg3[%c0_66, %c0_67] : memref<6x108xbf16, #tpu.memory_space<vmem>>, vector<6x108xbf16>
    %cst = arith.constant dense<0.000000e+00> : vector<6x512xf32>
    %191 = tpu.matmul %190, %189, %cst {dimension_numbers = #tpu.dot_dimension_numbers<[1], [0], [0], [1], [0, 0, 1, 1], [], []>} : vector<6x108xbf16>, vector<108x512xbf16>, vector<6x512xf32> -> vector<6x512xf32>
    %c0_68 = arith.constant 0 : index
    %c0_69 = arith.constant 0 : index
    %192 = vector.load %arg4[%c0_68, %c0_69] : memref<6x1xf32, #tpu.memory_space<vmem>>, vector<6x1xf32>
    %193 = vector.broadcast %192 : vector<6x1xf32> to vector<6x512xf32>
    %194 = arith.addf %191, %193 : vector<6x512xf32>
    %cst_70 = arith.constant dense<0.000000e+00> : vector<6xf32>
    %195 = vector.multi_reduction <add>, %194, %cst_70 [1] : vector<6x512xf32> to vector<6xf32>
    %196 = vector.shape_cast %195 : vector<6xf32> to vector<6x1xf32>
    %cst_71 = arith.constant 5.120000e+02 : f32
    %197 = vector.broadcast %cst_71 : f32 to vector<6x1xf32>
    %198 = arith.divf %196, %197 : vector<6x1xf32>
    %199 = vector.broadcast %198 : vector<6x1xf32> to vector<6x512xf32>
    %200 = arith.subf %194, %199 : vector<6x512xf32>
    %201 = arith.mulf %200, %200 : vector<6x512xf32>
    %cst_72 = arith.constant dense<0.000000e+00> : vector<6xf32>
    %202 = vector.multi_reduction <add>, %201, %cst_72 [1] : vector<6x512xf32> to vector<6xf32>
    %203 = vector.shape_cast %202 : vector<6xf32> to vector<6x1xf32>
    %cst_73 = arith.constant 5.120000e+02 : f32
    %204 = vector.broadcast %cst_73 : f32 to vector<6x1xf32>
    %205 = arith.divf %203, %204 : vector<6x1xf32>
    %cst_74 = arith.constant 9.99999974E-6 : f32
    %206 = vector.broadcast %cst_74 : f32 to vector<6x1xf32>
    %207 = arith.addf %205, %206 : vector<6x1xf32>
    %208 = math.rsqrt %207 : vector<6x1xf32>
    %c0_75 = arith.constant 0 : index
    %c0_76 = arith.constant 0 : index
    %209 = vector.load %arg5[%c0_75, %c0_76] : memref<6x1xf32, #tpu.memory_space<vmem>>, vector<6x1xf32>
    %210 = arith.mulf %208, %209 : vector<6x1xf32>
    %c0_77 = arith.constant 0 : index
    %c0_78 = arith.constant 0 : index
    %211 = vector.load %arg6[%c0_77, %c0_78] : memref<6x1xf32, #tpu.memory_space<vmem>>, vector<6x1xf32>
    %212 = arith.mulf %198, %210 : vector<6x1xf32>
    %213 = arith.subf %211, %212 : vector<6x1xf32>
    %214 = vector.broadcast %210 : vector<6x1xf32> to vector<6x512xf32>
    %215 = arith.mulf %194, %214 : vector<6x512xf32>
    %216 = vector.broadcast %213 : vector<6x1xf32> to vector<6x512xf32>
    %217 = arith.addf %215, %216 : vector<6x512xf32>
    %cst_79 = arith.constant 0.000000e+00 : f32
    %218 = vector.broadcast %cst_79 : f32 to vector<6x512xf32>
    %219 = arith.cmpf oge, %217, %218 : vector<6x512xf32>
    %cst_80 = arith.constant 0.00999999977 : f32
    %220 = vector.broadcast %cst_80 : f32 to vector<6x512xf32>
    %221 = arith.mulf %220, %217 : vector<6x512xf32>
    %222 = arith.select %219, %217, %221 : vector<6x512xi1>, vector<6x512xf32>
    %223 = vector.extract_strided_slice %222 {offsets = [0, 439], sizes = [6, 73], strides = [1, 1]} : vector<6x512xf32> to vector<6x73xf32>
    %224 = vector.extract_strided_slice %222 {offsets = [0, 0], sizes = [6, 439], strides = [1, 1]} : vector<6x512xf32> to vector<6x439xf32>
    %225 = tpu.concatenate %223, %224 in 1 : vector<6x73xf32>, vector<6x439xf32> -> vector<6x512xf32>
    %c0_81 = arith.constant 0 : index
    %c0_82 = arith.constant 0 : index
    %226 = vector.load %arg2[%c0_81, %c0_82] : memref<27x512xf32, #tpu.memory_space<vmem>>, vector<1x512xf32>
    %227 = vector.broadcast %226 : vector<1x512xf32> to vector<6x512xf32>
    %228 = arith.mulf %225, %227 : vector<6x512xf32>
    %c0_83 = arith.constant 0 : index
    %c0_84 = arith.constant 0 : index
    %229 = vector.load %arg12[%c0_83, %c0_84] : memref<162x512xf32, #tpu.memory_space<vmem>>, vector<6x512xf32>
    tpu.vector_store %arg12[%c0_83, %c0_84], %228 {strides = array<i32>} : memref<162x512xf32, #tpu.memory_space<vmem>>, vector<6x512xf32>,
    %230 = vector.extract_strided_slice %222 {offsets = [0, 440], sizes = [6, 72], strides = [1, 1]} : vector<6x512xf32> to vector<6x72xf32>
    %231 = vector.extract_strided_slice %222 {offsets = [0, 0], sizes = [6, 440], strides = [1, 1]} : vector<6x512xf32> to vector<6x440xf32>
    %232 = tpu.concatenate %230, %231 in 1 : vector<6x72xf32>, vector<6x440xf32> -> vector<6x512xf32>
    %c1_85 = arith.constant 1 : index
    %c0_86 = arith.constant 0 : index
    %233 = vector.load %arg2[%c1_85, %c0_86] : memref<27x512xf32, #tpu.memory_space<vmem>>, vector<1x512xf32>
    %234 = vector.broadcast %233 : vector<1x512xf32> to vector<6x512xf32>
    %235 = arith.mulf %232, %234 : vector<6x512xf32>
    %c6_87 = arith.constant 6 : index
    %c0_88 = arith.constant 0 : index
    %236 = vector.load %arg12[%c6_87, %c0_88] : memref<162x512xf32, #tpu.memory_space<vmem>>, vector<6x512xf32>
    tpu.vector_store %arg12[%c6_87, %c0_88], %235 {strides = array<i32>} : memref<162x512xf32, #tpu.memory_space<vmem>>, vector<6x512xf32>,
    %237 = vector.extract_strided_slice %222 {offsets = [0, 441], sizes = [6, 71], strides = [1, 1]} : vector<6x512xf32> to vector<6x71xf32>
    %238 = vector.extract_strided_slice %222 {offsets = [0, 0], sizes = [6, 441], strides = [1, 1]} : vector<6x512xf32> to vector<6x441xf32>
    %239 = tpu.concatenate %237, %238 in 1 : vector<6x71xf32>, vector<6x441xf32> -> vector<6x512xf32>
    %c2_89 = arith.constant 2 : index
    %c0_90 = arith.constant 0 : index
    %240 = vector.load %arg2[%c2_89, %c0_90] : memref<27x512xf32, #tpu.memory_space<vmem>>, vector<1x512xf32>
    %241 = vector.broadcast %240 : vector<1x512xf32> to vector<6x512xf32>
    %242 = arith.mulf %239, %241 : vector<6x512xf32>
    %c12_91 = arith.constant 12 : index
    %c0_92 = arith.constant 0 : index
    %243 = vector.load %arg12[%c12_91, %c0_92] : memref<162x512xf32, #tpu.memory_space<vmem>>, vector<6x512xf32>
    tpu.vector_store %arg12[%c12_91, %c0_92], %242 {strides = array<i32>} : memref<162x512xf32, #tpu.memory_space<vmem>>, vector<6x512xf32>,
    %244 = vector.extract_strided_slice %222 {offsets = [0, 447], sizes = [6, 65], strides = [1, 1]} : vector<6x512xf32> to vector<6x65xf32>
    %245 = vector.extract_strided_slice %222 {offsets = [0, 0], sizes = [6, 447], strides = [1, 1]} : vector<6x512xf32> to vector<6x447xf32>
    %246 = tpu.concatenate %244, %245 in 1 : vector<6x65xf32>, vector<6x447xf32> -> vector<6x512xf32>
    %c3_93 = arith.constant 3 : index
    %c0_94 = arith.constant 0 : index
    %247 = vector.load %arg2[%c3_93, %c0_94] : memref<27x512xf32, #tpu.memory_space<vmem>>, vector<1x512xf32>
    %248 = vector.broadcast %247 : vector<1x512xf32> to vector<6x512xf32>
    %249 = arith.mulf %246, %248 : vector<6x512xf32>
    %c18_95 = arith.constant 18 : index
    %c0_96 = arith.constant 0 : index
    %250 = vector.load %arg12[%c18_95, %c0_96] : memref<162x512xf32, #tpu.memory_space<vmem>>, vector<6x512xf32>
    tpu.vector_store %arg12[%c18_95, %c0_96], %249 {strides = array<i32>} : memref<162x512xf32, #tpu.memory_space<vmem>>, vector<6x512xf32>,
    %251 = vector.extract_strided_slice %222 {offsets = [0, 448], sizes = [6, 64], strides = [1, 1]} : vector<6x512xf32> to vector<6x64xf32>
    %252 = vector.extract_strided_slice %222 {offsets = [0, 0], sizes = [6, 448], strides = [1, 1]} : vector<6x512xf32> to vector<6x448xf32>
    %253 = tpu.concatenate %251, %252 in 1 : vector<6x64xf32>, vector<6x448xf32> -> vector<6x512xf32>
    %c4_97 = arith.constant 4 : index
    %c0_98 = arith.constant 0 : index
    %254 = vector.load %arg2[%c4_97, %c0_98] : memref<27x512xf32, #tpu.memory_space<vmem>>, vector<1x512xf32>
    %255 = vector.broadcast %254 : vector<1x512xf32> to vector<6x512xf32>
    %256 = arith.mulf %253, %255 : vector<6x512xf32>
    %c24_99 = arith.constant 24 : index
    %c0_100 = arith.constant 0 : index
    %257 = vector.load %arg12[%c24_99, %c0_100] : memref<162x512xf32, #tpu.memory_space<vmem>>, vector<6x512xf32>
    tpu.vector_store %arg12[%c24_99, %c0_100], %256 {strides = array<i32>} : memref<162x512xf32, #tpu.memory_space<vmem>>, vector<6x512xf32>,
    %258 = vector.extract_strided_slice %222 {offsets = [0, 449], sizes = [6, 63], strides = [1, 1]} : vector<6x512xf32> to vector<6x63xf32>
    %259 = vector.extract_strided_slice %222 {offsets = [0, 0], sizes = [6, 449], strides = [1, 1]} : vector<6x512xf32> to vector<6x449xf32>
    %260 = tpu.concatenate %258, %259 in 1 : vector<6x63xf32>, vector<6x449xf32> -> vector<6x512xf32>
    %c5_101 = arith.constant 5 : index
    %c0_102 = arith.constant 0 : index
    %261 = vector.load %arg2[%c5_101, %c0_102] : memref<27x512xf32, #tpu.memory_space<vmem>>, vector<1x512xf32>
    %262 = vector.broadcast %261 : vector<1x512xf32> to vector<6x512xf32>
    %263 = arith.mulf %260, %262 : vector<6x512xf32>
    %c30 = arith.constant 30 : index
    %c0_103 = arith.constant 0 : index
    %264 = vector.load %arg12[%c30, %c0_103] : memref<162x512xf32, #tpu.memory_space<vmem>>, vector<6x512xf32>
    tpu.vector_store %arg12[%c30, %c0_103], %263 {strides = array<i32>} : memref<162x512xf32, #tpu.memory_space<vmem>>, vector<6x512xf32>,
    %265 = vector.extract_strided_slice %222 {offsets = [0, 455], sizes = [6, 57], strides = [1, 1]} : vector<6x512xf32> to vector<6x57xf32>
    %266 = vector.extract_strided_slice %222 {offsets = [0, 0], sizes = [6, 455], strides = [1, 1]} : vector<6x512xf32> to vector<6x455xf32>
    %267 = tpu.concatenate %265, %266 in 1 : vector<6x57xf32>, vector<6x455xf32> -> vector<6x512xf32>
    %c6_104 = arith.constant 6 : index
    %c0_105 = arith.constant 0 : index
    %268 = vector.load %arg2[%c6_104, %c0_105] : memref<27x512xf32, #tpu.memory_space<vmem>>, vector<1x512xf32>
    %269 = vector.broadcast %268 : vector<1x512xf32> to vector<6x512xf32>
    %270 = arith.mulf %267, %269 : vector<6x512xf32>
    %c36_106 = arith.constant 36 : index
    %c0_107 = arith.constant 0 : index
    %271 = vector.load %arg12[%c36_106, %c0_107] : memref<162x512xf32, #tpu.memory_space<vmem>>, vector<6x512xf32>
    tpu.vector_store %arg12[%c36_106, %c0_107], %270 {strides = array<i32>} : memref<162x512xf32, #tpu.memory_space<vmem>>, vector<6x512xf32>,
    %272 = vector.extract_strided_slice %222 {offsets = [0, 456], sizes = [6, 56], strides = [1, 1]} : vector<6x512xf32> to vector<6x56xf32>
    %273 = vector.extract_strided_slice %222 {offsets = [0, 0], sizes = [6, 456], strides = [1, 1]} : vector<6x512xf32> to vector<6x456xf32>
    %274 = tpu.concatenate %272, %273 in 1 : vector<6x56xf32>, vector<6x456xf32> -> vector<6x512xf32>
    %c7_108 = arith.constant 7 : index
    %c0_109 = arith.constant 0 : index
    %275 = vector.load %arg2[%c7_108, %c0_109] : memref<27x512xf32, #tpu.memory_space<vmem>>, vector<1x512xf32>
    %276 = vector.broadcast %275 : vector<1x512xf32> to vector<6x512xf32>
    %277 = arith.mulf %274, %276 : vector<6x512xf32>
    %c42 = arith.constant 42 : index
    %c0_110 = arith.constant 0 : index
    %278 = vector.load %arg12[%c42, %c0_110] : memref<162x512xf32, #tpu.memory_space<vmem>>, vector<6x512xf32>
    tpu.vector_store %arg12[%c42, %c0_110], %277 {strides = array<i32>} : memref<162x512xf32, #tpu.memory_space<vmem>>, vector<6x512xf32>,
    %279 = vector.extract_strided_slice %222 {offsets = [0, 457], sizes = [6, 55], strides = [1, 1]} : vector<6x512xf32> to vector<6x55xf32>
    %280 = vector.extract_strided_slice %222 {offsets = [0, 0], sizes = [6, 457], strides = [1, 1]} : vector<6x512xf32> to vector<6x457xf32>
    %281 = tpu.concatenate %279, %280 in 1 : vector<6x55xf32>, vector<6x457xf32> -> vector<6x512xf32>
    %c8_111 = arith.constant 8 : index
    %c0_112 = arith.constant 0 : index
    %282 = vector.load %arg2[%c8_111, %c0_112] : memref<27x512xf32, #tpu.memory_space<vmem>>, vector<1x512xf32>
    %283 = vector.broadcast %282 : vector<1x512xf32> to vector<6x512xf32>
    %284 = arith.mulf %281, %283 : vector<6x512xf32>
    %c48_113 = arith.constant 48 : index
    %c0_114 = arith.constant 0 : index
    %285 = vector.load %arg12[%c48_113, %c0_114] : memref<162x512xf32, #tpu.memory_space<vmem>>, vector<6x512xf32>
    tpu.vector_store %arg12[%c48_113, %c0_114], %284 {strides = array<i32>} : memref<162x512xf32, #tpu.memory_space<vmem>>, vector<6x512xf32>,
    %286 = vector.extract_strided_slice %222 {offsets = [0, 503], sizes = [6, 9], strides = [1, 1]} : vector<6x512xf32> to vector<6x9xf32>
    %287 = vector.extract_strided_slice %222 {offsets = [0, 0], sizes = [6, 503], strides = [1, 1]} : vector<6x512xf32> to vector<6x503xf32>
    %288 = tpu.concatenate %286, %287 in 1 : vector<6x9xf32>, vector<6x503xf32> -> vector<6x512xf32>
    %c9_115 = arith.constant 9 : index
    %c0_116 = arith.constant 0 : index
    %289 = vector.load %arg2[%c9_115, %c0_116] : memref<27x512xf32, #tpu.memory_space<vmem>>, vector<1x512xf32>
    %290 = vector.broadcast %289 : vector<1x512xf32> to vector<6x512xf32>
    %291 = arith.mulf %288, %290 : vector<6x512xf32>
    %c54 = arith.constant 54 : index
    %c0_117 = arith.constant 0 : index
    %292 = vector.load %arg12[%c54, %c0_117] : memref<162x512xf32, #tpu.memory_space<vmem>>, vector<6x512xf32>
    tpu.vector_store %arg12[%c54, %c0_117], %291 {strides = array<i32>} : memref<162x512xf32, #tpu.memory_space<vmem>>, vector<6x512xf32>,
    %293 = vector.extract_strided_slice %222 {offsets = [0, 504], sizes = [6, 8], strides = [1, 1]} : vector<6x512xf32> to vector<6x8xf32>
    %294 = vector.extract_strided_slice %222 {offsets = [0, 0], sizes = [6, 504], strides = [1, 1]} : vector<6x512xf32> to vector<6x504xf32>
    %295 = tpu.concatenate %293, %294 in 1 : vector<6x8xf32>, vector<6x504xf32> -> vector<6x512xf32>
    %c10_118 = arith.constant 10 : index
    %c0_119 = arith.constant 0 : index
    %296 = vector.load %arg2[%c10_118, %c0_119] : memref<27x512xf32, #tpu.memory_space<vmem>>, vector<1x512xf32>
    %297 = vector.broadcast %296 : vector<1x512xf32> to vector<6x512xf32>
    %298 = arith.mulf %295, %297 : vector<6x512xf32>
    %c60_120 = arith.constant 60 : index
    %c0_121 = arith.constant 0 : index
    %299 = vector.load %arg12[%c60_120, %c0_121] : memref<162x512xf32, #tpu.memory_space<vmem>>, vector<6x512xf32>
    tpu.vector_store %arg12[%c60_120, %c0_121], %298 {strides = array<i32>} : memref<162x512xf32, #tpu.memory_space<vmem>>, vector<6x512xf32>,
    %300 = vector.extract_strided_slice %222 {offsets = [0, 505], sizes = [6, 7], strides = [1, 1]} : vector<6x512xf32> to vector<6x7xf32>
    %301 = vector.extract_strided_slice %222 {offsets = [0, 0], sizes = [6, 505], strides = [1, 1]} : vector<6x512xf32> to vector<6x505xf32>
    %302 = tpu.concatenate %300, %301 in 1 : vector<6x7xf32>, vector<6x505xf32> -> vector<6x512xf32>
    %c11_122 = arith.constant 11 : index
    %c0_123 = arith.constant 0 : index
    %303 = vector.load %arg2[%c11_122, %c0_123] : memref<27x512xf32, #tpu.memory_space<vmem>>, vector<1x512xf32>
    %304 = vector.broadcast %303 : vector<1x512xf32> to vector<6x512xf32>
    %305 = arith.mulf %302, %304 : vector<6x512xf32>
    %c66 = arith.constant 66 : index
    %c0_124 = arith.constant 0 : index
    %306 = vector.load %arg12[%c66, %c0_124] : memref<162x512xf32, #tpu.memory_space<vmem>>, vector<6x512xf32>
    tpu.vector_store %arg12[%c66, %c0_124], %305 {strides = array<i32>} : memref<162x512xf32, #tpu.memory_space<vmem>>, vector<6x512xf32>,
    %307 = vector.extract_strided_slice %222 {offsets = [0, 511], sizes = [6, 1], strides = [1, 1]} : vector<6x512xf32> to vector<6x1xf32>
    %308 = vector.extract_strided_slice %222 {offsets = [0, 0], sizes = [6, 511], strides = [1, 1]} : vector<6x512xf32> to vector<6x511xf32>
    %309 = tpu.concatenate %307, %308 in 1 : vector<6x1xf32>, vector<6x511xf32> -> vector<6x512xf32>
    %c12_125 = arith.constant 12 : index
    %c0_126 = arith.constant 0 : index
    %310 = vector.load %arg2[%c12_125, %c0_126] : memref<27x512xf32, #tpu.memory_space<vmem>>, vector<1x512xf32>
    %311 = vector.broadcast %310 : vector<1x512xf32> to vector<6x512xf32>
    %312 = arith.mulf %309, %311 : vector<6x512xf32>
    %c72_127 = arith.constant 72 : index
    %c0_128 = arith.constant 0 : index
    %313 = vector.load %arg12[%c72_127, %c0_128] : memref<162x512xf32, #tpu.memory_space<vmem>>, vector<6x512xf32>
    tpu.vector_store %arg12[%c72_127, %c0_128], %312 {strides = array<i32>} : memref<162x512xf32, #tpu.memory_space<vmem>>, vector<6x512xf32>,
    %c13_129 = arith.constant 13 : index
    %c0_130 = arith.constant 0 : index
    %314 = vector.load %arg2[%c13_129, %c0_130] : memref<27x512xf32, #tpu.memory_space<vmem>>, vector<1x512xf32>
    %315 = vector.broadcast %314 : vector<1x512xf32> to vector<6x512xf32>
    %316 = arith.mulf %222, %315 : vector<6x512xf32>
    %c78 = arith.constant 78 : index
    %c0_131 = arith.constant 0 : index
    %317 = vector.load %arg12[%c78, %c0_131] : memref<162x512xf32, #tpu.memory_space<vmem>>, vector<6x512xf32>
    tpu.vector_store %arg12[%c78, %c0_131], %316 {strides = array<i32>} : memref<162x512xf32, #tpu.memory_space<vmem>>, vector<6x512xf32>,
    %318 = vector.extract_strided_slice %222 {offsets = [0, 1], sizes = [6, 511], strides = [1, 1]} : vector<6x512xf32> to vector<6x511xf32>
    %319 = vector.extract_strided_slice %222 {offsets = [0, 0], sizes = [6, 1], strides = [1, 1]} : vector<6x512xf32> to vector<6x1xf32>
    %320 = tpu.concatenate %318, %319 in 1 : vector<6x511xf32>, vector<6x1xf32> -> vector<6x512xf32>
    %c14_132 = arith.constant 14 : index
    %c0_133 = arith.constant 0 : index
    %321 = vector.load %arg2[%c14_132, %c0_133] : memref<27x512xf32, #tpu.memory_space<vmem>>, vector<1x512xf32>
    %322 = vector.broadcast %321 : vector<1x512xf32> to vector<6x512xf32>
    %323 = arith.mulf %320, %322 : vector<6x512xf32>
    %c84_134 = arith.constant 84 : index
    %c0_135 = arith.constant 0 : index
    %324 = vector.load %arg12[%c84_134, %c0_135] : memref<162x512xf32, #tpu.memory_space<vmem>>, vector<6x512xf32>
    tpu.vector_store %arg12[%c84_134, %c0_135], %323 {strides = array<i32>} : memref<162x512xf32, #tpu.memory_space<vmem>>, vector<6x512xf32>,
    %325 = vector.extract_strided_slice %222 {offsets = [0, 7], sizes = [6, 505], strides = [1, 1]} : vector<6x512xf32> to vector<6x505xf32>
    %326 = vector.extract_strided_slice %222 {offsets = [0, 0], sizes = [6, 7], strides = [1, 1]} : vector<6x512xf32> to vector<6x7xf32>
    %327 = tpu.concatenate %325, %326 in 1 : vector<6x505xf32>, vector<6x7xf32> -> vector<6x512xf32>
    %c15_136 = arith.constant 15 : index
    %c0_137 = arith.constant 0 : index
    %328 = vector.load %arg2[%c15_136, %c0_137] : memref<27x512xf32, #tpu.memory_space<vmem>>, vector<1x512xf32>
    %329 = vector.broadcast %328 : vector<1x512xf32> to vector<6x512xf32>
    %330 = arith.mulf %327, %329 : vector<6x512xf32>
    %c90 = arith.constant 90 : index
    %c0_138 = arith.constant 0 : index
    %331 = vector.load %arg12[%c90, %c0_138] : memref<162x512xf32, #tpu.memory_space<vmem>>, vector<6x512xf32>
    tpu.vector_store %arg12[%c90, %c0_138], %330 {strides = array<i32>} : memref<162x512xf32, #tpu.memory_space<vmem>>, vector<6x512xf32>,
    %332 = vector.extract_strided_slice %222 {offsets = [0, 8], sizes = [6, 504], strides = [1, 1]} : vector<6x512xf32> to vector<6x504xf32>
    %333 = vector.extract_strided_slice %222 {offsets = [0, 0], sizes = [6, 8], strides = [1, 1]} : vector<6x512xf32> to vector<6x8xf32>
    %334 = tpu.concatenate %332, %333 in 1 : vector<6x504xf32>, vector<6x8xf32> -> vector<6x512xf32>
    %c16_139 = arith.constant 16 : index
    %c0_140 = arith.constant 0 : index
    %335 = vector.load %arg2[%c16_139, %c0_140] : memref<27x512xf32, #tpu.memory_space<vmem>>, vector<1x512xf32>
    %336 = vector.broadcast %335 : vector<1x512xf32> to vector<6x512xf32>
    %337 = arith.mulf %334, %336 : vector<6x512xf32>
    %c96_141 = arith.constant 96 : index
    %c0_142 = arith.constant 0 : index
    %338 = vector.load %arg12[%c96_141, %c0_142] : memref<162x512xf32, #tpu.memory_space<vmem>>, vector<6x512xf32>
    tpu.vector_store %arg12[%c96_141, %c0_142], %337 {strides = array<i32>} : memref<162x512xf32, #tpu.memory_space<vmem>>, vector<6x512xf32>,
    %339 = vector.extract_strided_slice %222 {offsets = [0, 9], sizes = [6, 503], strides = [1, 1]} : vector<6x512xf32> to vector<6x503xf32>
    %340 = vector.extract_strided_slice %222 {offsets = [0, 0], sizes = [6, 9], strides = [1, 1]} : vector<6x512xf32> to vector<6x9xf32>
    %341 = tpu.concatenate %339, %340 in 1 : vector<6x503xf32>, vector<6x9xf32> -> vector<6x512xf32>
    %c17_143 = arith.constant 17 : index
    %c0_144 = arith.constant 0 : index
    %342 = vector.load %arg2[%c17_143, %c0_144] : memref<27x512xf32, #tpu.memory_space<vmem>>, vector<1x512xf32>
    %343 = vector.broadcast %342 : vector<1x512xf32> to vector<6x512xf32>
    %344 = arith.mulf %341, %343 : vector<6x512xf32>
    %c102 = arith.constant 102 : index
    %c0_145 = arith.constant 0 : index
    %345 = vector.load %arg12[%c102, %c0_145] : memref<162x512xf32, #tpu.memory_space<vmem>>, vector<6x512xf32>
    tpu.vector_store %arg12[%c102, %c0_145], %344 {strides = array<i32>} : memref<162x512xf32, #tpu.memory_space<vmem>>, vector<6x512xf32>,
    %346 = vector.extract_strided_slice %222 {offsets = [0, 55], sizes = [6, 457], strides = [1, 1]} : vector<6x512xf32> to vector<6x457xf32>
    %347 = vector.extract_strided_slice %222 {offsets = [0, 0], sizes = [6, 55], strides = [1, 1]} : vector<6x512xf32> to vector<6x55xf32>
    %348 = tpu.concatenate %346, %347 in 1 : vector<6x457xf32>, vector<6x55xf32> -> vector<6x512xf32>
    %c18_146 = arith.constant 18 : index
    %c0_147 = arith.constant 0 : index
    %349 = vector.load %arg2[%c18_146, %c0_147] : memref<27x512xf32, #tpu.memory_space<vmem>>, vector<1x512xf32>
    %350 = vector.broadcast %349 : vector<1x512xf32> to vector<6x512xf32>
    %351 = arith.mulf %348, %350 : vector<6x512xf32>
    %c108 = arith.constant 108 : index
    %c0_148 = arith.constant 0 : index
    %352 = vector.load %arg12[%c108, %c0_148] : memref<162x512xf32, #tpu.memory_space<vmem>>, vector<6x512xf32>
    tpu.vector_store %arg12[%c108, %c0_148], %351 {strides = array<i32>} : memref<162x512xf32, #tpu.memory_space<vmem>>, vector<6x512xf32>,
    %353 = vector.extract_strided_slice %222 {offsets = [0, 56], sizes = [6, 456], strides = [1, 1]} : vector<6x512xf32> to vector<6x456xf32>
    %354 = vector.extract_strided_slice %222 {offsets = [0, 0], sizes = [6, 56], strides = [1, 1]} : vector<6x512xf32> to vector<6x56xf32>
    %355 = tpu.concatenate %353, %354 in 1 : vector<6x456xf32>, vector<6x56xf32> -> vector<6x512xf32>
    %c19_149 = arith.constant 19 : index
    %c0_150 = arith.constant 0 : index
    %356 = vector.load %arg2[%c19_149, %c0_150] : memref<27x512xf32, #tpu.memory_space<vmem>>, vector<1x512xf32>
    %357 = vector.broadcast %356 : vector<1x512xf32> to vector<6x512xf32>
    %358 = arith.mulf %355, %357 : vector<6x512xf32>
    %c114 = arith.constant 114 : index
    %c0_151 = arith.constant 0 : index
    %359 = vector.load %arg12[%c114, %c0_151] : memref<162x512xf32, #tpu.memory_space<vmem>>, vector<6x512xf32>
    tpu.vector_store %arg12[%c114, %c0_151], %358 {strides = array<i32>} : memref<162x512xf32, #tpu.memory_space<vmem>>, vector<6x512xf32>,
    %360 = vector.extract_strided_slice %222 {offsets = [0, 57], sizes = [6, 455], strides = [1, 1]} : vector<6x512xf32> to vector<6x455xf32>
    %361 = vector.extract_strided_slice %222 {offsets = [0, 0], sizes = [6, 57], strides = [1, 1]} : vector<6x512xf32> to vector<6x57xf32>
    %362 = tpu.concatenate %360, %361 in 1 : vector<6x455xf32>, vector<6x57xf32> -> vector<6x512xf32>
    %c20_152 = arith.constant 20 : index
    %c0_153 = arith.constant 0 : index
    %363 = vector.load %arg2[%c20_152, %c0_153] : memref<27x512xf32, #tpu.memory_space<vmem>>, vector<1x512xf32>
    %364 = vector.broadcast %363 : vector<1x512xf32> to vector<6x512xf32>
    %365 = arith.mulf %362, %364 : vector<6x512xf32>
    %c120 = arith.constant 120 : index
    %c0_154 = arith.constant 0 : index
    %366 = vector.load %arg12[%c120, %c0_154] : memref<162x512xf32, #tpu.memory_space<vmem>>, vector<6x512xf32>
    tpu.vector_store %arg12[%c120, %c0_154], %365 {strides = array<i32>} : memref<162x512xf32, #tpu.memory_space<vmem>>, vector<6x512xf32>,
    %367 = vector.extract_strided_slice %222 {offsets = [0, 63], sizes = [6, 449], strides = [1, 1]} : vector<6x512xf32> to vector<6x449xf32>
    %368 = vector.extract_strided_slice %222 {offsets = [0, 0], sizes = [6, 63], strides = [1, 1]} : vector<6x512xf32> to vector<6x63xf32>
    %369 = tpu.concatenate %367, %368 in 1 : vector<6x449xf32>, vector<6x63xf32> -> vector<6x512xf32>
    %c21_155 = arith.constant 21 : index
    %c0_156 = arith.constant 0 : index
    %370 = vector.load %arg2[%c21_155, %c0_156] : memref<27x512xf32, #tpu.memory_space<vmem>>, vector<1x512xf32>
    %371 = vector.broadcast %370 : vector<1x512xf32> to vector<6x512xf32>
    %372 = arith.mulf %369, %371 : vector<6x512xf32>
    %c126 = arith.constant 126 : index
    %c0_157 = arith.constant 0 : index
    %373 = vector.load %arg12[%c126, %c0_157] : memref<162x512xf32, #tpu.memory_space<vmem>>, vector<6x512xf32>
    tpu.vector_store %arg12[%c126, %c0_157], %372 {strides = array<i32>} : memref<162x512xf32, #tpu.memory_space<vmem>>, vector<6x512xf32>,
    %374 = vector.extract_strided_slice %222 {offsets = [0, 64], sizes = [6, 448], strides = [1, 1]} : vector<6x512xf32> to vector<6x448xf32>
    %375 = vector.extract_strided_slice %222 {offsets = [0, 0], sizes = [6, 64], strides = [1, 1]} : vector<6x512xf32> to vector<6x64xf32>
    %376 = tpu.concatenate %374, %375 in 1 : vector<6x448xf32>, vector<6x64xf32> -> vector<6x512xf32>
    %c22_158 = arith.constant 22 : index
    %c0_159 = arith.constant 0 : index
    %377 = vector.load %arg2[%c22_158, %c0_159] : memref<27x512xf32, #tpu.memory_space<vmem>>, vector<1x512xf32>
    %378 = vector.broadcast %377 : vector<1x512xf32> to vector<6x512xf32>
    %379 = arith.mulf %376, %378 : vector<6x512xf32>
    %c132 = arith.constant 132 : index
    %c0_160 = arith.constant 0 : index
    %380 = vector.load %arg12[%c132, %c0_160] : memref<162x512xf32, #tpu.memory_space<vmem>>, vector<6x512xf32>
    tpu.vector_store %arg12[%c132, %c0_160], %379 {strides = array<i32>} : memref<162x512xf32, #tpu.memory_space<vmem>>, vector<6x512xf32>,
    %381 = vector.extract_strided_slice %222 {offsets = [0, 65], sizes = [6, 447], strides = [1, 1]} : vector<6x512xf32> to vector<6x447xf32>
    %382 = vector.extract_strided_slice %222 {offsets = [0, 0], sizes = [6, 65], strides = [1, 1]} : vector<6x512xf32> to vector<6x65xf32>
    %383 = tpu.concatenate %381, %382 in 1 : vector<6x447xf32>, vector<6x65xf32> -> vector<6x512xf32>
    %c23_161 = arith.constant 23 : index
    %c0_162 = arith.constant 0 : index
    %384 = vector.load %arg2[%c23_161, %c0_162] : memref<27x512xf32, #tpu.memory_space<vmem>>, vector<1x512xf32>
    %385 = vector.broadcast %384 : vector<1x512xf32> to vector<6x512xf32>
    %386 = arith.mulf %383, %385 : vector<6x512xf32>
    %c138 = arith.constant 138 : index
    %c0_163 = arith.constant 0 : index
    %387 = vector.load %arg12[%c138, %c0_163] : memref<162x512xf32, #tpu.memory_space<vmem>>, vector<6x512xf32>
    tpu.vector_store %arg12[%c138, %c0_163], %386 {strides = array<i32>} : memref<162x512xf32, #tpu.memory_space<vmem>>, vector<6x512xf32>,
    %388 = vector.extract_strided_slice %222 {offsets = [0, 71], sizes = [6, 441], strides = [1, 1]} : vector<6x512xf32> to vector<6x441xf32>
    %389 = vector.extract_strided_slice %222 {offsets = [0, 0], sizes = [6, 71], strides = [1, 1]} : vector<6x512xf32> to vector<6x71xf32>
    %390 = tpu.concatenate %388, %389 in 1 : vector<6x441xf32>, vector<6x71xf32> -> vector<6x512xf32>
    %c24_164 = arith.constant 24 : index
    %c0_165 = arith.constant 0 : index
    %391 = vector.load %arg2[%c24_164, %c0_165] : memref<27x512xf32, #tpu.memory_space<vmem>>, vector<1x512xf32>
    %392 = vector.broadcast %391 : vector<1x512xf32> to vector<6x512xf32>
    %393 = arith.mulf %390, %392 : vector<6x512xf32>
    %c144 = arith.constant 144 : index
    %c0_166 = arith.constant 0 : index
    %394 = vector.load %arg12[%c144, %c0_166] : memref<162x512xf32, #tpu.memory_space<vmem>>, vector<6x512xf32>
    tpu.vector_store %arg12[%c144, %c0_166], %393 {strides = array<i32>} : memref<162x512xf32, #tpu.memory_space<vmem>>, vector<6x512xf32>,
    %395 = vector.extract_strided_slice %222 {offsets = [0, 72], sizes = [6, 440], strides = [1, 1]} : vector<6x512xf32> to vector<6x440xf32>
    %396 = vector.extract_strided_slice %222 {offsets = [0, 0], sizes = [6, 72], strides = [1, 1]} : vector<6x512xf32> to vector<6x72xf32>
    %397 = tpu.concatenate %395, %396 in 1 : vector<6x440xf32>, vector<6x72xf32> -> vector<6x512xf32>
    %c25_167 = arith.constant 25 : index
    %c0_168 = arith.constant 0 : index
    %398 = vector.load %arg2[%c25_167, %c0_168] : memref<27x512xf32, #tpu.memory_space<vmem>>, vector<1x512xf32>
    %399 = vector.broadcast %398 : vector<1x512xf32> to vector<6x512xf32>
    %400 = arith.mulf %397, %399 : vector<6x512xf32>
    %c150 = arith.constant 150 : index
    %c0_169 = arith.constant 0 : index
    %401 = vector.load %arg12[%c150, %c0_169] : memref<162x512xf32, #tpu.memory_space<vmem>>, vector<6x512xf32>
    tpu.vector_store %arg12[%c150, %c0_169], %400 {strides = array<i32>} : memref<162x512xf32, #tpu.memory_space<vmem>>, vector<6x512xf32>,
    %402 = vector.extract_strided_slice %222 {offsets = [0, 73], sizes = [6, 439], strides = [1, 1]} : vector<6x512xf32> to vector<6x439xf32>
    %403 = vector.extract_strided_slice %222 {offsets = [0, 0], sizes = [6, 73], strides = [1, 1]} : vector<6x512xf32> to vector<6x73xf32>
    %404 = tpu.concatenate %402, %403 in 1 : vector<6x439xf32>, vector<6x73xf32> -> vector<6x512xf32>
    %c26_170 = arith.constant 26 : index
    %c0_171 = arith.constant 0 : index
    %405 = vector.load %arg2[%c26_170, %c0_171] : memref<27x512xf32, #tpu.memory_space<vmem>>, vector<1x512xf32>
    %406 = vector.broadcast %405 : vector<1x512xf32> to vector<6x512xf32>
    %407 = arith.mulf %404, %406 : vector<6x512xf32>
    %c156 = arith.constant 156 : index
    %c0_172 = arith.constant 0 : index
    %408 = vector.load %arg12[%c156, %c0_172] : memref<162x512xf32, #tpu.memory_space<vmem>>, vector<6x512xf32>
    tpu.vector_store %arg12[%c156, %c0_172], %407 {strides = array<i32>} : memref<162x512xf32, #tpu.memory_space<vmem>>, vector<6x512xf32>,
    %c0_173 = arith.constant 0 : index
    %c0_174 = arith.constant 0 : index
    %409 = vector.load %arg12[%c0_173, %c0_174] : memref<162x512xf32, #tpu.memory_space<vmem>>, vector<162x512xf32>
    %410 = arith.truncf %409 : vector<162x512xf32> to vector<162x512xbf16>
    %c0_175 = arith.constant 0 : index
    %c0_176 = arith.constant 0 : index
    %411 = vector.load %arg7[%c0_175, %c0_176] : memref<8x162xbf16, #tpu.memory_space<vmem>>, vector<8x162xbf16>
    %cst_177 = arith.constant dense<0.000000e+00> : vector<8x512xf32>
    %412 = tpu.matmul %411, %410, %cst_177 {dimension_numbers = #tpu.dot_dimension_numbers<[1], [0], [0], [1], [0, 0, 1, 1], [], []>} : vector<8x162xbf16>, vector<162x512xbf16>, vector<8x512xf32> -> vector<8x512xf32>
    %c0_178 = arith.constant 0 : index
    %c0_179 = arith.constant 0 : index
    %413 = vector.load %arg8[%c0_178, %c0_179] : memref<8x1xf32, #tpu.memory_space<vmem>>, vector<8x1xf32>
    %414 = vector.broadcast %413 : vector<8x1xf32> to vector<8x512xf32>
    %415 = arith.addf %412, %414 : vector<8x512xf32>
    %cst_180 = arith.constant dense<0.000000e+00> : vector<8xf32>
    %416 = vector.multi_reduction <add>, %415, %cst_180 [1] : vector<8x512xf32> to vector<8xf32>
    %417 = vector.shape_cast %416 : vector<8xf32> to vector<8x1xf32>
    %cst_181 = arith.constant 5.120000e+02 : f32
    %418 = vector.broadcast %cst_181 : f32 to vector<8x1xf32>
    %419 = arith.divf %417, %418 : vector<8x1xf32>
    %420 = vector.broadcast %419 : vector<8x1xf32> to vector<8x512xf32>
    %421 = arith.subf %415, %420 : vector<8x512xf32>
    %422 = arith.mulf %421, %421 : vector<8x512xf32>
    %cst_182 = arith.constant dense<0.000000e+00> : vector<8xf32>
    %423 = vector.multi_reduction <add>, %422, %cst_182 [1] : vector<8x512xf32> to vector<8xf32>
    %424 = vector.shape_cast %423 : vector<8xf32> to vector<8x1xf32>
    %cst_183 = arith.constant 5.120000e+02 : f32
    %425 = vector.broadcast %cst_183 : f32 to vector<8x1xf32>
    %426 = arith.divf %424, %425 : vector<8x1xf32>
    %cst_184 = arith.constant 9.99999974E-6 : f32
    %427 = vector.broadcast %cst_184 : f32 to vector<8x1xf32>
    %428 = arith.addf %426, %427 : vector<8x1xf32>
    %429 = math.rsqrt %428 : vector<8x1xf32>
    %c0_185 = arith.constant 0 : index
    %c0_186 = arith.constant 0 : index
    %430 = vector.load %arg9[%c0_185, %c0_186] : memref<8x1xf32, #tpu.memory_space<vmem>>, vector<8x1xf32>
    %431 = arith.mulf %429, %430 : vector<8x1xf32>
    %c0_187 = arith.constant 0 : index
    %c0_188 = arith.constant 0 : index
    %432 = vector.load %arg10[%c0_187, %c0_188] : memref<8x1xf32, #tpu.memory_space<vmem>>, vector<8x1xf32>
    %433 = arith.mulf %419, %431 : vector<8x1xf32>
    %434 = arith.subf %432, %433 : vector<8x1xf32>
    %435 = vector.broadcast %431 : vector<8x1xf32> to vector<8x512xf32>
    %436 = arith.mulf %415, %435 : vector<8x512xf32>
    %437 = vector.broadcast %434 : vector<8x1xf32> to vector<8x512xf32>
    %438 = arith.addf %436, %437 : vector<8x512xf32>
    %cst_189 = arith.constant 0.000000e+00 : f32
    %439 = vector.broadcast %cst_189 : f32 to vector<8x512xf32>
    %440 = arith.cmpf oge, %438, %439 : vector<8x512xf32>
    %cst_190 = arith.constant 0.00999999977 : f32
    %441 = vector.broadcast %cst_190 : f32 to vector<8x512xf32>
    %442 = arith.mulf %441, %438 : vector<8x512xf32>
    %443 = arith.select %440, %438, %442 : vector<8x512xi1>, vector<8x512xf32>
    %c0_191 = arith.constant 0 : index
    %c0_192 = arith.constant 0 : index
    %c0_193 = arith.constant 0 : index
    %444 = vector.load %arg11[%c0_191, %c0_192, %c0_193] : memref<1x8x512xf32, #tpu.memory_space<vmem>>, vector<1x8x512xf32>
    %445 = vector.shape_cast %444 : vector<1x8x512xf32> to vector<8x512xf32>
    %446 = vector.shape_cast %443 : vector<8x512xf32> to vector<1x8x512xf32>
    tpu.vector_store %arg11[%c0_191, %c0_192, %c0_193], %446 {strides = array<i32>} : memref<1x8x512xf32, #tpu.memory_space<vmem>>, vector<1x8x512xf32>,
    return
  }
  func.func @transform_0(%arg0: i32) -> (i32, i32, i32) {
    %c0_i32 = arith.constant 0 : i32
    %c0_i32_0 = arith.constant 0 : i32
    %c0_i32_1 = arith.constant 0 : i32
    return %arg0, %c0_i32, %c0_i32_0 : i32, i32, i32
  }
  func.func @transform_1(%arg0: i32) -> (i32, i32) {
    %c0_i32 = arith.constant 0 : i32
    %c0_i32_0 = arith.constant 0 : i32
    %c0_i32_1 = arith.constant 0 : i32
    return %c0_i32, %c0_i32_0 : i32, i32
  }
  func.func @transform_2(%arg0: i32) -> (i32, i32) {
    %c0_i32 = arith.constant 0 : i32
    %c0_i32_0 = arith.constant 0 : i32
    %c0_i32_1 = arith.constant 0 : i32
    return %c0_i32, %c0_i32_0 : i32, i32
  }
  func.func @transform_3(%arg0: i32) -> (i32, i32) {
    %c0_i32 = arith.constant 0 : i32
    %c0_i32_0 = arith.constant 0 : i32
    %c0_i32_1 = arith.constant 0 : i32
    return %c0_i32, %c0_i32_0 : i32, i32
  }
  func.func @transform_4(%arg0: i32) -> (i32, i32) {
    %c0_i32 = arith.constant 0 : i32
    %c0_i32_0 = arith.constant 0 : i32
    %c0_i32_1 = arith.constant 0 : i32
    return %c0_i32, %c0_i32_0 : i32, i32
  }
  func.func @transform_5(%arg0: i32) -> (i32, i32) {
    %c0_i32 = arith.constant 0 : i32
    %c0_i32_0 = arith.constant 0 : i32
    %c0_i32_1 = arith.constant 0 : i32
    return %c0_i32, %c0_i32_0 : i32, i32
  }
  func.func @transform_6(%arg0: i32) -> (i32, i32) {
    %c0_i32 = arith.constant 0 : i32
    %c0_i32_0 = arith.constant 0 : i32
    %c0_i32_1 = arith.constant 0 : i32
    return %c0_i32, %c0_i32_0 : i32, i32
  }
  func.func @transform_7(%arg0: i32) -> (i32, i32) {
    %c0_i32 = arith.constant 0 : i32
    %c0_i32_0 = arith.constant 0 : i32
    %c0_i32_1 = arith.constant 0 : i32
    return %c0_i32, %c0_i32_0 : i32, i32
  }
  func.func @transform_8(%arg0: i32) -> (i32, i32) {
    %c0_i32 = arith.constant 0 : i32
    %c0_i32_0 = arith.constant 0 : i32
    %c0_i32_1 = arith.constant 0 : i32
    return %c0_i32, %c0_i32_0 : i32, i32
  }
  func.func @transform_9(%arg0: i32) -> (i32, i32) {
    %c0_i32 = arith.constant 0 : i32
    %c0_i32_0 = arith.constant 0 : i32
    %c0_i32_1 = arith.constant 0 : i32
    return %c0_i32, %c0_i32_0 : i32, i32
  }
  func.func @transform_10(%arg0: i32) -> (i32, i32, i32) {
    %c0_i32 = arith.constant 0 : i32
    %c0_i32_0 = arith.constant 0 : i32
    %c0_i32_1 = arith.constant 0 : i32
    return %arg0, %c0_i32, %c0_i32_0 : i32, i32, i32
  }
}

</mosaic_0001>

<bundles_post_ra>
// kernel: double_conv3d.1
= control target key start
LH: loop header
LB: loop body
LE: loop exit
PB: predicated region body
PF: predicated region fallthrough
CT: control target
= control target key end

     0   :  { %s3861_s13 = smov 0   ;;  %s5310_s0 = inlined_call_operand.vmem [shape: f32[2,4,512], index: 0, kind: input, shape index: {}]   ;;  %s5311_s1 = inlined_call_operand.vmem [shape: f32[27,512], index: 1, kind: input, shape index: {}]   ;;  %s5312_s2 = inlined_call_operand.vmem [shape: bf16[6,108], index: 2, kind: input, shape index: {}]   ;;  %s5313_s3 = inlined_call_operand.vmem [shape: f32[6,1], index: 3, kind: input, shape index: {}]   ;;  %s5314_s4 = inlined_call_operand.vmem [shape: f32[6,1], index: 4, kind: input, shape index: {}]   ;;  %s5315_s5 = inlined_call_operand.vmem [shape: f32[6,1], index: 5, kind: input, shape index: {}]   ;;  %s5316_s6 = inlined_call_operand.vmem [shape: bf16[8,162], index: 6, kind: input, shape index: {}]   ;;  %s5317_s7 = inlined_call_operand.vmem [shape: f32[8,1], index: 7, kind: input, shape index: {}]   ;;  %s5318_s8 = inlined_call_operand.vmem [shape: f32[8,1], index: 8, kind: input, shape index: {}]   ;;  %s5319_s9 = inlined_call_operand.vmem [shape: f32[8,1], index: 9, kind: input, shape index: {}]   ;;  %s5320_s10 = inlined_call_operand.vmem [shape: f32[2,8,512], index: 10, kind: output, shape index: {}]  }
   0x1 LB: > { %s3668_s14 = sadd.s32 4294967295, %s3786_s13   ;;  %p3672_p0 = scmp.ge.s32.totalorder %s3786_s13, 1  ;;  %s3786_s13 = sphi %s3861_s13, %s20_s13  }
   0x2   : > { %p312_p1 = scmp.lt.s32.totalorder %s3786_s13, 3 }
   0x4   : > { %p313_p2 = pnand %p3672_p0, %p312_p1 }
   0x5   : > { %p350_p3 = scmp.lt.s32.totalorder (!%p313_p2), %s3668_s14, 1  ;;  %s5323_s19 = smov (!%p313_p2), 56  }
   0x6   : > { %316 = sbr.rel (%p313_p2) target bundleno = 1862 (0x746), region = 60  ;;  %s5325_s20 = smov (!%p313_p2), 57  }
   0x7   : > { %s5332_s21 = smov (!%p313_p2), 55   ;;  %s3791_s22 = smov (!%p313_p2), 65  }
   0x8   : > { %s5330_s23 = smov (!%p313_p2), 63   ;;  %s3793_s24 = smov (!%p313_p2), 71  }
   0x9   : > { %s5321_s25 = smov (!%p313_p2), 64   ;;  %s3795_s26 = smov (!%p313_p2), 72  }
   0xa   : > { %s3796_s27 = smov (!%p313_p2), 119   ;;  %s3797_s28 = smov (!%p313_p2), 73  }
   0xb   : > { %s5362_s14 = smov (!%p350_p3, %s3668_s14), 1  ;;  %s3798_s29 = smov 120   ;;  %v387_v4 = vlaneseq  ;;  %v3689_v8 = vld [vmem:[%s5311_s1 + $0x25] ss:$8 sm:$0xf]  ;;  %vm5328_vm0 = vcmask 457728  }
   0xc   : > { %s3741_s15 = sshll.u32 %s5362_s14, 4  ;;  %s3799_s30 = smov 121   ;;  %v4020_v16 = vld [vmem:[%s5311_s1 + $0x7] ss:$8 sm:$0xf]  ;;  %vm5329_vm1 = vcmask 465920  }
   0xd   : > { %s354_s18 = scalar_lea.vmem %s5310_s0, %s3741_s15  ;;  %v388_v5 = vshrl.u32 %v387_v4, 7  ;;  %s3800_s15 = smov 1   ;;  %v4027_v19 = vld [vmem:[%s5311_s1 + $0x61] ss:$8 sm:$0xf]  ;;  %vm5335_vm2 = vcmask 449536  }
   0xe   : > { %v3875_v0 = vld [vmem:[%s354_s18 + $0x8] sm:$0xff]  ;;  %v3877_v1 = vld [vmem:[%s354_s18] sm:$0xff]  ;;  %s3801_s16 = smov 127   ;;  %s3802_s17 = smov 9   ;;  %vm534_vm3 = vcmask 531456   ;;  %vm5334_vm4 = vcmask 515072  }
   0xf   : > { %752 = vrot.lane.b32.xlu1 %v3875_v0, %s5323_s19  ;;  %748 = vrot.lane.b32.xlu0 %v3877_v1, %s5323_s19  ;;  %v3885_v2 = vcombine.high %v3877_v1, %v3877_v1  ;;  %v3909_v3 = vcombine.high %v3875_v0, %v3875_v0  ;;  %v3971_v6 = vsub.s32 0, %v388_v5  ;;  %v3973_v7 = vsub.s32 1, %v388_v5  ;;  %s3803_s18 = smov 7   ;;  %v4040_v25 = vld [vmem:[%s5311_s1 + $0x6] ss:$8 sm:$0xf] }
  0x10   : > { %v4009_v14 = vsub.s32 2, %v388_v5  ;;  %v4011_v15 = vsub.s32 3, %v388_v5  ;;  %v4053_v28 = vld [vmem:[%s5311_s1 + $0x60] ss:$8 sm:$0xf]  ;;  %s3804_s11 = smov 8  }
  0x11   : > { %v1081_v9 = vrot.slane %v3689_v8, %v3971_v6  ;;  %v1085_v10 = vrot.slane %v3689_v8, %v3973_v7  ;;  %v773_v23 = vrot.slane %v4020_v16, %v3973_v7  ;;  %v1589_v26 = vrot.slane %v4027_v19, %v3971_v6  ;;  %v4075_v43 = vld [vmem:[%s5311_s1 + $0x20] ss:$8 sm:$0xf]  ;;  %v4080_v44 = vld [vmem:[%s5311_s1 + $0x62] ss:$8 sm:$0xf] }
  0x12   : > { %v1089_v17 = vrot.slane %v3689_v8, %v4009_v14  ;;  %v1093_v18 = vrot.slane %v3689_v8, %v4011_v15  ;;  %v777_v24 = vrot.slane %v4020_v16, %v4009_v14  ;;  %v1593_v27 = vrot.slane %v4027_v19, %v3973_v7  ;;  %v4113_v4 = vld [vmem:[%s5311_s1 + $0x3] ss:$8 sm:$0xf]  ;;  %v4118_v5 = vld [vmem:[%s5311_s1 + $0x45] ss:$8 sm:$0xf] }
  0x13   : > { %699 = vrot.lane.b32.xlu1 %v3877_v1, %s5325_s20  ;;  %750 = vrot.lane.b32.xlu0 %v3885_v2, %s5323_s19  ;;  %v1094_v11 = vcombine.low %v1081_v9, %v1085_v10  ;;  %v724_v32 = vrot.slane %v4040_v25, %v3973_v7  ;;  %v728_v33 = vrot.slane %v4040_v25, %v4009_v14  ;;  %vm1752_vm5 = vcmask 1045504  }
  0x14   : > { %v1095_v22 = vcombine.low %v1089_v17, %v1093_v18  ;;  %v1558_v37 = vrot.slane %v4053_v28, %v3971_v6  ;;  %v1562_v38 = vrot.slane %v4053_v28, %v3973_v7  ;;  %v834_v53 = vrot.slane %v4075_v43, %v3973_v7  ;;  %v4135_v17 = vld [vmem:[%s5311_s1 + $0x5] ss:$8 sm:$0xf]  ;;  %v4142_v18 = vld [vmem:[%s5311_s1 + $0x47] ss:$8 sm:$0xf] }
  0x15   : > { %v1098_v12 = vmul.f32 %v1094_v11, %v3877_v1  ;;  %v1632_v54 = vrot.slane %v4080_v44, %v3971_v6  ;;  %vm485_vm6 = vcmask 580608   ;;  %vm5327_vm7 = vcmask 523264  }
  0x16   : > { %v1099_v29 = vmul.f32 %v1095_v22, %v3875_v0  ;;  %vm424_vm8 = vcmask 588800   ;;  %vm1277_vm9 = vcmask 973824   ;;  %vm376_vm10 = vcmask 596992  }
  0x17   : > { %703 = vrot.lane.b32.xlu1 %v3875_v0, %s5325_s20  ;;  %701 = vrot.lane.b32.xlu0 %v3885_v2, %s5325_s20  ;;  %1107 = vst [vmem:[#allocation2 + $0x198] sm:$0xf0] %v1098_v12  ;;  %v1102_v13 = vcombine.low %v1098_v12, %v1098_v12  ;;  %v557_v12 = vrot.slane %v4113_v4, %v4009_v14  ;;  %vm1228_vm11 = vcmask 982016   ;;  %vm1167_vm12 = vcmask 990208  }
  0x18   : > { %1109 = vst [vmem:[#allocation2] sm:$0xf0] %v1099_v29  ;;  %v1103_v34 = vcombine.low %v1099_v29, %v1099_v29  ;;  %v1601_v29 = vrot.slane %v4027_v19, %v4011_v15  ;;  %vm1035_vm13 = vcmask 7168   ;;  %vm1118_vm14 = vcmask 1039360  }
  0x19   : > { %1106 = vst [vmem:[#allocation2 + $0x220] sm:$0xf0] %v1102_v13  ;;  %v1445_v13 = vrot.slane %v4118_v5, %v3973_v7  ;;  %vm864_vm15 = vcmask 72704  }
  0x1a   : > { %1108 = vst [vmem:[#allocation2 + $0x80] sm:$0xf0] %v1103_v34  ;;  %v1519_v34 = vrot.slane %v4142_v18, %v3973_v7 }
  0x1b   : > { %811 = vrot.lane.b32.xlu1 %v3885_v2, %s5332_s21  ;;  %809 = vrot.lane.b32.xlu0 %v3877_v1, %s5332_s21 }
  0x1f   : > { %530 = vrot.lane.b32.xlu1 %v3885_v2, %s3791_s22  ;;  %813 = vrot.lane.b32.xlu0 %v3875_v0, %s5332_s21 }
  0x23   : > { %640 = vrot.lane.b32.xlu1 %v3885_v2, %s5330_s23  ;;  %532 = vrot.lane.b32.xlu0 %v3875_v0, %s3791_s22 }
  0x27   : > { %745 = vrot.lane.b32.xlu1 %v3909_v3, %s5323_s19  ;;  %642 = vrot.lane.b32.xlu0 %v3875_v0, %s5330_s23  ;;  %s5340_s19 = smov 64  }
  0x2b   : > { %638 = vrot.lane.b32.xlu1 %v3877_v1, %s5330_s23  ;;  %528 = vrot.lane.b32.xlu0 %v3877_v1, %s3791_s22 }
  0x2f   : > { %483 = vrot.lane.b32.xlu1 %v3875_v0, %s3793_s24  ;;  %481 = vrot.lane.b32.xlu0 %v3885_v2, %s3793_s24 }
  0x33   : > { %593 = vrot.lane.b32.xlu1 %v3875_v0, %s5321_s25  ;;  %591 = vrot.lane.b32.xlu0 %v3885_v2, %s5321_s25 }
  0x37   : > { %806 = vrot.lane.b32.xlu1 %v3909_v3, %s5332_s21  ;;  %696 = vrot.lane.b32.xlu0 %v3909_v3, %s5325_s20  ;;  %s5336_s21 = smov 55  }
  0x3b   : > { %589 = vrot.lane.b32.xlu1 %v3877_v1, %s5321_s25  ;;  %479 = vrot.lane.b32.xlu0 %v3877_v1, %s3793_s24 }
  0x3f   : > { %422 = vrot.lane.b32.xlu1 %v3875_v0, %s3795_s26  ;;  %420 = vrot.lane.b32.xlu0 %v3885_v2, %s3795_s26 }
  0x43   : > { %635 = vrot.lane.b32.xlu1 %v3909_v3, %s5330_s23  ;;  %525 = vrot.lane.b32.xlu0 %v3909_v3, %s3791_s22  ;;  %s5338_s23 = smov 57  }
  0x47   : > { %1273 = vrot.lane.b32.xlu1 %v3875_v0, %s3796_s27  ;;  %1271 = vrot.lane.b32.xlu0 %v3885_v2, %s3796_s27 }
  0x4b   : > { %1269 = vrot.lane.b32.xlu1 %v3877_v1, %s3796_s27  ;;  %418 = vrot.lane.b32.xlu0 %v3877_v1, %s3795_s26 }
  0x4f   : > { %374 = vrot.lane.b32.xlu1 %v3875_v0, %s3797_s28  ;;  %372 = vrot.lane.b32.xlu0 %v3885_v2, %s3797_s28 }
  0x53   : > { %586 = vrot.lane.b32.xlu1 %v3909_v3, %s5321_s25  ;;  %476 = vrot.lane.b32.xlu0 %v3909_v3, %s3793_s24 }
  0x57   : > { %1224 = vrot.lane.b32.xlu1 %v3875_v0, %s3798_s29  ;;  %1222 = vrot.lane.b32.xlu0 %v3885_v2, %s3798_s29 }
  0x5b   : > { %1220 = vrot.lane.b32.xlu1 %v3877_v1, %s3798_s29  ;;  %370 = vrot.lane.b32.xlu0 %v3877_v1, %s3797_s28 }
  0x5f   : > { %1161 = vrot.lane.b32.xlu1 %v3885_v2, %s3799_s30  ;;  %415 = vrot.lane.b32.xlu0 %v3909_v3, %s3795_s26 }
  0x63   : > { %1275 = vrot.lane.b32.xlu1 %v3909_v3, %s3796_s27  ;;  %1163 = vrot.lane.b32.xlu0 %v3875_v0, %s3799_s30 }
  0x67   : > { %365 = vrot.lane.b32.xlu1 %v3909_v3, %s3797_s28  ;;  %1159 = vrot.lane.b32.xlu0 %v3877_v1, %s3799_s30 }
  0x6b   : > { %1031 = vrot.lane.b32.xlu1 %v3885_v2, %s3800_s15  ;;  %1029 = vrot.lane.b32.xlu0 %v3877_v1, %s3800_s15 }
  0x6f   : > { %1114 = vrot.lane.b32.xlu1 %v3875_v0, %s3801_s16  ;;  %1112 = vrot.lane.b32.xlu0 %v3885_v2, %s3801_s16 }
  0x73   : > { %1026 = vrot.lane.b32.xlu1 %v3909_v3, %s3800_s15  ;;  %1226 = vrot.lane.b32.xlu0 %v3909_v3, %s3798_s29 }
  0x77   : > { %858 = vrot.lane.b32.xlu1 %v3877_v1, %s3802_s17  ;;  %1110 = vrot.lane.b32.xlu0 %v3877_v1, %s3801_s16 }
  0x7b   : > { %968 = vrot.lane.b32.xlu1 %v3877_v1, %s3803_s18  ;;  %860 = vrot.lane.b32.xlu0 %v3885_v2, %s3802_s17 }
  0x7f   : > { %1165 = vrot.lane.b32.xlu1 %v3909_v3, %s3799_s30  ;;  %970 = vrot.lane.b32.xlu0 %v3885_v2, %s3803_s18 }
  0x81   : > { %v4029_v20 = vpop.permute.xlu1 %752  ;;  %v4031_v21 = vpop.permute.xlu0 %748 }
  0x83   : > { %965 = vrot.lane.b32.xlu1 %v3909_v3, %s3803_s18  ;;  %855 = vrot.lane.b32.xlu0 %v3909_v3, %s3802_s17 }
  0x85   : > { %v4056_v30 = vpop.permute.xlu1 %699  ;;  %v751_v31 = vpop.permute.xlu0 %750 }
  0x86   : > { %v755_v35 = vsel %vm5328_vm0, %v4031_v21, %v751_v31  ;;  %v756_v36 = vsel %vm5328_vm0, %v751_v31, %v4029_v20  ;;  %v667_v31 = vrot.slane %v4135_v17, %v4009_v14 }
  0x87   : > { %v787_v39 = vmul.f32 %v773_v23, %v755_v35  ;;  %v788_v40 = vmul.f32 %v777_v24, %v756_v36  ;;  %v1606_v41 = vmul.f32 %v1589_v26, %v755_v35  ;;  %v1607_v42 = vmul.f32 %v1593_v27, %v756_v36  ;;  %921 = vrot.lane.b32.xlu1 %v3885_v2, %s3804_s11 }
  0x88   : > { %919 = vrot.lane.b32.xlu0 %v3877_v1, %s3804_s11  ;;  %v838_v1 = vrot.slane %v4075_v43, %v4009_v14  ;;  %v1636_v2 = vrot.slane %v4080_v44, %v3973_v7  ;;  %v769_v24 = vrot.slane %v4020_v16, %v3971_v6  ;;  %v781_v26 = vrot.slane %v4020_v16, %v4011_v15 }
  0x89   : > { %v795_v45 = vrot.slane %v787_v39, 4  ;;  %v796_v46 = vrot.slane %v788_v40, 4  ;;  %v1614_v47 = vrot.slane %v1606_v41, 4  ;;  %v1615_v48 = vrot.slane %v1607_v42, 4  ;;  %v4084_v49 = vpop.permute.xlu1 %703  ;;  %v702_v50 = vpop.permute.xlu0 %701 }
  0x8a   : > { %v706_v51 = vsel %vm5329_vm1, %v4056_v30, %v702_v50  ;;  %v707_v52 = vsel %vm5329_vm1, %v702_v50, %v4084_v49  ;;  %v1597_v27 = vrot.slane %v4027_v19, %v4009_v14  ;;  %v663_v35 = vrot.slane %v4135_v17, %v3973_v7 }
  0x8b   : > { %803 = vst [vmem:[#allocation2 + $0x298] sm:$0xf0] %v795_v45  ;;  %804 = vst [vmem:[#allocation2 + $0x230] sm:$0xf0] %v796_v46  ;;  %v738_v55 = vmul.f32 %v724_v32, %v706_v51  ;;  %v739_v56 = vmul.f32 %v728_v33, %v707_v52  ;;  %v1575_v57 = vmul.f32 %v1558_v37, %v706_v51  ;;  %1116 = vrot.lane.b32.xlu1 %v3909_v3, %s3801_s16 }
  0x8c   : > { %1622 = vst [vmem:[#allocation2 + $0x1d8] sm:$0xf0] %v1614_v47  ;;  %1623 = vst [vmem:[#allocation2 + $0x228] sm:$0xf0] %v1615_v48  ;;  %v1576_v58 = vmul.f32 %v1562_v38, %v707_v52  ;;  %1033 = vrot.lane.b32.xlu0 %v3875_v0, %s3800_s15  ;;  %v1515_v19 = vrot.slane %v4142_v18, %v3971_v6  ;;  %v553_v36 = vrot.slane %v4113_v4, %v3973_v7  ;;  %v3805_v47 = vmov 0  }
  0x8d   : > { %742 = vst [vmem:[#allocation2 + $0x298] sm:$0xf] %v738_v55  ;;  %743 = vst [vmem:[#allocation2 + $0x230] sm:$0xf] %v739_v56  ;;  %v812_v59 = vpop.permute.xlu1 %811  ;;  %v4098_v60 = vpop.permute.xlu0 %809  ;;  %v1441_v42 = vrot.slane %v4118_v5, %v3971_v6  ;;  %1797 = vmatprep.mubr.bf16.mxu0 %v3805_v47  ;;  %1838 = vmatprep.mubr.bf16.mxu1 %v3805_v47 }
  0x8e   : > { %1579 = vst [vmem:[#allocation2 + $0x1d8] sm:$0xf] %v1575_v57  ;;  %1580 = vst [vmem:[#allocation2 + $0x228] sm:$0xf] %v1576_v58  ;;  %v816_v61 = vsel %vm5335_vm2, %v4098_v60, %v812_v59  ;;  %3769 = vset.pattern.permute.xlu0 %v3805_v47  ;;  %3770 = vset.pattern.permute.xlu1 %v3805_v47 }
  0x8f   : > { %v848_v62 = vmul.f32 %v834_v53, %v816_v61  ;;  %v1649_v63 = vmul.f32 %v1632_v54, %v816_v61  ;;  %862 = vrot.lane.b32.xlu1 %v3875_v0, %s3802_s17  ;;  %v4162_v32 = vld [vmem:[%s5311_s1 + $0x2] ss:$8 sm:$0xf]  ;;  %v4175_v37 = vld [vmem:[%s5311_s1 + $0x44] ss:$8 sm:$0xf] }
  0x90   : > { %916 = vrot.lane.b32.xlu0 %v3909_v3, %s3804_s11  ;;  %v508_v46 = vrot.slane %v4162_v32, %v4009_v14 }
  0x91   : > { %852 = vst [vmem:[#allocation2 + $0x210] sm:$0xf] %v848_v62  ;;  %1653 = vst [vmem:[#allocation2 + $0x1e8] sm:$0xf] %v1649_v63  ;;  %v4120_v8 = vpop.permute.xlu1 %530  ;;  %v4122_v9 = vpop.permute.xlu0 %813 }
  0x92   : > { %v817_v10 = vsel %vm5335_vm2, %v812_v59, %v4122_v9 }
  0x93   : > { %v849_v3 = vmul.f32 %v838_v1, %v817_v10  ;;  %v1650_v11 = vmul.f32 %v1636_v2, %v817_v10  ;;  %923 = vrot.lane.b32.xlu1 %v3875_v0, %s3804_s11 }
  0x94   : > { %972 = vrot.lane.b32.xlu0 %v3875_v0, %s3803_s18 }
  0x95   : > { %853 = vst [vmem:[#allocation2 + $0x90] sm:$0xf] %v849_v3  ;;  %1654 = vst [vmem:[#allocation2 + $0x18] sm:$0xf] %v1650_v11  ;;  %v641_v22 = vpop.permute.xlu1 %640  ;;  %v4144_v23 = vpop.permute.xlu0 %532  ;;  %v1705_v56 = vld [vmem:[#allocation2 + $0x1d8] sm:$0xff] }
  0x96   : > { %v536_v0 = vsel %vm534_vm3, %v4120_v8, %v4144_v23 }
  0x97   : > { %v568_v16 = vmul.f32 %v557_v12, %v536_v0  ;;  %v1459_v33 = vmul.f32 %v1445_v13, %v536_v0 }
  0x98   : > { %v1709_v45 = vld [vmem:[#allocation2 + $0x1e8] sm:$0xf] }
  0x99   : > { %v576_v38 = vrot.slane %v568_v16, 4  ;;  %v1467_v39 = vrot.slane %v1459_v33, 4  ;;  %v746_v40 = vpop.permute.xlu1 %745  ;;  %v4177_v41 = vpop.permute.xlu0 %642  ;;  %v1737_v59 = vpack.c.bf16 %v1709_v45, %v1705_v56  ;;  %v1640_v56 = vrot.slane %v4080_v44, %v4009_v14 }
  0x9a   : > { %v757_v48 = vsel %vm5328_vm0, %v4029_v20, %v746_v40  ;;  %v762_v50 = vsel %vm5328_vm0, %v746_v40, %v4031_v21  ;;  %v646_v51 = vsel %vm5334_vm4, %v641_v22, %v4177_v41  ;;  %v1414_v20 = vrot.slane %v4175_v37, %v3973_v7 }
  0x9b   : > { %584 = vst [vmem:[#allocation2 + $0x70] sm:$0xf0] %v576_v38  ;;  %1475 = vst [vmem:[#allocation2 + $0x238] sm:$0xf0] %v1467_v39  ;;  %v786_v52 = vmul.f32 %v769_v24, %v762_v50  ;;  %v789_v53 = vmul.f32 %v781_v26, %v757_v48  ;;  %v1608_v54 = vmul.f32 %v1597_v27, %v757_v48  ;;  %v1754_v38 = vsel %vm1752_vm5, %v1737_v59, 0 }
  0x9c   : > { %v1609_v55 = vmul.f32 %v1601_v29, %v762_v50  ;;  %v678_v57 = vmul.f32 %v667_v31, %v646_v51  ;;  %v1533_v58 = vmul.f32 %v1519_v34, %v646_v51  ;;  %v1710_v10 = vld [vmem:[#allocation2 + $0x18] sm:$0xf]  ;;  %v1706_v29 = vld [vmem:[#allocation2 + $0x228] sm:$0xff]  ;;  %v732_v59 = vrot.slane %v4040_v25, %v4011_v15 }
  0x9d   : > { %v794_v21 = vrot.slane %v786_v52, 4  ;;  %v797_v61 = vrot.slane %v789_v53, 4  ;;  %v1616_v62 = vrot.slane %v1608_v54, 4  ;;  %v4191_v1 = vpop.permute.xlu1 %638  ;;  %v4193_v2 = vpop.permute.xlu0 %528  ;;  %v4203_v31 = vld [vmem:[%s5311_s1 + $0x4] ss:$8 sm:$0xf]  ;;  %v830_v53 = vrot.slane %v4075_v43, %v3971_v6 }
  0x9e   : > { %v1617_v63 = vrot.slane %v1609_v55, 4  ;;  %v686_v3 = vrot.slane %v678_v57, 4  ;;  %v1541_v11 = vrot.slane %v1533_v58, 4  ;;  %v645_v12 = vsel %vm5334_vm4, %v4191_v1, %v641_v22 }
  0x9f   : > { %v535_v13 = vsel %vm534_vm3, %v4193_v2, %v4120_v8  ;;  %802 = vst [vmem:[#allocation2 + $0x110] sm:$0xf0] %v794_v21  ;;  %805 = vst [vmem:[#allocation2 + $0xd0] sm:$0xf0] %v797_v61  ;;  %v677_v24 = vmul.f32 %v663_v35, %v645_v12  ;;  %v1532_v26 = vmul.f32 %v1515_v19, %v645_v12  ;;  %vm925_vm0 = vcmask 64512  }
  0xa0   : > { %1624 = vst [vmem:[#allocation2 + $0x118] sm:$0xf0] %v1616_v62  ;;  %1625 = vst [vmem:[#allocation2 + $0x20] sm:$0xf0] %v1617_v63  ;;  %v567_v27 = vmul.f32 %v553_v36, %v535_v13  ;;  %v1458_v0 = vmul.f32 %v1441_v42, %v535_v13  ;;  %v1738_v22 = vpack.c.bf16 %v1710_v10, %v1706_v29  ;;  %v1742_v42 = vld [vmem:[%s5313_s3] sm:$0x3f] }
  0xa1   : > { %694 = vst [vmem:[#allocation2 + $0x150] sm:$0xf0] %v686_v3  ;;  %1549 = vst [vmem:[#allocation2 + $0x280] sm:$0xf0] %v1541_v11  ;;  %v685_v16 = vrot.slane %v677_v24, 4  ;;  %v1540_v33 = vrot.slane %v1532_v26, 4  ;;  %v4210_v19 = vpop.permute.xlu1 %483  ;;  %v4212_v36 = vpop.permute.xlu0 %481  ;;  %v618_v40 = vrot.slane %v4203_v31, %v4009_v14  ;;  %1745 = vperm.xlu0 %3769, %v1742_v42   ;;  %v1644_v57 = vrot.slane %v4080_v44, %v4011_v15 }
  0xa2   : > { %v4208_v8 = vld [vmem:[%s5311_s1 + $0x46] ss:$8 sm:$0xf]  ;;  %v575_v34 = vrot.slane %v567_v27, 4  ;;  %v1466_v35 = vrot.slane %v1458_v0, 4  ;;  %3703 = vmatprep.subr.msk.bf16.mxu0 %vm1752_vm5, %v1738_v22  ;;  %v487_v39 = vsel %vm485_vm6, %v4212_v36, %v4210_v19  ;;  %v720_v58 = vrot.slane %v4040_v25, %v3971_v6 }
  0xa3   : > { %693 = vst [vmem:[#allocation2 + $0x288] sm:$0xf0] %v685_v16  ;;  %1548 = vst [vmem:[#allocation2 + $0x248] sm:$0xf0] %v1540_v33  ;;  %1768 = vmatpush1.bf16.msra.mxu0 %v1754_v38  ;;  %v519_v45 = vmul.f32 %v508_v46, %v487_v39  ;;  %v1428_v47 = vmul.f32 %v1414_v20, %v487_v39  ;;  %v1488_v48 = vrot.slane %v4208_v8, %v3973_v7 }
  0xa4   : > { %583 = vst [vmem:[#allocation2 + $0xf0] sm:$0xf0] %v575_v34  ;;  %1474 = vst [vmem:[#allocation2 + $0x1b8] sm:$0xf0] %v1466_v35  ;;  %v842_v46 = vrot.slane %v4075_v43, %v4011_v15  ;;  %v1566_v20 = vrot.slane %v4053_v28, %v4009_v14  ;;  %v1570_v43 = vrot.slane %v4053_v28, %v4011_v15 }
  0xa5   : > { %523 = vst [vmem:[#allocation2 + $0x70] sm:$0xf] %v519_v45  ;;  %1432 = vst [vmem:[#allocation2 + $0x238] sm:$0xf] %v1428_v47  ;;  %v4226_v50 = vpop.permute.xlu1 %593  ;;  %v592_v51 = vpop.permute.xlu0 %591  ;;  %v614_v62 = vrot.slane %v4203_v31, %v3973_v7  ;;  %v1484_v44 = vrot.slane %v4208_v8, %v3971_v6  ;;  %v504_v63 = vrot.slane %v4162_v32, %v3973_v7 }
  0xa6   : > { %v597_v52 = vsel %vm5327_vm7, %v592_v51, %v4226_v50  ;;  %v1410_v25 = vrot.slane %v4175_v37, %v3971_v6  ;;  %v4265_v27 = vld [vmem:[%s5311_s1 + $0x1] ss:$8 sm:$0xf] }
  0xa7   : > { %v629_v54 = vmul.f32 %v618_v40, %v597_v52  ;;  %v1502_v55 = vmul.f32 %v1488_v48, %v597_v52  ;;  %v447_v34 = vrot.slane %v4265_v27, %v4009_v14  ;;  %v659_v52 = vrot.slane %v4135_v17, %v3971_v6 }
  0xa9   : > { %633 = vst [vmem:[#allocation2 + $0x150] sm:$0xf] %v629_v54  ;;  %1506 = vst [vmem:[#allocation2 + $0x280] sm:$0xf] %v1502_v55  ;;  %v807_v21 = vpop.permute.xlu1 %806  ;;  %v697_v61 = vpop.permute.xlu0 %696  ;;  %v1523_v55 = vrot.slane %v4142_v18, %v4009_v14 }
  0xaa   : > { %v818_v10 = vsel %vm5335_vm2, %v4122_v9, %v807_v21  ;;  %v823_v28 = vsel %vm5335_vm2, %v807_v21, %v4098_v60  ;;  %v708_v3 = vsel %vm5329_vm1, %v4084_v49, %v697_v61  ;;  %v713_v11 = vsel %vm5329_vm1, %v697_v61, %v4056_v30  ;;  %v4270_v9 = vld [vmem:[%s5311_s1 + $0x43] ss:$8 sm:$0xf] }
  0xab   : > { %v847_v12 = vmul.f32 %v830_v53, %v823_v28  ;;  %v850_v13 = vmul.f32 %v842_v46, %v818_v10  ;;  %v1651_v24 = vmul.f32 %v1640_v56, %v818_v10  ;;  %v1652_v26 = vmul.f32 %v1644_v57, %v823_v28  ;;  %v4296_v46 = vld [vmem:[%s5311_s1 + $0x41] ss:$8 sm:$0xf] }
  0xac   : > { %v737_v60 = vmul.f32 %v720_v58, %v713_v11  ;;  %v740_v0 = vmul.f32 %v732_v59, %v708_v3  ;;  %v1577_v49 = vmul.f32 %v1566_v20, %v708_v3  ;;  %v1578_v29 = vmul.f32 %v1570_v43, %v713_v11  ;;  %v1698_v45 = vld [vmem:[#allocation2 + $0x238] sm:$0xff] }
  0xad   : > { %851 = vst [vmem:[#allocation2 + $0x50] sm:$0xf] %v847_v12  ;;  %854 = vst [vmem:[#allocation2 + $0xe0] sm:$0xf] %v850_v13  ;;  %v4272_v30 = vpop.permute.xlu1 %589  ;;  %v4274_v22 = vpop.permute.xlu0 %479  ;;  %v1371_v35 = vrot.slane %v4270_v9, %v3973_v7  ;;  %v671_v53 = vrot.slane %v4135_v17, %v4011_v15  ;;  %v1527_v56 = vrot.slane %v4142_v18, %v4011_v15  ;;  %vm1748_vm1 = vcmask 883712  }
  0xae   : > { %1655 = vst [vmem:[#allocation2 + $0x260] sm:$0xf] %v1651_v24  ;;  %1656 = vst [vmem:[#allocation2 + $0x268] sm:$0xf] %v1652_v26  ;;  %v596_v16 = vsel %vm5327_vm7, %v4272_v30, %v592_v51  ;;  %v486_v33 = vsel %vm485_vm6, %v4274_v22, %v4212_v36  ;;  %v549_v57 = vrot.slane %v4113_v4, %v3971_v6 }
  0xaf   : > { %741 = vst [vmem:[#allocation2 + $0x110] sm:$0xf] %v737_v60  ;;  %744 = vst [vmem:[#allocation2 + $0xd0] sm:$0xf] %v740_v0  ;;  %v628_v38 = vmul.f32 %v614_v62, %v596_v16  ;;  %v1501_v39 = vmul.f32 %v1484_v44, %v596_v16  ;;  %v518_v40 = vmul.f32 %v504_v63, %v486_v33 }
  0xb0   : > { %1581 = vst [vmem:[#allocation2 + $0x118] sm:$0xf] %v1577_v49  ;;  %1582 = vst [vmem:[#allocation2 + $0x20] sm:$0xf] %v1578_v29  ;;  %v1427_v42 = vmul.f32 %v1410_v25, %v486_v33  ;;  %v1702_v47 = vld [vmem:[#allocation2 + $0x280] sm:$0xff]  ;;  %v561_v59 = vrot.slane %v4113_v4, %v4011_v15  ;;  %v1449_v20 = vrot.slane %v4118_v5, %v4009_v14 }
  0xb1   : > { %632 = vst [vmem:[#allocation2 + $0x288] sm:$0xf] %v628_v38  ;;  %1505 = vst [vmem:[#allocation2 + $0x248] sm:$0xf] %v1501_v39  ;;  %v4285_v48 = vpop.permute.xlu1 %422  ;;  %v4287_v51 = vpop.permute.xlu0 %420  ;;  %v1734_v36 = vpack.c.bf16 %v1702_v47, %v1698_v45  ;;  %v1453_v43 = vrot.slane %v4118_v5, %v4011_v15  ;;  %v1297_v21 = vrot.slane %v4296_v46, %v3973_v7 }
  0xb2   : > { %522 = vst [vmem:[#allocation2 + $0xf0] sm:$0xf] %v518_v40  ;;  %1431 = vst [vmem:[#allocation2 + $0x1b8] sm:$0xf] %v1427_v42  ;;  %v426_v54 = vsel %vm424_vm8, %v4287_v51, %v4285_v48  ;;  %v1293_v18 = vrot.slane %v4296_v46, %v3971_v6  ;;  %v443_v4 = vrot.slane %v4265_v27, %v3973_v7 }
  0xb3   : > { %v458_v58 = vmul.f32 %v447_v34, %v426_v54  ;;  %v1385_v17 = vmul.f32 %v1371_v35, %v426_v54  ;;  %1769 = vmatprep.subr.bf16.mxu0 %v1734_v36  ;;  %v1367_v25 = vrot.slane %v4270_v9, %v3971_v6 }
  0xb5   : > { %v466_v61 = vrot.slane %v458_v58, 4  ;;  %v1393_v62 = vrot.slane %v1385_v17, 4  ;;  %v636_v44 = vpop.permute.xlu1 %635  ;;  %v526_v63 = vpop.permute.xlu0 %525  ;;  %v1712_v60 = vld [vmem:[#allocation2 + $0x268] sm:$0xf]  ;;  %v1711_v0 = vld [vmem:[#allocation2 + $0x260] sm:$0xf] }
  0xb6   : > { %v647_v5 = vsel %vm5334_vm4, %v4177_v41, %v636_v44  ;;  %v652_v10 = vsel %vm5334_vm4, %v636_v44, %v4191_v1  ;;  %v537_v28 = vsel %vm534_vm3, %v4144_v23, %v526_v63  ;;  %v542_v3 = vsel %vm534_vm3, %v526_v63, %v4193_v2  ;;  %v4341_v58 = vld [vmem:[%s5311_s1 + $0x42] ss:$8 sm:$0xf] }
  0xb7   : > { %474 = vst [vmem:[#allocation2 + $0x40] sm:$0xf0] %v466_v61  ;;  %1401 = vst [vmem:[#allocation2 + $0xb0] sm:$0xf0] %v1393_v62  ;;  %v676_v11 = vmul.f32 %v659_v52, %v652_v10  ;;  %v679_v12 = vmul.f32 %v671_v53, %v647_v5  ;;  %v1534_v13 = vmul.f32 %v1523_v55, %v647_v5  ;;  %v1708_v26 = vld [vmem:[#allocation2 + $0x20] sm:$0xff]  ;;  %v1707_v1 = vld [vmem:[#allocation2 + $0x118] sm:$0xff] }
  0xb8   : > { %v1535_v24 = vmul.f32 %v1527_v56, %v652_v10  ;;  %v566_v49 = vmul.f32 %v549_v57, %v542_v3  ;;  %v569_v41 = vmul.f32 %v561_v59, %v537_v28  ;;  %v1460_v29 = vmul.f32 %v1449_v20, %v537_v28  ;;  %v1701_v34 = vld [vmem:[#allocation2 + $0x248] sm:$0xff] }
  0xb9   : > { %v1461_v16 = vmul.f32 %v1453_v43, %v542_v3  ;;  %v1697_v33 = vld [vmem:[#allocation2 + $0x1b8] sm:$0xff]  ;;  %v684_v23 = vrot.slane %v676_v11, 4  ;;  %v687_v35 = vrot.slane %v679_v12, 4  ;;  %v1542_v38 = vrot.slane %v1534_v13, 4  ;;  %v4329_v39 = vpop.permute.xlu1 %1273  ;;  %v1272_v40 = vpop.permute.xlu0 %1271 }
  0xba   : > { %v1543_v2 = vrot.slane %v1535_v24, 4  ;;  %v574_v42 = vrot.slane %v566_v49, 4  ;;  %v577_v45 = vrot.slane %v569_v41, 4  ;;  %v1468_v47 = vrot.slane %v1460_v29, 4 }
  0xbb   : > { %v1469_v36 = vrot.slane %v1461_v16, 4  ;;  %692 = vst [vmem:[#allocation2 + $0xd8] sm:$0xf0] %v684_v23  ;;  %695 = vst [vmem:[#allocation2 + $0x160] sm:$0xf0] %v687_v35  ;;  %v1740_v52 = vpack.c.bf16 %v1712_v60, %v1708_v26  ;;  %v1739_v53 = vpack.c.bf16 %v1711_v0, %v1707_v1  ;;  %v1279_v54 = vsel %vm1277_vm9, %v1272_v40, %v4329_v39 }
  0xbc   : > { %1550 = vst [vmem:[#allocation2 + $0x1f8] sm:$0xf0] %v1542_v38  ;;  %1551 = vst [vmem:[#allocation2 + $0x130] sm:$0xf0] %v1543_v2  ;;  %v1733_v55 = vpack.c.bf16 %v1701_v34, %v1697_v33  ;;  %v1311_v57 = vmul.f32 %v1297_v21, %v1279_v54  ;;  %v1340_v10 = vrot.slane %v4341_v58, %v3973_v7 }
  0xbd   : > { %v4336_v56 = vld [vmem:[%s5311_s1] ss:$8 sm:$0xf]  ;;  %582 = vst [vmem:[#allocation2 + $0xe8] sm:$0xf0] %v574_v42  ;;  %3705 = vmatprep.subr.msk.bf16.mxu1 %vm1752_vm5, %v1740_v52  ;;  %v1760_v17 = vsel %vm1752_vm5, %v1739_v53, 0  ;;  %v4345_v59 = vpop.permute.xlu1 %1269  ;;  %v4347_v20 = vpop.permute.xlu0 %418  ;;  %v610_v24 = vrot.slane %v4203_v31, %v3971_v6  ;;  %v1492_v60 = vrot.slane %v4208_v8, %v4009_v14  ;;  %v1496_v0 = vrot.slane %v4208_v8, %v4011_v15 }
  0xbe   : > { %585 = vst [vmem:[#allocation2 + $0x120] sm:$0xf0] %v577_v45  ;;  %1476 = vst [vmem:[#allocation2 + $0x158] sm:$0xf0] %v1468_v47  ;;  %1770 = vmatpush1.bf16.msra.mxu0 %v1733_v55  ;;  %1809 = vmatpush1.bf16.msra.mxu1 %v1760_v17  ;;  %v1319_v43 = vrot.slane %v1311_v57, 4  ;;  %v1278_v21 = vsel %vm1277_vm9, %v4345_v59, %v1272_v40  ;;  %v425_v61 = vsel %vm424_vm8, %v4347_v20, %v4287_v51 }
  0xbf   : > { %1477 = vst [vmem:[#allocation2 + $0x1c0] sm:$0xf0] %v1469_v36  ;;  %v398_v62 = vrot.slane %v4336_v56, %v4009_v14  ;;  %v1310_v44 = vmul.f32 %v1293_v18, %v1278_v21  ;;  %v457_v63 = vmul.f32 %v443_v4, %v425_v61  ;;  %v1384_v5 = vmul.f32 %v1367_v25, %v425_v61  ;;  %v4372_v4 = vld [vmem:[%s5311_s1 + $0x40] ss:$8 sm:$0xf] }
  0xc0   : > { %1327 = vst [vmem:[#allocation2 + $0x68] sm:$0xf0] %v1319_v43  ;;  %v622_v18 = vrot.slane %v4203_v31, %v4011_v15  ;;  %v500_v49 = vrot.slane %v4162_v32, %v3971_v6  ;;  %v512_v31 = vrot.slane %v4162_v32, %v4011_v15  ;;  %v1418_v41 = vrot.slane %v4175_v37, %v4009_v14 }
  0xc1   : > { %v1318_v28 = vrot.slane %v1310_v44, 4  ;;  %v465_v3 = vrot.slane %v457_v63, 4  ;;  %v1392_v11 = vrot.slane %v1384_v5, 4  ;;  %v4361_v12 = vpop.permute.xlu1 %374  ;;  %v373_v13 = vpop.permute.xlu0 %372  ;;  %v1422_v29 = vrot.slane %v4175_v37, %v4011_v15 }
  0xc2   : > { %v378_v51 = vsel %vm376_vm10, %v373_v13, %v4361_v12  ;;  %v1248_v8 = vrot.slane %v4372_v4, %v3973_v7  ;;  %v1244_v36 = vrot.slane %v4372_v4, %v3971_v6  ;;  %v394_v52 = vrot.slane %v4336_v56, %v3973_v7 }
  0xc3   : > { %1326 = vst [vmem:[#allocation2 + $0x270] sm:$0xf0] %v1318_v28  ;;  %473 = vst [vmem:[#allocation2 + $0x8] sm:$0xf0] %v465_v3  ;;  %v409_v25 = vmul.f32 %v398_v62, %v378_v51  ;;  %v1354_v26 = vmul.f32 %v1340_v10, %v378_v51  ;;  %v1336_v53 = vrot.slane %v4341_v58, %v3971_v6 }
  0xc4   : > { %1400 = vst [vmem:[#allocation2 + $0x10] sm:$0xf0] %v1392_v11  ;;  %v439_v57 = vrot.slane %v4265_v27, %v3971_v6  ;;  %v451_v21 = vrot.slane %v4265_v27, %v4011_v15  ;;  %v1375_v61 = vrot.slane %v4270_v9, %v4009_v14  ;;  %v4423_v62 = vld [vmem:[%s5311_s1 + $0x27] ss:$8 sm:$0xf]  ;;  %v1379_v10 = vrot.slane %v4270_v9, %v4011_v15 }
  0xc5   : > { %413 = vst [vmem:[#allocation2 + $0x40] sm:$0xf] %v409_v25  ;;  %1358 = vst [vmem:[#allocation2 + $0xb0] sm:$0xf] %v1354_v26  ;;  %v587_v16 = vpop.permute.xlu1 %586  ;;  %v477_v1 = vpop.permute.xlu0 %476  ;;  %v1187_v25 = vrot.slane %v4423_v62, %v3973_v7 }
  0xc6   : > { %v598_v33 = vsel %vm5327_vm7, %v4226_v50, %v587_v16  ;;  %v603_v32 = vsel %vm5327_vm7, %v587_v16, %v4272_v30  ;;  %v488_v34 = vsel %vm485_vm6, %v4210_v19, %v477_v1  ;;  %v493_v37 = vsel %vm485_vm6, %v477_v1, %v4274_v22 }
  0xc7   : > { %v627_v23 = vmul.f32 %v610_v24, %v603_v32  ;;  %v630_v35 = vmul.f32 %v622_v18, %v598_v33  ;;  %v1503_v38 = vmul.f32 %v1492_v60, %v598_v33  ;;  %v1504_v2 = vmul.f32 %v1496_v0, %v603_v32 }
  0xc8   : > { %v517_v40 = vmul.f32 %v500_v49, %v493_v37  ;;  %v520_v42 = vmul.f32 %v512_v31, %v488_v34  ;;  %v1429_v45 = vmul.f32 %v1418_v41, %v488_v34  ;;  %v1430_v47 = vmul.f32 %v1422_v29, %v493_v37 }
  0xc9   : > { %631 = vst [vmem:[#allocation2 + $0xd8] sm:$0xf] %v627_v23  ;;  %634 = vst [vmem:[#allocation2 + $0x160] sm:$0xf] %v630_v35  ;;  %v4396_v50 = vpop.permute.xlu1 %1224  ;;  %v1223_v30 = vpop.permute.xlu0 %1222  ;;  %v1301_v24 = vrot.slane %v4296_v46, %v4009_v14  ;;  %v1305_v18 = vrot.slane %v4296_v46, %v4011_v15  ;;  %v390_v46 = vrot.slane %v4336_v56, %v3971_v6  ;;  %vm974_vm7 = vcmask 56320  }
  0xca   : > { %1507 = vst [vmem:[#allocation2 + $0x1f8] sm:$0xf] %v1503_v38  ;;  %1508 = vst [vmem:[#allocation2 + $0x130] sm:$0xf] %v1504_v2  ;;  %v1230_v19 = vsel %vm1228_vm11, %v1223_v30, %v4396_v50  ;;  %v402_v1 = vrot.slane %v4336_v56, %v4011_v15 }
  0xcb   : > { %521 = vst [vmem:[#allocation2 + $0xe8] sm:$0xf] %v517_v40  ;;  %524 = vst [vmem:[#allocation2 + $0x120] sm:$0xf] %v520_v42  ;;  %v1262_v22 = vmul.f32 %v1248_v8, %v1230_v19 }
  0xcc   : > { %1433 = vst [vmem:[#allocation2 + $0x158] sm:$0xf] %v1429_v45  ;;  %1434 = vst [vmem:[#allocation2 + $0x1c0] sm:$0xf] %v1430_v47  ;;  %v1694_v23 = vld [vmem:[#allocation2 + $0xb0] sm:$0xff]  ;;  %v1348_v47 = vrot.slane %v4341_v58, %v4011_v15 }
  0xcd   : > { %1266 = vst [vmem:[#allocation2 + $0x68] sm:$0xf] %v1262_v22  ;;  %v4406_v54 = vpop.permute.xlu1 %1220  ;;  %v4408_v55 = vpop.permute.xlu0 %370 }
  0xce   : > { %v1229_v17 = vsel %vm1228_vm11, %v4406_v54, %v1223_v30  ;;  %v377_v43 = vsel %vm376_vm10, %v4408_v55, %v373_v13 }
  0xcf   : > { %v1261_v44 = vmul.f32 %v1244_v36, %v1229_v17  ;;  %v408_v63 = vmul.f32 %v394_v52, %v377_v43  ;;  %v1353_v5 = vmul.f32 %v1336_v53, %v377_v43 }
  0xd1   : > { %v1704_v28 = vld [vmem:[#allocation2 + $0x130] sm:$0xff]  ;;  %v1703_v3 = vld [vmem:[#allocation2 + $0x1f8] sm:$0xff]  ;;  %1265 = vst [vmem:[#allocation2 + $0x270] sm:$0xf] %v1261_v44  ;;  %412 = vst [vmem:[#allocation2 + $0x8] sm:$0xf] %v408_v63  ;;  %v1162_v27 = vpop.permute.xlu1 %1161  ;;  %v416_v11 = vpop.permute.xlu0 %415 }
  0xd2   : > { %1357 = vst [vmem:[#allocation2 + $0x10] sm:$0xf] %v1353_v5  ;;  %v427_v9 = vsel %vm424_vm8, %v4285_v48, %v416_v11  ;;  %v432_v26 = vsel %vm424_vm8, %v416_v11, %v4347_v20  ;;  %v1344_v48 = vrot.slane %v4341_v58, %v4009_v14 }
  0xd3   : > { %v1700_v13 = vld [vmem:[#allocation2 + $0x1c0] sm:$0xff]  ;;  %v1699_v51 = vld [vmem:[#allocation2 + $0x158] sm:$0xff]  ;;  %v456_v49 = vmul.f32 %v439_v57, %v432_v26  ;;  %v459_v31 = vmul.f32 %v451_v21, %v427_v9  ;;  %v1386_v41 = vmul.f32 %v1375_v61, %v427_v9  ;;  %v1387_v29 = vmul.f32 %v1379_v10, %v432_v26 }
  0xd4   : > { %v1736_v60 = vpack.c.bf16 %v1704_v28, %v1700_v13  ;;  %v1735_v0 = vpack.c.bf16 %v1703_v3, %v1699_v51  ;;  %v1690_v16 = vld [vmem:[#allocation2 + $0x68] sm:$0xff] }
  0xd5   : > { %v464_v8 = vrot.slane %v456_v49, 4  ;;  %v467_v33 = vrot.slane %v459_v31, 4  ;;  %v1394_v20 = vrot.slane %v1386_v41, 4  ;;  %v1395_v32 = vrot.slane %v1387_v29, 4  ;;  %v1276_v34 = vpop.permute.xlu1 %1275  ;;  %v4443_v37 = vpop.permute.xlu0 %1163 }
  0xd6   : > { %1810 = vmatprep.subr.bf16.mxu1 %v1736_v60  ;;  %v1280_v35 = vsel %vm1277_vm9, %v4329_v39, %v1276_v34  ;;  %v1286_v38 = vsel %vm1277_vm9, %v1276_v34, %v4345_v59  ;;  %v1169_v56 = vsel %vm1167_vm12, %v1162_v27, %v4443_v37  ;;  %v1730_v2 = vpack.c.bf16 %v1694_v23, %v1690_v16  ;;  %v4456_v39 = vld [vmem:[%s5311_s1 + $0x24] ss:$8 sm:$0xf] }
  0xd7   : > { %1811 = vmatpush1.bf16.msra.mxu1 %v1735_v0  ;;  %472 = vst [vmem:[#allocation2 + $0xc8] sm:$0xf0] %v464_v8  ;;  %475 = vst [vmem:[#allocation2 + $0x28] sm:$0xf0] %v467_v33  ;;  %v1312_v40 = vmul.f32 %v1301_v24, %v1280_v35  ;;  %v1313_v42 = vmul.f32 %v1305_v18, %v1286_v38  ;;  %v1201_v45 = vmul.f32 %v1187_v25, %v1169_v56 }
  0xd8   : > { %1402 = vst [vmem:[#allocation2 + $0xa8] sm:$0xf0] %v1394_v20  ;;  %1403 = vst [vmem:[#allocation2 + $0x1f0] sm:$0xf0] %v1395_v32  ;;  %1771 = vmatprep.subr.bf16.mxu0 %v1730_v2  ;;  %v1183_v59 = vrot.slane %v4423_v62, %v3971_v6  ;;  %v1689_v30 = vld [vmem:[#allocation2 + $0x270] sm:$0xff]  ;;  %v1054_v61 = vrot.slane %v4456_v39, %v3973_v7  ;;  %v1050_v26 = vrot.slane %v4456_v39, %v3971_v6 }
  0xd9   : > { %v1693_v19 = vld [vmem:[#allocation2 + $0x10] sm:$0xff]  ;;  %v1320_v22 = vrot.slane %v1312_v40, 4  ;;  %v1321_v36 = vrot.slane %v1313_v42, 4  ;;  %v1209_v52 = vrot.slane %v1201_v45, 4  ;;  %v366_v53 = vpop.permute.xlu1 %365  ;;  %v4460_v57 = vpop.permute.xlu0 %1159  ;;  %v1252_v60 = vrot.slane %v4372_v4, %v4009_v14 }
  0xda   : > { %v1729_v17 = vpack.c.bf16 %v1693_v19, %v1689_v30  ;;  %v379_v58 = vsel %vm376_vm10, %v4361_v12, %v366_v53  ;;  %v384_v43 = vsel %vm376_vm10, %v366_v53, %v4408_v55  ;;  %v1168_v21 = vsel %vm1167_vm12, %v4460_v57, %v1162_v27  ;;  %v4473_v12 = vld [vmem:[%s5311_s1 + $0x26] ss:$8 sm:$0xf]  ;;  %v4515_v35 = vld [vmem:[%s5311_s1 + $0x23] ss:$8 sm:$0xf] }
  0xdb   : > { %1328 = vst [vmem:[#allocation2 + $0x278] sm:$0xf0] %v1320_v22  ;;  %1329 = vst [vmem:[#allocation2 + $0x170] sm:$0xf0] %v1321_v36  ;;  %v407_v44 = vmul.f32 %v390_v46, %v384_v43  ;;  %v410_v63 = vmul.f32 %v402_v1, %v379_v58  ;;  %v1355_v5 = vmul.f32 %v1344_v48, %v379_v58 }
  0xdc   : > { %1217 = vst [vmem:[#allocation2 + $0x190] sm:$0xf0] %v1209_v52  ;;  %v1356_v10 = vmul.f32 %v1348_v47, %v384_v43  ;;  %1772 = vmatpush1.bf16.msra.mxu0 %v1729_v17  ;;  %v1200_v28 = vmul.f32 %v1183_v59, %v1168_v21  ;;  %v1138_v51 = vrot.slane %v4473_v12, %v3973_v7 }
  0xdd   : > { %411 = vst [vmem:[#allocation2 + $0xc8] sm:$0xf] %v407_v44  ;;  %414 = vst [vmem:[#allocation2 + $0x28] sm:$0xf] %v410_v63  ;;  %v4475_v55 = vpop.permute.xlu1 %1031  ;;  %v1030_v3 = vpop.permute.xlu0 %1029  ;;  %v1256_v0 = vrot.slane %v4372_v4, %v4011_v15  ;;  %v1134_v8 = vrot.slane %v4473_v12, %v3971_v6  ;;  %v1191_v42 = vrot.slane %v4423_v62, %v4009_v14 }
  0xde   : > { %1359 = vst [vmem:[#allocation2 + $0xa8] sm:$0xf] %v1355_v5  ;;  %1360 = vst [vmem:[#allocation2 + $0x1f0] sm:$0xf] %v1356_v10  ;;  %v1208_v27 = vrot.slane %v1200_v28, 4  ;;  %v1036_v11 = vsel %vm1035_vm13, %v1030_v3, %v4475_v55  ;;  %v1195_v47 = vrot.slane %v4423_v62, %v4011_v15  ;;  %v993_v59 = vrot.slane %v4515_v35, %v3973_v7 }
  0xdf   : > { %v1068_v13 = vmul.f32 %v1054_v61, %v1036_v11  ;;  %v4504_v4 = vld [vmem:[%s5311_s1 + $0x21] ss:$8 sm:$0xf]  ;;  %v989_v44 = vrot.slane %v4515_v35, %v3971_v6 }
  0xe0   : > { %1216 = vst [vmem:[#allocation2 + $0x240] sm:$0xf0] %v1208_v27  ;;  %v883_v32 = vrot.slane %v4504_v4, %v3973_v7  ;;  %v879_v28 = vrot.slane %v4504_v4, %v3971_v6 }
  0xe1   : > { %1072 = vst [vmem:[#allocation2 + $0x198] sm:$0xf] %v1068_v13  ;;  %v4481_v24 = vpop.permute.xlu1 %1114  ;;  %v1113_v18 = vpop.permute.xlu0 %1112 }
  0xe2   : > { %v1120_v25 = vsel %vm1118_vm14, %v1113_v18, %v4481_v24 }
  0xe3   : > { %v1152_v9 = vmul.f32 %v1138_v51, %v1120_v25  ;;  %v4544_v25 = vld [vmem:[%s5311_s1 + $0x22] ss:$8 sm:$0xf] }
  0xe5   : > { %1156 = vst [vmem:[#allocation2 + $0x190] sm:$0xf] %v1152_v9  ;;  %v4491_v49 = vpop.permute.xlu1 %1026  ;;  %v1227_v31 = vpop.permute.xlu0 %1226  ;;  %v1696_v30 = vld [vmem:[#allocation2 + $0x1f0] sm:$0xff]  ;;  %v1695_v36 = vld [vmem:[#allocation2 + $0xa8] sm:$0xff] }
  0xe6   : > { %v1043_v41 = vsel %vm1035_vm13, %v4491_v49, %v1030_v3  ;;  %v1231_v29 = vsel %vm1228_vm11, %v4396_v50, %v1227_v31  ;;  %v1237_v16 = vsel %vm1228_vm11, %v1227_v31, %v4406_v54  ;;  %v944_v31 = vrot.slane %v4544_v25, %v3973_v7 }
  0xe7   : > { %v1067_v46 = vmul.f32 %v1050_v26, %v1043_v41  ;;  %v1263_v1 = vmul.f32 %v1252_v60, %v1231_v29  ;;  %v1264_v48 = vmul.f32 %v1256_v0, %v1237_v16 }
  0xe8   : > { %v1682_v34 = vld [vmem:[#allocation2 + $0x198] sm:$0xff] }
  0xe9   : > { %1071 = vst [vmem:[#allocation2 + $0x220] sm:$0xf] %v1067_v46  ;;  %1267 = vst [vmem:[#allocation2 + $0x278] sm:$0xf] %v1263_v1  ;;  %v859_v33 = vpop.permute.xlu1 %858  ;;  %v4506_v20 = vpop.permute.xlu0 %1110 }
  0xea   : > { %1268 = vst [vmem:[#allocation2 + $0x170] sm:$0xf] %v1264_v48  ;;  %v1119_v50 = vsel %vm1118_vm14, %v4506_v20, %v1113_v18  ;;  %v1142_v48 = vrot.slane %v4473_v12, %v4009_v14 }
  0xeb   : > { %v1151_v54 = vmul.f32 %v1134_v8, %v1119_v50  ;;  %v1146_v8 = vrot.slane %v4473_v12, %v4011_v15  ;;  %v1058_v50 = vrot.slane %v4456_v39, %v4009_v14  ;;  %v891_v12 = vrot.slane %v4504_v4, %v4011_v15 }
  0xec   : > { %v1686_v23 = vld [vmem:[#allocation2 + $0x190] sm:$0xff] }
  0xed   : > { %1155 = vst [vmem:[#allocation2 + $0x240] sm:$0xf] %v1151_v54  ;;  %v969_v38 = vpop.permute.xlu1 %968  ;;  %v4517_v56 = vpop.permute.xlu0 %860  ;;  %v1726_v2 = vpack.c.bf16 %v1686_v23, %v1682_v34  ;;  %v1062_v54 = vrot.slane %v4456_v39, %v4011_v15 }
  0xee   : > { %v865_v40 = vsel %vm864_vm15, %v859_v33, %v4517_v56 }
  0xef   : > { %v897_v45 = vmul.f32 %v883_v32, %v865_v40  ;;  %1773 = vmatprep.subr.bf16.mxu0 %v1726_v2  ;;  %v887_v2 = vrot.slane %v4504_v4, %v4009_v14 }
  0xf0   : > { %v1691_v22 = vld [vmem:[#allocation2 + $0x278] sm:$0xff]  ;;  %v1681_v3 = vld [vmem:[#allocation2 + $0x220] sm:$0xff] }
  0xf1   : > { %v1692_v19 = vld [vmem:[#allocation2 + $0x170] sm:$0xff]  ;;  %v905_v52 = vrot.slane %v897_v45, 4  ;;  %v1166_v53 = vpop.permute.xlu1 %1165  ;;  %v4527_v17 = vpop.permute.xlu0 %970  ;;  %v1731_v43 = vpack.c.bf16 %v1695_v36, %v1691_v22 }
  0xf2   : > { %v1732_v58 = vpack.c.bf16 %v1696_v30, %v1692_v19  ;;  %v1170_v21 = vsel %vm1167_vm12, %v4443_v37, %v1166_v53  ;;  %v1176_v62 = vsel %vm1167_vm12, %v1166_v53, %v4460_v57  ;;  %v975_v61 = vsel %vm974_vm7, %v969_v38, %v4527_v17 }
  0xf3   : > { %913 = vst [vmem:[#allocation2 + $0x210] sm:$0xf0] %v905_v52  ;;  %v1202_v63 = vmul.f32 %v1191_v42, %v1170_v21  ;;  %v1203_v5 = vmul.f32 %v1195_v47, %v1176_v62  ;;  %v1007_v10 = vmul.f32 %v993_v59, %v975_v61  ;;  %v952_v52 = vrot.slane %v4544_v25, %v4011_v15 }
  0xf4   : > { %1812 = vmatprep.subr.bf16.mxu1 %v1732_v58  ;;  %v1685_v37 = vld [vmem:[#allocation2 + $0x240] sm:$0xff]  ;;  %v997_v58 = vrot.slane %v4515_v35, %v4009_v14 }
  0xf5   : > { %1813 = vmatpush1.bf16.msra.mxu1 %v1731_v43  ;;  %v1210_v27 = vrot.slane %v1202_v63, 4  ;;  %v1211_v11 = vrot.slane %v1203_v5, 4  ;;  %v1015_v57 = vrot.slane %v1007_v10, 4  ;;  %v4539_v13 = vpop.permute.xlu1 %965  ;;  %v856_v51 = vpop.permute.xlu0 %855  ;;  %v1725_v18 = vpack.c.bf16 %v1685_v37, %v1681_v3 }
  0xf6   : > { %v982_v9 = vsel %vm974_vm7, %v4539_v13, %v969_v38  ;;  %v872_v26 = vsel %vm864_vm15, %v856_v51, %v859_v33 }
  0xf7   : > { %1218 = vst [vmem:[#allocation2 + $0x258] sm:$0xf0] %v1210_v27  ;;  %1219 = vst [vmem:[#allocation2 + $0xc0] sm:$0xf0] %v1211_v11  ;;  %v1006_v60 = vmul.f32 %v989_v44, %v982_v9  ;;  %v896_v0 = vmul.f32 %v879_v28, %v872_v26  ;;  %1774 = vmatpush1.bf16.msra.mxu0 %v1725_v18 }
  0xf8   : > { %1023 = vst [vmem:[#allocation2 + $0x1e0] sm:$0xf0] %v1015_v57 }
  0xf9   : > { %v1014_v41 = vrot.slane %v1006_v60, 4  ;;  %v904_v29 = vrot.slane %v896_v0, 4  ;;  %v922_v16 = vpop.permute.xlu1 %921 }
  0xfa   : > { %v920_v46 = vpop.permute.xlu0 %919  ;;  %v1674_v61 = vld [vmem:[#allocation2 + $0x210] sm:$0xff] }
  0xfb   : > { %1022 = vst [vmem:[#allocation2 + $0x168] sm:$0xf0] %v1014_v41  ;;  %912 = vst [vmem:[#allocation2 + $0x50] sm:$0xf0] %v904_v29  ;;  %v926_v1 = vsel %vm925_vm0, %v920_v46, %v922_v16 }
  0xfc   : > { %v958_v33 = vmul.f32 %v944_v31, %v926_v1  ;;  %v1665_v1 = vld [vmem:[#allocation2 + $0xd8] sm:$0xff] }
  0xfd   : > { %v1117_v32 = vpop.permute.xlu1 %1116 }
  0xfe   : > { %962 = vst [vmem:[#allocation2 + $0x1e0] sm:$0xf] %v958_v33  ;;  %v1121_v34 = vsel %vm1118_vm14, %v4481_v24, %v1117_v32  ;;  %v1127_v23 = vsel %vm1118_vm14, %v1117_v32, %v4506_v20  ;;  %v1034_v38 = vpop.permute.xlu0 %1033  ;;  %v940_v20 = vrot.slane %v4544_v25, %v3971_v6  ;;  %v1662_v33 = vld [vmem:[#allocation2 + $0xf0] sm:$0xff]  ;;  %v1657_v32 = vld [vmem:[#allocation2 + $0xc8] sm:$0xff] }
  0xff   : > { %v1153_v40 = vmul.f32 %v1142_v48, %v1121_v34  ;;  %v1154_v42 = vmul.f32 %v1146_v8, %v1127_v23  ;;  %v1037_v39 = vsel %vm1035_vm13, %v4475_v55, %v1034_v38  ;;  %v1038_v45 = vsel %vm1035_vm13, %v1034_v38, %v4491_v49  ;;  %v1658_v48 = vld [vmem:[#allocation2 + $0x8] sm:$0xff]  ;;  %v1669_v8 = vld [vmem:[#allocation2 + $0x110] sm:$0xff]  ;;  %v1668_v34 = vld [vmem:[#allocation2 + $0x160] sm:$0xff] }
 0x100   : > { %v1069_v47 = vmul.f32 %v1058_v50, %v1037_v39  ;;  %v1070_v24 = vmul.f32 %v1062_v54, %v1038_v45  ;;  %v948_v55 = vrot.slane %v4544_v25, %v4009_v14  ;;  %v1717_v50 = vpack.c.bf16 %v1669_v8, %v1665_v1  ;;  %v1661_v39 = vld [vmem:[#allocation2 + $0xe8] sm:$0xff]  ;;  %v1672_v45 = vld [vmem:[#allocation2 + $0xd0] sm:$0xff] }
 0x101   : > { %1157 = vst [vmem:[#allocation2 + $0x258] sm:$0xf] %v1153_v40  ;;  %1158 = vst [vmem:[#allocation2 + $0xc0] sm:$0xf] %v1154_v42  ;;  %v863_v59 = vpop.permute.xlu1 %862  ;;  %v1714_v23 = vpack.c.bf16 %v1662_v33, %v1658_v48 }
 0x102   : > { %1073 = vst [vmem:[#allocation2 + $0x80] sm:$0xf] %v1069_v47  ;;  %1074 = vst [vmem:[#allocation2] sm:$0xf] %v1070_v24  ;;  %v866_v4 = vsel %vm864_vm15, %v4517_v56, %v863_v59  ;;  %v867_v30 = vsel %vm864_vm15, %v863_v59, %v856_v51  ;;  %v917_v19 = vpop.permute.xlu0 %916  ;;  %v1001_v56 = vrot.slane %v4515_v35, %v4011_v15  ;;  %v1673_v41 = vld [vmem:[#allocation2 + $0x50] sm:$0xff]  ;;  %v1660_v59 = vld [vmem:[#allocation2 + $0x28] sm:$0xff] }
 0x103   : > { %v898_v49 = vmul.f32 %v887_v2, %v866_v4  ;;  %v899_v22 = vmul.f32 %v891_v12, %v867_v30  ;;  %v933_v36 = vsel %vm925_vm0, %v917_v19, %v920_v46  ;;  %v1713_v47 = vpack.c.bf16 %v1661_v39, %v1657_v32  ;;  %v1741_v4 = vld [vmem:[%s5312_s2] sm:$0x7]  ;;  %v1671_v30 = vld [vmem:[#allocation2 + $0x230] sm:$0xff] }
 0x104   : > { %v957_v53 = vmul.f32 %v940_v20, %v933_v36  ;;  %v1720_v24 = vpack.c.bf16 %v1672_v45, %v1668_v34  ;;  %v1667_v20 = vld [vmem:[#allocation2 + $0x150] sm:$0xff] }
 0x105   : > { %v906_v43 = vrot.slane %v898_v49, 4  ;;  %v907_v21 = vrot.slane %v899_v22, 4  ;;  %v924_v62 = vpop.permute.xlu1 %923  ;;  %v1678_v44 = vld [vmem:[#allocation2 + $0x1e0] sm:$0xff]  ;;  %v1663_v36 = vld [vmem:[#allocation2 + $0x70] sm:$0xff] }
 0x106   : > { %961 = vst [vmem:[#allocation2 + $0x168] sm:$0xf] %v957_v53  ;;  %v927_v63 = vsel %vm925_vm0, %v922_v16, %v924_v62  ;;  %v928_v5 = vsel %vm925_vm0, %v924_v62, %v917_v19  ;;  %v973_v10 = vpop.permute.xlu0 %972  ;;  %v1722_v28 = vpack.c.bf16 %v1678_v44, %v1674_v61  ;;  %v1670_v16 = vld [vmem:[#allocation2 + $0x298] sm:$0xff]  ;;  %v1719_v19 = vpack.c.bf16 %v1671_v30, %v1667_v20  ;;  %v1659_v22 = vld [vmem:[#allocation2 + $0x40] sm:$0xff] }
 0x107   : > { %914 = vst [vmem:[#allocation2 + $0x90] sm:$0xf0] %v906_v43  ;;  %915 = vst [vmem:[#allocation2 + $0xe0] sm:$0xf0] %v907_v21  ;;  %v959_v3 = vmul.f32 %v948_v55, %v927_v63  ;;  %v960_v37 = vmul.f32 %v952_v52, %v928_v5  ;;  %v976_v27 = vsel %vm974_vm7, %v4527_v17, %v973_v10  ;;  %v1666_v17 = vld [vmem:[#allocation2 + $0x288] sm:$0xff]  ;;  %v1664_v55 = vld [vmem:[#allocation2 + $0x120] sm:$0xff] }
 0x108   : > { %v977_v35 = vsel %vm974_vm7, %v973_v10, %v4539_v13  ;;  %v1008_v11 = vmul.f32 %v997_v58, %v976_v27  ;;  %1775 = vmatprep.subr.bf16.mxu0 %v1722_v28  ;;  %v1688_v51 = vld [vmem:[#allocation2 + $0xc0] sm:$0xff]  ;;  %v1687_v18 = vld [vmem:[#allocation2 + $0x258] sm:$0xff]  ;;  %v1718_v46 = vpack.c.bf16 %v1670_v16, %v1666_v17  ;;  %v1716_v49 = vpack.c.bf16 %v1664_v55, %v1660_v59 }
 0x109   : > { %v1009_v57 = vmul.f32 %v1001_v56, %v977_v35  ;;  %963 = vst [vmem:[#allocation2 + $0x1a8] sm:$0xf] %v959_v3  ;;  %964 = vst [vmem:[#allocation2 + $0x250] sm:$0xf] %v960_v37  ;;  %v1684_v25 = vld [vmem:[#allocation2] sm:$0xff]  ;;  %v1715_v52 = vpack.c.bf16 %v1663_v36, %v1659_v22 }
 0x10a   : > { %v1683_v9 = vld [vmem:[#allocation2 + $0x80] sm:$0xff]  ;;  %v1016_v26 = vrot.slane %v1008_v11, 4  ;;  %v1728_v0 = vpack.c.bf16 %v1688_v51, %v1684_v25 }
 0x10b   : > { %v1017_v60 = vrot.slane %v1009_v57, 4  ;;  %v1727_v31 = vpack.c.bf16 %v1687_v18, %v1683_v9  ;;  %v3719_v59 = vld [vmem:[%s5311_s1 + $0x25] ss:$8 sm:$0xf] }
 0x10c   : > { %1024 = vst [vmem:[#allocation2 + $0x1a8] sm:$0xf0] %v1016_v26  ;;  %1814 = vmatprep.subr.bf16.mxu1 %v1728_v0  ;;  %v2669_v22 = vrot.slane %v3719_v59, %v3973_v7  ;;  %v2665_v36 = vrot.slane %v3719_v59, %v3971_v6 }
 0x10d   : > { %1025 = vst [vmem:[#allocation2 + $0x250] sm:$0xf0] %v1017_v60  ;;  %1815 = vmatpush1.bf16.msra.mxu1 %v1727_v31  ;;  %v1677_v13 = vld [vmem:[#allocation2 + $0x168] sm:$0xff] }
 0x10e   : > { %v1721_v29 = vpack.c.bf16 %v1677_v13, %v1673_v41  ;;  %v1676_v54 = vld [vmem:[#allocation2 + $0xe0] sm:$0xff]  ;;  %v1675_v2 = vld [vmem:[#allocation2 + $0x90] sm:$0xff] }
 0x110   : > { %1776 = vmatpush1.bf16.msra.mxu0 %v1721_v29 }
 0x111   : > { %1777 = vmatprep.subr.bf16.mxu0 %v1718_v46 }
 0x113   : > { %v1679_v12 = vld [vmem:[#allocation2 + $0x1a8] sm:$0xff] }
 0x114   : > { %v1680_v38 = vld [vmem:[#allocation2 + $0x250] sm:$0xff]  ;;  %1778 = vmatpush1.bf16.msra.mxu0 %v1717_v50  ;;  %v1723_v42 = vpack.c.bf16 %v1679_v12, %v1675_v2  ;;  %v1880_v12 = vld [vmem:[%s5315_s5] sm:$0x3f] }
 0x115   : > { %v1724_v40 = vpack.c.bf16 %v1680_v38, %v1676_v54  ;;  %1779 = vmatprep.subr.bf16.mxu0 %v1714_v23  ;;  %v1878_v23 = vld [vmem:[%s5314_s4] sm:$0x3f] }
 0x117   : > { %1816 = vmatprep.subr.bf16.mxu1 %v1724_v40 }
 0x118   : > { %1817 = vmatpush1.bf16.msra.mxu1 %v1723_v42  ;;  %1780 = vmatpush1.bf16.msra.mxu0 %v1713_v47 }
 0x119   : > { %1818 = vmatprep.subr.bf16.mxu1 %v1720_v24 }
 0x11b   : > { %3704 = vmatmul.mubr.msk.bf16.vlgmr.msra.gmra.mxu0 %vm1748_vm1, %v1741_v4 }
 0x11c   : > { %1819 = vmatpush1.bf16.msra.mxu1 %v1719_v19  ;;  %v1746_v53 = vpop.permute.xlu0 %1745 }
 0x11d   : > { %1820 = vmatprep.subr.bf16.mxu1 %v1716_v49 }
 0x120   : > { %1821 = vmatpush1.bf16.msra.mxu1 %v1715_v52 }
 0x123   : > { %3706 = vmatmul.mubr.msk.bf16.vlgmr.msra.gmra.mxu1 %vm1748_vm1, %v1741_v4 }
 0x1db   : > { %v1799_v58 = vpop.f32.mrf.mxu0 }
 0x1dc   : > { %v1800_v43 = vadd.f32 %v1799_v58, %v1746_v53 }
 0x1dd   : > { %v1801_v56 = vpop.f32.mrf.mxu0 }
 0x1de   : > { %v1802_v21 = vadd.f32 %v1801_v56, %v1746_v53  ;;  %v1847_v44 = vsel %vm1752_vm5, %v1800_v43, 0.0  ;;  %v2677_v56 = vrot.slane %v3719_v59, %v4011_v15 }
 0x1df   : > { %v1803_v62 = vpop.f32.mrf.mxu0 }
 0x1e0   : > { %v1848_v63 = vsel %vm1752_vm5, %v1802_v21, 0.0 }
 0x1e1   : > { %v1804_v61 = vpop.f32.mrf.mxu0  ;;  %v1849_v3 = vadd.f32 %v1848_v63, %v1847_v44 }
 0x1e3   : > { %v1840_v5 = vpop.f32.mrf.mxu1 }
 0x1e4   : > { %v1841_v10 = vadd.f32 %v1840_v5, %v1746_v53 }
 0x1e5   : > { %v1842_v28 = vpop.f32.mrf.mxu1 }
 0x1e6   : > { %v1843_v37 = vadd.f32 %v1842_v28, %v1746_v53  ;;  %v1850_v27 = vsel %vm1752_vm5, %v1841_v10, 0.0 }
 0x1e7   : > { %v1844_v35 = vpop.f32.mrf.mxu1  ;;  %v1851_v11 = vadd.f32 %v1850_v27, %v1849_v3 }
 0x1e8   : > { %v1852_v57 = vsel %vm1752_vm5, %v1843_v37, 0.0 }
 0x1e9   : > { %v1845_v51 = vpop.f32.mrf.mxu1  ;;  %v1853_v18 = vadd.f32 %v1852_v57, %v1851_v11  ;;  %v4747_v57 = vld [vmem:[%s5311_s1] ss:$8 sm:$0xf] }
 0x1ea   : > { %v4752_v51 = vld [vmem:[%s5311_s1 + $0x42] ss:$8 sm:$0xf] }
 0x1eb   : > { %1854 = vadd.xlane.f32.xlu1 %v1853_v18 }
 0x274   : > { %v1855_v25 = vpop.xlane.xlu1 %1854 }
 0x275   : > { %v1857_v9 = vmul.f32 0.001953125, %v1855_v25 }
 0x277   : > { %v1858_v26 = vsub.f32 %v1800_v43, %v1857_v9  ;;  %v1859_v60 = vsub.f32 %v1802_v21, %v1857_v9  ;;  %v1860_v0 = vsub.f32 %v1841_v10, %v1857_v9  ;;  %v1861_v31 = vsub.f32 %v1843_v37, %v1857_v9 }
 0x279   : > { %v1862_v17 = vmul.f32 %v1858_v26, %v1858_v26  ;;  %v1863_v41 = vmul.f32 %v1859_v60, %v1859_v60  ;;  %v1864_v13 = vmul.f32 %v1860_v0, %v1860_v0  ;;  %v1865_v29 = vmul.f32 %v1861_v31, %v1861_v31  ;;  %v4767_v60 = vld [vmem:[%s5311_s1 + $0x1] ss:$8 sm:$0xf]  ;;  %v4772_v0 = vld [vmem:[%s5311_s1 + $0x43] ss:$8 sm:$0xf] }
 0x27a   : > { %v2947_v26 = vrot.slane %v4752_v51, %v3973_v7 }
 0x27b   : > { %v1866_v16 = vsel %vm1752_vm5, %v1862_v17, 0.0  ;;  %v1867_v46 = vsel %vm1752_vm5, %v1863_v41, 0.0  ;;  %v1869_v48 = vsel %vm1752_vm5, %v1864_v13, 0.0  ;;  %v1871_v33 = vsel %vm1752_vm5, %v1865_v29, 0.0 }
 0x27c   : > { %v1868_v1 = vadd.f32 %v1867_v46, %v1866_v16  ;;  %v1994_v13 = vrot.slane %v4767_v60, %v4009_v14  ;;  %v1943_v29 = vrot.slane %v4747_v57, %v3973_v7  ;;  %v2943_v16 = vrot.slane %v4752_v51, %v3971_v6  ;;  %v4787_v46 = vld [vmem:[%s5311_s1 + $0x3] ss:$8 sm:$0xf] }
 0x27e   : > { %v1870_v8 = vadd.f32 %v1869_v48, %v1868_v1  ;;  %v4792_v1 = vld [vmem:[%s5311_s1 + $0x45] ss:$8 sm:$0xf] }
 0x280   : > { %v1872_v50 = vadd.f32 %v1871_v33, %v1870_v8  ;;  %v2993_v33 = vrot.slane %v4772_v0, %v3973_v7 }
 0x282   : > { %1873 = vadd.xlane.f32.xlu0 %v1872_v50 }
 0x30b   : > { %v1874_v54 = vpop.xlane.xlu0 %1873 }
 0x30c   : > { %v1875_v32 = vmul.f32 0.001953125, %v1874_v54 }
 0x30e   : > { %v1876_v34 = vadd.f32 1e-05, %v1875_v32 }
 0x310   : > { %3775 = vrsqrt.f32 %v1876_v34  ;;  %v2120_v34 = vrot.slane %v4787_v46, %v4009_v14 }
 0x31d   : > { %v3776_v38 = vpop.eup %3775 }
 0x31e   : > { %v1879_v2 = vmul.f32 %v3776_v38, %v1878_v23  ;;  %v3065_v23 = vrot.slane %v4792_v1, %v3973_v7 }
 0x320   : > { %1885 = vperm.xlu1 %3770, %v1879_v2   ;;  %v1881_v40 = vmul.f32 %v1879_v2, %v1857_v9  ;;  %v1947_v9 = vrot.slane %v4747_v57, %v4009_v14 }
 0x322   : > { %v1882_v42 = vsub.f32 %v1880_v12, %v1881_v40  ;;  %v2116_v12 = vrot.slane %v4787_v46, %v3973_v7  ;;  %v3061_v40 = vrot.slane %v4792_v1, %v3971_v6 }
 0x324   : > { %1894 = vperm.xlu0 %3769, %v1882_v42  }
 0x39b   : > { %v1886_v39 = vpop.permute.xlu1 %1885 }
 0x39c   : > { %v1888_v45 = vmul.f32 %v1886_v39, %v1800_v43  ;;  %v1889_v47 = vmul.f32 %v1886_v39, %v1802_v21  ;;  %v1890_v24 = vmul.f32 %v1886_v39, %v1841_v10  ;;  %v1891_v20 = vmul.f32 %v1886_v39, %v1843_v37 }
 0x39d   : > { %v2673_v21 = vrot.slane %v3719_v59, %v4009_v14 }
 0x39f   : > { %v1895_v4 = vpop.permute.xlu0 %1894 }
 0x3a0   : > { %v1897_v30 = vadd.f32 %v1895_v4, %v1888_v45  ;;  %v1898_v19 = vadd.f32 %v1895_v4, %v1889_v47  ;;  %v1899_v55 = vadd.f32 %v1895_v4, %v1890_v24  ;;  %v1900_v49 = vadd.f32 %v1895_v4, %v1891_v20 }
 0x3a2   : > { %vm1901_vm1 = vcmp.ge.f32.partialorder %v1897_v30, 0.0  ;;  %vm1902_vm5 = vcmp.ge.f32.partialorder %v1898_v19, 0.0  ;;  %vm1903_vm4 = vcmp.ge.f32.partialorder %v1899_v55, 0.0  ;;  %vm1904_vm2 = vcmp.ge.f32.partialorder %v1900_v49, 0.0 }
 0x3a3   : > { %v1905_v52 = vmul.f32 0.01, %v1897_v30  ;;  %v1906_v53 = vmul.f32 0.01, %v1898_v19  ;;  %v1907_v58 = vmul.f32 0.01, %v1899_v55 }
 0x3a4   : > { %v1908_v43 = vmul.f32 0.01, %v1900_v49 }
 0x3a5   : > { %v4616_v62 = vsel %vm1901_vm1, %v1897_v30, %v1905_v52  ;;  %v4618_v61 = vsel %vm1902_vm5, %v1898_v19, %v1906_v53  ;;  %v4620_v44 = vsel %vm1903_vm4, %v1899_v55, %v1907_v58  ;;  %vm5343_vm4 = vcmask 515072  }
 0x3a6   : > { %v4622_v63 = vsel %vm1904_vm2, %v1900_v49, %v1908_v43  ;;  %1969 = vrot.lane.b32.xlu0 %v4618_v61, %s3795_s26  ;;  %1922 = vrot.lane.b32.xlu1 %v4618_v61, %s3797_s28  ;;  %v2683_v5 = vmul.f32 %v2669_v22, %v4618_v61  ;;  %v2682_v10 = vmul.f32 %v2665_v36, %v4616_v62  ;;  %v4843_v43 = vld [vmem:[%s5311_s1 + $0x44] ss:$8 sm:$0xf]  ;;  %vm3453_vm2 = vcmask 277504   ;;  %vm5354_vm1 = vmmov %vm5343_vm4 }
 0x3a7   : > { %v2685_v28 = vmul.f32 %v2677_v56, %v4622_v63  ;;  %v2684_v37 = vmul.f32 %v2673_v21, %v4620_v44  ;;  %v1990_v49 = vrot.slane %v4767_v60, %v3973_v7  ;;  %v2989_v22 = vrot.slane %v4772_v0, %v3971_v6  ;;  %v4838_v56 = vld [vmem:[%s5311_s1 + $0x2] ss:$8 sm:$0xf] }
 0x3a8   : > { %v2691_v3 = vrot.slane %v2683_v5, 2  ;;  %v2690_v27 = vrot.slane %v2682_v10, 2 }
 0x3a9   : > { %v2693_v35 = vrot.slane %v2685_v28, 2  ;;  %v2692_v11 = vrot.slane %v2684_v37, 2  ;;  %v3441_v37 = vld [vmem:[%s5317_s7] sm:$0xff] }
 0x3aa   : > { %2095 = vrot.lane.b32.xlu0 %v4618_v61, %s3791_s22  ;;  %1924 = vrot.lane.b32.xlu1 %v4620_v44, %s3797_s28  ;;  %2703 = vst [vmem:[#allocation2 + $0x238] ss:$-388 sps:$4 sm:$0xcf] %v2691_v3   ;;  %2702 = vst [vmem:[#allocation2 + $0x1b8] ss:$-420 sps:$4 sm:$0xcf] %v2690_v27  }
 0x3ab   : > { %2705 = vst [vmem:[#allocation2 + $0x1c0] ss:$52 sps:$4 sm:$0xcf] %v2693_v35   ;;  %2704 = vst [vmem:[#allocation2 + $0x158] ss:$-172 sps:$4 sm:$0xcf] %v2692_v11   ;;  %v2057_v35 = vrot.slane %v4838_v56, %v4009_v14 }
 0x3ae   : > { %1971 = vrot.lane.b32.xlu1 %v4620_v44, %s3795_s26  ;;  %1920 = vrot.lane.b32.xlu0 %v4616_v62, %s3797_s28 }
 0x3b2   : > { %2097 = vrot.lane.b32.xlu1 %v4620_v44, %s3791_s22  ;;  %2093 = vrot.lane.b32.xlu0 %v4616_v62, %s3791_s22 }
 0x3b6   : > { %1967 = vrot.lane.b32.xlu1 %v4616_v62, %s3795_s26  ;;  %2034 = vrot.lane.b32.xlu0 %v4620_v44, %s3793_s24 }
 0x3ba   : > { %2032 = vrot.lane.b32.xlu1 %v4618_v61, %s3793_s24  ;;  %1914 = vrot.lane.b32.xlu0 %v4622_v63, %s3797_s28 }
 0x3be   : > { %2030 = vrot.lane.b32.xlu1 %v4616_v62, %s3793_s24  ;;  %2090 = vrot.lane.b32.xlu0 %v4622_v63, %s3791_s22  ;;  %s5337_s22 = smov 63  }
 0x3c2   : > { %1964 = vrot.lane.b32.xlu1 %v4622_v63, %s3795_s26  ;;  %2879 = vrot.lane.b32.xlu0 %v4620_v44, %s3796_s27 }
 0x3c6   : > { %2877 = vrot.lane.b32.xlu1 %v4618_v61, %s3796_s27  ;;  %2027 = vrot.lane.b32.xlu0 %v4622_v63, %s3793_s24  ;;  %s5339_s24 = smov 56  }
 0x3ca   : > { %2875 = vrot.lane.b32.xlu1 %v4616_v62, %s3796_s27  ;;  %2832 = vrot.lane.b32.xlu0 %v4620_v44, %s3798_s29 }
 0x3ce   : > { %2830 = vrot.lane.b32.xlu1 %v4618_v61, %s3798_s29  ;;  %2708 = vrot.lane.b32.xlu0 %v4618_v61, %s3801_s16 }
 0x3d2   : > { %2828 = vrot.lane.b32.xlu1 %v4616_v62, %s3798_s29  ;;  %2771 = vrot.lane.b32.xlu0 %v4618_v61, %s3799_s30 }
 0x3d6   : > { %2710 = vrot.lane.b32.xlu1 %v4620_v44, %s3801_s16  ;;  %2881 = vrot.lane.b32.xlu0 %v4622_v63, %s3796_s27 }
 0x3da   : > { %2773 = vrot.lane.b32.xlu1 %v4620_v44, %s3799_s30  ;;  %2769 = vrot.lane.b32.xlu0 %v4616_v62, %s3799_s30 }
 0x3de   : > { %2706 = vrot.lane.b32.xlu1 %v4616_v62, %s3801_s16  ;;  %2494 = vrot.lane.b32.xlu0 %v4616_v62, %s3804_s11 }
 0x3e2   : > { %2834 = vrot.lane.b32.xlu1 %v4622_v63, %s3798_s29  ;;  %2557 = vrot.lane.b32.xlu0 %v4616_v62, %s3803_s18 }
 0x3e6   : > { %2496 = vrot.lane.b32.xlu1 %v4618_v61, %s3804_s11  ;;  %2712 = vrot.lane.b32.xlu0 %v4622_v63, %s3801_s16 }
 0x3ea   : > { %2559 = vrot.lane.b32.xlu1 %v4618_v61, %s3803_s18  ;;  %2491 = vrot.lane.b32.xlu0 %v4622_v63, %s3804_s11 }
 0x3ee   : > { %2775 = vrot.lane.b32.xlu1 %v4622_v63, %s3799_s30  ;;  %2616 = vrot.lane.b32.xlu0 %v4616_v62, %s3800_s15 }
 0x3f2   : > { %2554 = vrot.lane.b32.xlu1 %v4622_v63, %s3803_s18  ;;  %2613 = vrot.lane.b32.xlu0 %v4622_v63, %s3800_s15 }
 0x3f6   : > { %2618 = vrot.lane.b32.xlu1 %v4618_v61, %s3800_s15  ;;  %2433 = vrot.lane.b32.xlu0 %v4618_v61, %s3802_s17 }
 0x3fa   : > { %2431 = vrot.lane.b32.xlu1 %v4616_v62, %s3802_s17  ;;  %2561 = vrot.lane.b32.xlu0 %v4620_v44, %s3803_s18 }
 0x3fe   : > { %2498 = vrot.lane.b32.xlu1 %v4620_v44, %s3804_s11  ;;  %2384 = vrot.lane.b32.xlu0 %v4616_v62, %s5336_s21  ;;  %s3742_s11 = sshll.u32 %s5362_s14, 5 }
 0x402   : > { %2428 = vrot.lane.b32.xlu1 %v4622_v63, %s3802_s17  ;;  %2620 = vrot.lane.b32.xlu0 %v4620_v44, %s3800_s15 }
 0x406   : > { %2386 = vrot.lane.b32.xlu1 %v4618_v61, %s5336_s21  ;;  %2199 = vrot.lane.b32.xlu0 %v4616_v62, %s5337_s22 }
 0x40a   : > { %2381 = vrot.lane.b32.xlu1 %v4622_v63, %s5336_s21  ;;  %2262 = vrot.lane.b32.xlu0 %v4616_v62, %s5338_s23 }
 0x40e   : > { %2201 = vrot.lane.b32.xlu1 %v4618_v61, %s5337_s22  ;;  %2325 = vrot.lane.b32.xlu0 %v4616_v62, %s5339_s24 }
 0x412   : > { %2264 = vrot.lane.b32.xlu1 %v4618_v61, %s5338_s23  ;;  %2435 = vrot.lane.b32.xlu0 %v4620_v44, %s3802_s17 }
 0x416   : > { %2327 = vrot.lane.b32.xlu1 %v4618_v61, %s5339_s24  ;;  %2259 = vrot.lane.b32.xlu0 %v4622_v63, %s5338_s23 }
 0x418   : > { %v4754_v18 = vpop.permute.xlu0 %1969  ;;  %v1923_v25 = vpop.permute.xlu1 %1922 }
 0x41a   : > { %2196 = vrot.lane.b32.xlu1 %v4622_v63, %s5337_s22  ;;  %2388 = vrot.lane.b32.xlu0 %v4620_v44, %s5336_s21 }
 0x41c   : > { %v2096_v31 = vpop.permute.xlu0 %2095  ;;  %v4774_v17 = vpop.permute.xlu1 %1924 }
 0x41d   : > { %v1927_v41 = vsel %vm376_vm10, %v1923_v25, %v4774_v17 }
 0x41e   : > { %v1958_v48 = vmul.f32 %v1947_v9, %v1927_v41  ;;  %v2961_v8 = vmul.f32 %v2947_v26, %v1927_v41  ;;  %2322 = vrot.lane.b32.xlu1 %v4622_v63, %s5339_s24  ;;  %2266 = vrot.lane.b32.xlu0 %v4620_v44, %s5338_s23  ;;  %v1939_v9 = vrot.slane %v4747_v57, %v3971_v6 }
 0x41f   : > { %v2951_v26 = vrot.slane %v4752_v51, %v4009_v14  ;;  %v2053_v41 = vrot.slane %v4838_v56, %v3973_v7 }
 0x420   : > { %1962 = vst [vmem:[#allocation2 + $0x40] sm:$0x3f] %v1958_v48  ;;  %v2969_v50 = vrot.slane %v2961_v8, 4  ;;  %v4800_v54 = vpop.permute.xlu1 %1971  ;;  %v4802_v32 = vpop.permute.xlu0 %1920  ;;  %v3031_v48 = vrot.slane %v4843_v43, %v3971_v6 }
 0x421   : > { %v1974_v38 = vsel %vm424_vm8, %v4754_v18, %v4800_v54  ;;  %v1926_v2 = vsel %vm376_vm10, %v4802_v32, %v1923_v25 }
 0x422   : > { %2977 = vst [vmem:[#allocation2 + $0x1d0] ss:$-436 sps:$4 sm:$0xf3] %v2969_v50   ;;  %v2005_v42 = vmul.f32 %v1994_v13, %v1974_v38  ;;  %v3007_v39 = vmul.f32 %v2993_v33, %v1974_v38  ;;  %v1957_v45 = vmul.f32 %v1943_v29, %v1926_v2  ;;  %v2960_v47 = vmul.f32 %v2943_v16, %v1926_v2 }
 0x423   : > { %2203 = vrot.lane.b32.xlu1 %v4620_v44, %s5337_s22  ;;  %2152 = vrot.lane.b32.xlu0 %v4616_v62, %s5340_s19  ;;  %v2124_v50 = vrot.slane %v4787_v46, %v4011_v15 }
 0x424   : > { %v2013_v24 = vrot.slane %v2005_v42, 2  ;;  %v3015_v20 = vrot.slane %v3007_v39, 6  ;;  %1961 = vst [vmem:[#allocation2 + $0x8] sm:$0x3f] %v1957_v45  ;;  %v2968_v59 = vrot.slane %v2960_v47, 4  ;;  %v4821_v4 = vpop.permute.xlu1 %2097  ;;  %v4823_v30 = vpop.permute.xlu0 %2093  ;;  %v1986_v45 = vrot.slane %v4767_v60, %v3971_v6 }
 0x425   : > { %v2100_v19 = vsel %vm534_vm3, %v2096_v31, %v4821_v4  ;;  %v2099_v55 = vsel %vm534_vm3, %v4823_v30, %v2096_v31  ;;  %v2955_v31 = vrot.slane %v4752_v51, %v4011_v15  ;;  %v2997_v47 = vrot.slane %v4772_v0, %v4009_v14 }
 0x426   : > { %2021 = vst [vmem:[#allocation2 + $0x70] ss:$-44 sps:$4 sm:$0xcf] %v2013_v24   ;;  %3023 = vst [vmem:[#allocation2 + $0x1d0] sm:$0xfc] %v3015_v20  ;;  %v2131_v36 = vmul.f32 %v2120_v34, %v2100_v19  ;;  %v3079_v52 = vmul.f32 %v3065_v23, %v2100_v19  ;;  %v2130_v53 = vmul.f32 %v2116_v12, %v2099_v55 }
 0x427   : > { %2976 = vst [vmem:[#allocation2 + $0x140] ss:$172 sps:$4 sm:$0xf3] %v2968_v59   ;;  %v3078_v58 = vmul.f32 %v3061_v40, %v2099_v55  ;;  %2329 = vrot.lane.b32.xlu1 %v4620_v44, %s5339_s24  ;;  %2149 = vrot.lane.b32.xlu0 %v4622_v63, %s5340_s19  ;;  %v3035_v63 = vrot.slane %v4843_v43, %v3973_v7  ;;  %v4903_v19 = vld [vmem:[%s5311_s1 + $0x41] ss:$8 sm:$0xf] }
 0x428   : > { %v2139_v21 = vrot.slane %v2131_v36, 6  ;;  %v3087_v62 = vrot.slane %v3079_v52, 2  ;;  %v2138_v5 = vrot.slane %v2130_v53, 6  ;;  %v4847_v28 = vpop.permute.xlu1 %1967  ;;  %v4849_v3 = vpop.permute.xlu0 %2034 }
 0x429   : > { %v3086_v10 = vrot.slane %v3078_v58, 2  ;;  %v1973_v27 = vsel %vm424_vm8, %v4847_v28, %v4754_v18  ;;  %v1951_v18 = vrot.slane %v4747_v57, %v4011_v15  ;;  %v2112_v57 = vrot.slane %v4787_v46, %v3971_v6 }
 0x42a   : > { %2147 = vst [vmem:[#allocation2 + $0x150] sm:$0xfc] %v2139_v21  ;;  %3095 = vst [vmem:[#allocation2 + $0xf8] ss:$268 sps:$4 sm:$0xcf] %v3087_v62   ;;  %v2004_v11 = vmul.f32 %v1990_v49, %v1973_v27  ;;  %v3006_v25 = vmul.f32 %v2989_v22, %v1973_v27 }
 0x42b   : > { %2146 = vst [vmem:[#allocation2 + $0x288] sm:$0xfc] %v2138_v5  ;;  %3094 = vst [vmem:[#allocation2 + $0x1a0] ss:$-276 sps:$4 sm:$0xcf] %v3086_v10   ;;  %2154 = vrot.lane.b32.xlu1 %v4618_v61, %s5340_s19  ;;  %3444 = vperm.xlu0 %3769, %v3441_v37   ;;  %v2901_v10 = vrot.slane %v4903_v19, %v3973_v7 }
 0x42c   : > { %v2012_v13 = vrot.slane %v2004_v11, 2  ;;  %v3014_v29 = vrot.slane %v3006_v25, 6  ;;  %v2033_v16 = vpop.permute.xlu1 %2032  ;;  %v1915_v61 = vpop.permute.xlu0 %1914 }
 0x42d   : > { %v2037_v8 = vsel %vm485_vm6, %v2033_v16, %v4849_v3  ;;  %v1928_v33 = vsel %vm376_vm10, %v4774_v17, %v1915_v61  ;;  %v1933_v51 = vsel %vm376_vm10, %v1915_v61, %v4802_v32  ;;  %v3069_v17 = vrot.slane %v4792_v1, %v4009_v14 }
 0x42e   : > { %2020 = vst [vmem:[#allocation2 + $0xf0] ss:$-228 sps:$4 sm:$0xcf] %v2012_v13   ;;  %3022 = vst [vmem:[#allocation2 + $0x140] sm:$0xfc] %v3014_v29  ;;  %v2068_v34 = vmul.f32 %v2057_v35, %v2037_v8  ;;  %v3049_v23 = vmul.f32 %v3035_v63, %v2037_v8  ;;  %v1956_v38 = vmul.f32 %v1939_v9, %v1933_v51 }
 0x42f   : > { %v1959_v2 = vmul.f32 %v1951_v18, %v1928_v33  ;;  %2156 = vrot.lane.b32.xlu1 %v4620_v44, %s5340_s19  ;;  %v2962_v12 = vmul.f32 %v2951_v26, %v1928_v33  ;;  %v2963_v40 = vmul.f32 %v2955_v31, %v1933_v51  ;;  %v3073_v32 = vrot.slane %v4792_v1, %v4011_v15  ;;  %s359_s19 = scalar_lea.vmem %s5320_s10, %s3742_s11 }
 0x430   : > { %v2076_v42 = vrot.slane %v2068_v34, 4  ;;  %3053 = vst [vmem:[#allocation2 + $0x200] sm:$0x3f] %v3049_v23  ;;  %1960 = vst [vmem:[#allocation2 + $0xc8] sm:$0x3f] %v1956_v38  ;;  %v2031_v46 = vpop.permute.xlu1 %2030  ;;  %v2091_v39 = vpop.permute.xlu0 %2090  ;;  %v1998_v44 = vrot.slane %v4767_v60, %v4011_v15  ;;  %v3039_v9 = vrot.slane %v4843_v43, %v4009_v14  ;;  %v2049_v31 = vrot.slane %v4838_v56, %v3971_v6 }
 0x431   : > { %1963 = vst [vmem:[#allocation2 + $0x28] sm:$0x3f] %v1959_v2  ;;  %v2970_v24 = vrot.slane %v2962_v12, 4  ;;  %v2971_v20 = vrot.slane %v2963_v40, 4  ;;  %v2036_v59 = vsel %vm485_vm6, %v2031_v46, %v2033_v16  ;;  %v2101_v1 = vsel %vm534_vm3, %v4821_v4, %v2091_v39 }
 0x432   : > { %2084 = vst [vmem:[#allocation2 + $0x150] ss:$-220 sps:$4 sm:$0xf3] %v2076_v42   ;;  %v2067_v55 = vmul.f32 %v2053_v41, %v2036_v59  ;;  %v3048_v49 = vmul.f32 %v3031_v48, %v2036_v59  ;;  %v2106_v60 = vsel %vm534_vm3, %v2091_v39, %v4823_v30  ;;  %v2132_v22 = vmul.f32 %v2124_v50, %v2101_v1  ;;  %v3369_v41 = vld [vmem:[#allocation2 + $0x1d0] sm:$0xff] }
 0x433   : > { %2978 = vst [vmem:[#allocation2 + $0x180] ss:$228 sps:$4 sm:$0xf3] %v2970_v24   ;;  %2979 = vst [vmem:[#allocation2 + $0x60] ss:$524 sps:$4 sm:$0xf3] %v2971_v20   ;;  %v2129_v36 = vmul.f32 %v2112_v57, %v2106_v60  ;;  %v3080_v52 = vmul.f32 %v3069_v17, %v2101_v1  ;;  %v3081_v53 = vmul.f32 %v3073_v32, %v2106_v60 }
 0x434   : > { %v3001_v4 = vrot.slane %v4772_v0, %v4011_v15  ;;  %v2075_v58 = vrot.slane %v2067_v55, 4  ;;  %3052 = vst [vmem:[#allocation2 + $0x88] sm:$0x3f] %v3048_v49  ;;  %v2140_v21 = vrot.slane %v2132_v22, 6  ;;  %v1965_v62 = vpop.permute.xlu1 %1964  ;;  %v4909_v5 = vpop.permute.xlu0 %2879  ;;  %v2061_v30 = vrot.slane %v4838_v56, %v4011_v15 }
 0x435   : > { %v2137_v37 = vrot.slane %v2129_v36, 6  ;;  %v3088_v27 = vrot.slane %v3080_v52, 2  ;;  %v3089_v35 = vrot.slane %v3081_v53, 2  ;;  %v1975_v63 = vsel %vm424_vm8, %v4800_v54, %v1965_v62  ;;  %v3368_v12 = vld [vmem:[#allocation2 + $0x140] sm:$0xff] }
 0x436   : > { %2083 = vst [vmem:[#allocation2 + $0x288] ss:$-404 sps:$4 sm:$0xf3] %v2075_v58   ;;  %2148 = vst [vmem:[#allocation2 + $0x160] sm:$0xfc] %v2140_v21  ;;  %v1980_v0 = vsel %vm424_vm8, %v1965_v62, %v4847_v28  ;;  %v2006_v11 = vmul.f32 %v1998_v44, %v1975_v63  ;;  %v3008_v25 = vmul.f32 %v2997_v47, %v1975_v63 }
 0x437   : > { %2145 = vst [vmem:[#allocation2 + $0xd8] sm:$0xfc] %v2137_v37  ;;  %3096 = vst [vmem:[#allocation2 + $0xa0] ss:$140 sps:$4 sm:$0xcf] %v3088_v27   ;;  %v2003_v18 = vmul.f32 %v1986_v45, %v1980_v0  ;;  %v3009_v26 = vmul.f32 %v3001_v4, %v1980_v0  ;;  %v3043_v54 = vrot.slane %v4843_v43, %v4011_v15  ;;  %v3373_v13 = vld [vmem:[#allocation2 + $0x200] sm:$0xff] }
 0x438   : > { %3097 = vst [vmem:[#allocation2 + $0x48] ss:$244 sps:$4 sm:$0xcf] %v3089_v35   ;;  %v2014_v29 = vrot.slane %v2006_v11, 2  ;;  %v3016_v28 = vrot.slane %v3008_v25, 6  ;;  %v2878_v16 = vpop.permute.xlu1 %2877  ;;  %v2028_v61 = vpop.permute.xlu0 %2027  ;;  %v3425_v48 = vpack.c.bf16 %v3373_v13, %v3369_v41  ;;  %v2897_v57 = vrot.slane %v4903_v19, %v3971_v6  ;;  %v3440_v45 = vld [vmem:[%s5316_s6] sm:$0xff] }
 0x439   : > { %v2011_v8 = vrot.slane %v2003_v18, 2  ;;  %v3017_v33 = vrot.slane %v3009_v26, 6  ;;  %v2884_v51 = vsel %vm1277_vm9, %v2878_v16, %v4909_v5  ;;  %v2038_v56 = vsel %vm485_vm6, %v4849_v3, %v2028_v61  ;;  %v4935_v17 = vld [vmem:[%s5311_s1 + $0x40] ss:$8 sm:$0xf] }
 0x43a   : > { %2022 = vst [vmem:[#allocation2 + $0x120] ss:$-244 sps:$4 sm:$0xcf] %v2014_v29   ;;  %3024 = vst [vmem:[#allocation2 + $0x180] sm:$0xfc] %v3016_v28  ;;  %v2915_v43 = vmul.f32 %v2901_v10, %v2884_v51  ;;  %v2043_v50 = vsel %vm485_vm6, %v2028_v61, %v2031_v46  ;;  %v2069_v34 = vmul.f32 %v2061_v30, %v2038_v56  ;;  %3470 = vmatprep.subr.bf16.mxu0 %v3425_v48  ;;  %vm5344_vm6 = vcmask 465920  }
 0x43b   : > { %v3050_v23 = vmul.f32 %v3039_v9, %v2038_v56  ;;  %2019 = vst [vmem:[#allocation2 + $0xe8] ss:$-28 sps:$4 sm:$0xcf] %v2011_v8   ;;  %3025 = vst [vmem:[#allocation2 + $0x60] sm:$0xfc] %v3017_v33  ;;  %v2066_v38 = vmul.f32 %v2049_v31, %v2043_v50  ;;  %v3051_v2 = vmul.f32 %v3043_v54, %v2043_v50  ;;  %v3372_v40 = vld [vmem:[#allocation2 + $0x88] sm:$0xff] }
 0x43c   : > { %v2923_v3 = vrot.slane %v2915_v43, 2  ;;  %v2077_v32 = vrot.slane %v2069_v34, 4  ;;  %v2876_v42 = vpop.permute.xlu1 %2875  ;;  %v4937_v39 = vpop.permute.xlu0 %2832  ;;  %v3424_v46 = vpack.c.bf16 %v3372_v40, %v3368_v12  ;;  %v3734_v24 = vcombine.high %v3440_v45, %v3440_v45  ;;  %v4952_v4 = vld [vmem:[%s5311_s1 + $0x26] ss:$8 sm:$0xf]  ;;  %vm5346_vm8 = vmmov %vm5344_vm6 }
 0x43d   : > { %3054 = vst [vmem:[#allocation2 + $0x128] sm:$0x3f] %v3050_v23  ;;  %v2074_v44 = vrot.slane %v2066_v38, 4  ;;  %3055 = vst [vmem:[#allocation2 + $0x138] sm:$0x3f] %v3051_v2  ;;  %v2883_v47 = vsel %vm1277_vm9, %v2876_v42, %v2878_v16  ;;  %v2854_v59 = vrot.slane %v4935_v17, %v3973_v7  ;;  %v2850_v36 = vrot.slane %v4935_v17, %v3971_v6 }
 0x43e   : > { %2931 = vst [vmem:[#allocation2 + $0x18] ss:$532 sps:$4 sm:$0xcf] %v2923_v3   ;;  %2085 = vst [vmem:[#allocation2 + $0x160] ss:$-60 sps:$4 sm:$0xf3] %v2077_v32   ;;  %v2914_v20 = vmul.f32 %v2897_v57, %v2883_v47  ;;  %3471 = vmatpush1.bf16.msra.mxu0 %v3424_v46  ;;  %3736 = vmatprep.mubr.msk.bf16.mxu0 %vm3453_vm2, %v3734_v24  ;;  %v2732_v63 = vrot.slane %v4952_v4, %v3973_v7 }
 0x43f   : > { %2082 = vst [vmem:[#allocation2 + $0xd8] ss:$20 sps:$4 sm:$0xf3] %v2074_v44   ;;  %3738 = vmatprep.mubr.msk.bf16.mxu1 %vm3453_vm2, %v3734_v24  ;;  %v2905_v0 = vrot.slane %v4903_v19, %v4009_v14  ;;  %v2909_v11 = vrot.slane %v4903_v19, %v4011_v15  ;;  %v4964_v25 = vld [vmem:[%s5311_s1 + $0x27] ss:$8 sm:$0xf]  ;;  %v2728_v23 = vrot.slane %v4952_v4, %v3971_v6 }
 0x440   : > { %v2922_v1 = vrot.slane %v2914_v20, 2  ;;  %v2831_v55 = vpop.permute.xlu1 %2830  ;;  %v2709_v49 = vpop.permute.xlu0 %2708  ;;  %v2795_v19 = vrot.slane %v4964_v25, %v3973_v7  ;;  %v2791_v28 = vrot.slane %v4964_v25, %v3971_v6  ;;  %v2858_v44 = vrot.slane %v4935_v17, %v4009_v14  ;;  %v4992_v24 = vld [vmem:[%s5311_s1 + $0x22] ss:$8 sm:$0xf] }
 0x441   : > { %v2837_v60 = vsel %vm1228_vm11, %v2831_v55, %v4937_v39  ;;  %v3370_v52 = vld [vmem:[#allocation2 + $0x180] sm:$0xff]  ;;  %v2862_v47 = vrot.slane %v4935_v17, %v4011_v15 }
 0x442   : > { %2930 = vst [vmem:[#allocation2 + $0x1e8] ss:$-12 sps:$4 sm:$0xcf] %v2922_v1   ;;  %v2868_v22 = vmul.f32 %v2854_v59, %v2837_v60  ;;  %v3371_v62 = vld [vmem:[#allocation2 + $0x60] sm:$0xff]  ;;  %v2517_v60 = vrot.slane %v4992_v24, %v3973_v7 }
 0x443   : > { %v5004_v17 = vld [vmem:[%s5311_s1 + $0x23] ss:$8 sm:$0xf] }
 0x444   : > { %v3374_v53 = vld [vmem:[#allocation2 + $0x128] sm:$0xff]  ;;  %2872 = vst [vmem:[#allocation2 + $0x228] sm:$0x3f] %v2868_v22  ;;  %v2829_v58 = vpop.permute.xlu1 %2828  ;;  %v2772_v21 = vpop.permute.xlu0 %2771  ;;  %v3375_v10 = vld [vmem:[#allocation2 + $0x138] sm:$0xff] }
 0x445   : > { %v3426_v30 = vpack.c.bf16 %v3374_v53, %v3370_v52  ;;  %v2836_v37 = vsel %vm1228_vm11, %v2829_v58, %v2831_v55  ;;  %v3427_v27 = vpack.c.bf16 %v3375_v10, %v3371_v62  ;;  %v3365_v61 = vld [vmem:[#allocation2 + $0x18] sm:$0xff]  ;;  %v2736_v52 = vrot.slane %v4952_v4, %v4009_v14 }
 0x446   : > { %v2867_v35 = vmul.f32 %v2850_v36, %v2836_v37  ;;  %v2740_v53 = vrot.slane %v4952_v4, %v4011_v15  ;;  %v2513_v4 = vrot.slane %v4992_v24, %v3971_v6 }
 0x447   : > { %3511 = vmatprep.subr.bf16.mxu1 %v3427_v27 }
 0x448   : > { %2871 = vst [vmem:[#allocation2 + $0x1d8] sm:$0x3f] %v2867_v35  ;;  %3512 = vmatpush1.bf16.msra.mxu1 %v3426_v30  ;;  %v2711_v9 = vpop.permute.xlu1 %2710  ;;  %v2882_v18 = vpop.permute.xlu0 %2881 }
 0x449   : > { %v2715_v26 = vsel %vm1118_vm14, %v2709_v49, %v2711_v9  ;;  %v2885_v31 = vsel %vm1277_vm9, %v4909_v5, %v2882_v18  ;;  %v2891_v54 = vsel %vm1277_vm9, %v2882_v18, %v2876_v42  ;;  %v3364_v2 = vld [vmem:[#allocation2 + $0x1e8] sm:$0xff]  ;;  %vm5347_vm9 = vmmov %vm5343_vm4 }
 0x44a   : > { %v2746_v41 = vmul.f32 %v2732_v63, %v2715_v26  ;;  %v2916_v13 = vmul.f32 %v2905_v0, %v2885_v31  ;;  %v2917_v29 = vmul.f32 %v2909_v11, %v2891_v54 }
 0x44b   : > { %v3361_v16 = vld [vmem:[#allocation2 + $0x228] sm:$0xff] }
 0x44c   : > { %v2754_v48 = vrot.slane %v2746_v41, 4  ;;  %v2924_v57 = vrot.slane %v2916_v13, 2  ;;  %v2925_v8 = vrot.slane %v2917_v29, 2  ;;  %v4974_v33 = vpop.permute.xlu1 %2773  ;;  %v4976_v51 = vpop.permute.xlu0 %2769  ;;  %v3421_v5 = vpack.c.bf16 %v3365_v61, %v3361_v16 }
 0x44d   : > { %v2778_v56 = vsel %vm1167_vm12, %v2772_v21, %v4974_v33  ;;  %v2777_v43 = vsel %vm1167_vm12, %v4976_v51, %v2772_v21  ;;  %v2580_v21 = vrot.slane %v5004_v17, %v3973_v7  ;;  %v2799_v13 = vrot.slane %v4964_v25, %v4009_v14 }
 0x44e   : > { %2762 = vst [vmem:[#allocation2 + $0x280] ss:$-68 sps:$4 sm:$0xf3] %v2754_v48   ;;  %2932 = vst [vmem:[#allocation2 + $0x260] ss:$-324 sps:$4 sm:$0xcf] %v2924_v57   ;;  %v2809_v50 = vmul.f32 %v2795_v19, %v2778_v56  ;;  %v2808_v34 = vmul.f32 %v2791_v28, %v2777_v43  ;;  %3472 = vmatprep.subr.bf16.mxu0 %v3421_v5  ;;  %v2803_v48 = vrot.slane %v4964_v25, %v4011_v15 }
 0x44f   : > { %2933 = vst [vmem:[#allocation2 + $0x268] ss:$-580 sps:$4 sm:$0xcf] %v2925_v8   ;;  %v3360_v38 = vld [vmem:[#allocation2 + $0x1d8] sm:$0xff] }
 0x450   : > { %v2817_v12 = vrot.slane %v2809_v50, 6  ;;  %v2816_v40 = vrot.slane %v2808_v34, 6  ;;  %v2707_v3 = vpop.permute.xlu1 %2706  ;;  %v2495_v32 = vpop.permute.xlu0 %2494  ;;  %v3420_v42 = vpack.c.bf16 %v3364_v2, %v3360_v38  ;;  %v5036_v5 = vld [vmem:[%s5311_s1 + $0x24] ss:$8 sm:$0xf] }
 0x451   : > { %v2714_v46 = vsel %vm1118_vm14, %v2707_v3, %v2709_v49 }
 0x452   : > { %2825 = vst [vmem:[#allocation2 + $0x280] sm:$0xfc] %v2817_v12  ;;  %2824 = vst [vmem:[#allocation2 + $0x248] sm:$0xfc] %v2816_v40  ;;  %v2745_v45 = vmul.f32 %v2728_v23, %v2714_v46  ;;  %3473 = vmatpush1.bf16.msra.mxu0 %v3420_v42  ;;  %v2576_v46 = vrot.slane %v5004_v17, %v3971_v6 }
 0x454   : > { %v2753_v20 = vrot.slane %v2745_v45, 4  ;;  %v2835_v59 = vpop.permute.xlu1 %2834  ;;  %v4994_v1 = vpop.permute.xlu0 %2557  ;;  %v2635_v45 = vrot.slane %v5036_v5, %v3971_v6 }
 0x455   : > { %v2838_v55 = vsel %vm1228_vm11, %v4937_v39, %v2835_v59  ;;  %v2844_v49 = vsel %vm1228_vm11, %v2835_v59, %v2829_v58  ;;  %v3353_v37 = vld [vmem:[#allocation2 + $0x238] sm:$0xff]  ;;  %v3366_v50 = vld [vmem:[#allocation2 + $0x260] sm:$0xff] }
 0x456   : > { %2761 = vst [vmem:[#allocation2 + $0x248] ss:$-140 sps:$4 sm:$0xf3] %v2753_v20   ;;  %v2869_v22 = vmul.f32 %v2858_v44, %v2838_v55  ;;  %v2870_v36 = vmul.f32 %v2862_v47, %v2844_v49  ;;  %v3367_v8 = vld [vmem:[#allocation2 + $0x268] sm:$0xff] }
 0x458   : > { %2873 = vst [vmem:[#allocation2 + $0x118] sm:$0x3f] %v2869_v22  ;;  %2874 = vst [vmem:[#allocation2 + $0x20] sm:$0x3f] %v2870_v36  ;;  %v5010_v39 = vpop.permute.xlu1 %2496  ;;  %v2713_v58 = vpop.permute.xlu0 %2712 }
 0x459   : > { %v2500_v62 = vsel %vm925_vm0, %v2495_v32, %v5010_v39  ;;  %v2716_v10 = vsel %vm1118_vm14, %v2711_v9, %v2713_v58  ;;  %v2722_v30 = vsel %vm1118_vm14, %v2713_v58, %v2707_v3  ;;  %v3357_v27 = vld [vmem:[#allocation2 + $0x280] sm:$0xff]  ;;  %vm5352_vm14 = vmmov %vm5344_vm6 }
 0x45a   : > { %v2531_v35 = vmul.f32 %v2517_v60, %v2500_v62  ;;  %v2747_v63 = vmul.f32 %v2736_v52, %v2716_v10  ;;  %v2748_v0 = vmul.f32 %v2740_v53, %v2722_v30  ;;  %v3417_v11 = vpack.c.bf16 %v3357_v27, %v3353_v37  ;;  %v5057_v22 = vld [vmem:[%s5311_s1 + $0x21] ss:$8 sm:$0xf] }
 0x45b   : > { %v2639_v60 = vrot.slane %v5036_v5, %v3973_v7  ;;  %v2584_v62 = vrot.slane %v5004_v17, %v4009_v14  ;;  %v2588_v10 = vrot.slane %v5004_v17, %v4011_v15  ;;  %v2521_v27 = vrot.slane %v4992_v24, %v4009_v14 }
 0x45c   : > { %v2539_v18 = vrot.slane %v2531_v35, 4  ;;  %v2755_v26 = vrot.slane %v2747_v63, 4  ;;  %v2756_v31 = vrot.slane %v2748_v0, 4  ;;  %v5020_v54 = vpop.permute.xlu1 %2559  ;;  %3474 = vmatprep.subr.bf16.mxu0 %v3417_v11  ;;  %v5022_v19 = vpop.permute.xlu0 %2491  ;;  %v2525_v0 = vrot.slane %v4992_v24, %v4011_v15 }
 0x45d   : > { %v2563_v9 = vsel %vm974_vm7, %v4994_v1, %v5020_v54  ;;  %v2507_v41 = vsel %vm925_vm0, %v5022_v19, %v2495_v32  ;;  %v3352_v29 = vld [vmem:[#allocation2 + $0x1b8] sm:$0xff]  ;;  %v3356_v28 = vld [vmem:[#allocation2 + $0x248] sm:$0xff] }
 0x45e   : > { %2547 = vst [vmem:[#allocation2 + $0x68] ss:$300 sps:$4 sm:$0xf3] %v2539_v18   ;;  %2763 = vst [vmem:[#allocation2 + $0x1f8] ss:$-156 sps:$4 sm:$0xf3] %v2755_v26   ;;  %v2594_v16 = vmul.f32 %v2580_v21, %v2563_v9  ;;  %v2530_v61 = vmul.f32 %v2513_v4, %v2507_v41  ;;  %v3416_v57 = vpack.c.bf16 %v3356_v28, %v3352_v29 }
 0x45f   : > { %2764 = vst [vmem:[#allocation2 + $0x130] ss:$148 sps:$4 sm:$0xf3] %v2756_v31   ;;  %v3363_v56 = vld [vmem:[#allocation2 + $0x20] sm:$0xff]  ;;  %v3362_v43 = vld [vmem:[#allocation2 + $0x118] sm:$0xff]  ;;  %v2454_v21 = vrot.slane %v5057_v22, %v3973_v7 }
 0x460   : > { %v2602_v34 = vrot.slane %v2594_v16, 6  ;;  %v2538_v23 = vrot.slane %v2530_v61, 4  ;;  %v2776_v38 = vpop.permute.xlu1 %2775  ;;  %v2617_v2 = vpop.permute.xlu0 %2616  ;;  %3475 = vmatpush1.bf16.msra.mxu0 %v3416_v57  ;;  %v3423_v12 = vpack.c.bf16 %v3367_v8, %v3363_v56  ;;  %v3422_v40 = vpack.c.bf16 %v3366_v50, %v3362_v43  ;;  %v5086_v56 = vld [vmem:[%s5311_s1 + $0x20] ss:$8 sm:$0xf] }
 0x461   : > { %v2779_v25 = vsel %vm1167_vm12, %v4974_v33, %v2776_v38  ;;  %v2785_v3 = vsel %vm1167_vm12, %v2776_v38, %v4976_v51  ;;  %v2450_v8 = vrot.slane %v5057_v22, %v3971_v6 }
 0x462   : > { %2610 = vst [vmem:[#allocation2 + $0x68] sm:$0xfc] %v2602_v34  ;;  %2546 = vst [vmem:[#allocation2 + $0x270] ss:$-44 sps:$4 sm:$0xf3] %v2538_v23   ;;  %v2810_v32 = vmul.f32 %v2799_v13, %v2779_v25  ;;  %v2811_v42 = vmul.f32 %v2803_v48, %v2785_v3  ;;  %3513 = vmatprep.subr.bf16.mxu1 %v3423_v12 }
 0x463   : > { %3514 = vmatpush1.bf16.msra.mxu1 %v3422_v40 }
 0x464   : > { %v2818_v44 = vrot.slane %v2810_v32, 6  ;;  %v2819_v47 = vrot.slane %v2811_v42, 6  ;;  %v2555_v20 = vpop.permute.xlu1 %2554  ;;  %v5046_v59 = vpop.permute.xlu0 %2613 }
 0x465   : > { %v2570_v33 = vsel %vm974_vm7, %v2555_v20, %v4994_v1  ;;  %v2629_v51 = vsel %vm1035_vm13, %v5046_v59, %v2617_v2  ;;  %v3354_v13 = vld [vmem:[#allocation2 + $0x158] sm:$0xff] }
 0x466   : > { %2826 = vst [vmem:[#allocation2 + $0x1f8] sm:$0xfc] %v2818_v44  ;;  %2827 = vst [vmem:[#allocation2 + $0x130] sm:$0xfc] %v2819_v47  ;;  %v2593_v55 = vmul.f32 %v2576_v46, %v2570_v33  ;;  %v2652_v49 = vmul.f32 %v2635_v45, %v2629_v51  ;;  %v3355_v11 = vld [vmem:[#allocation2 + $0x1c0] sm:$0xff]  ;;  %v2407_v46 = vrot.slane %v5086_v56, %v3973_v7 }
 0x468   : > { %v2601_v36 = vrot.slane %v2593_v55, 6  ;;  %2656 = vst [vmem:[#allocation2 + $0x10] sm:$0x3f] %v2652_v49  ;;  %v2619_v52 = vpop.permute.xlu1 %2618  ;;  %v5059_v53 = vpop.permute.xlu0 %2433 }
 0x469   : > { %v2622_v1 = vsel %vm1035_vm13, %v2617_v2, %v2619_v52  ;;  %v3345_v23 = vld [vmem:[#allocation2 + $0x68] sm:$0xff] }
 0x46a   : > { %2609 = vst [vmem:[#allocation2 + $0x270] sm:$0xfc] %v2601_v36  ;;  %v2653_v58 = vmul.f32 %v2639_v60, %v2622_v1  ;;  %v5095_v2 = vld [vmem:[%s5311_s1 + $0x62] ss:$8 sm:$0xf] }
 0x46b   : > { %v3271_v55 = vrot.slane %v5095_v2, %v3971_v6 }
 0x46c   : > { %2657 = vst [vmem:[#allocation2 + $0xb0] sm:$0x3f] %v2653_v58  ;;  %v2432_v30 = vpop.permute.xlu1 %2431  ;;  %v2562_v37 = vpop.permute.xlu0 %2561  ;;  %v2403_v58 = vrot.slane %v5086_v56, %v3971_v6 }
 0x46d   : > { %v2437_v4 = vsel %vm864_vm15, %v2432_v30, %v5059_v53  ;;  %v2564_v35 = vsel %vm974_vm7, %v5020_v54, %v2562_v37  ;;  %v2565_v63 = vsel %vm974_vm7, %v2562_v37, %v2555_v20  ;;  %v3359_v18 = vld [vmem:[#allocation2 + $0x130] sm:$0xff]  ;;  %v3358_v17 = vld [vmem:[#allocation2 + $0x1f8] sm:$0xff]  ;;  %vm5345_vm7 = vcmask 457728  }
 0x46e   : > { %v2468_v26 = vmul.f32 %v2454_v21, %v2437_v4  ;;  %v2595_v31 = vmul.f32 %v2584_v62, %v2564_v35  ;;  %v2596_v9 = vmul.f32 %v2588_v10, %v2565_v63  ;;  %v3419_v41 = vpack.c.bf16 %v3359_v18, %v3355_v11  ;;  %v5121_v62 = vld [vmem:[%s5311_s1 + $0x5] ss:$8 sm:$0xf]  ;;  %v5126_v10 = vld [vmem:[%s5311_s1 + $0x47] ss:$8 sm:$0xf]  ;;  %vm5350_vm12 = vmmov %vm5345_vm7 }
 0x46f   : > { %v3418_v29 = vpack.c.bf16 %v3358_v17, %v3354_v13  ;;  %v3348_v42 = vld [vmem:[#allocation2 + $0x10] sm:$0xff]  ;;  %v3283_v21 = vrot.slane %v5095_v2, %v4011_v15  ;;  %v2222_v18 = vrot.slane %v5121_v62, %v3973_v7  ;;  %v3153_v17 = vrot.slane %v5126_v10, %v3971_v6  ;;  %vm5355_vm5 = vmmov %vm5345_vm7 }
 0x470   : > { %v2476_v28 = vrot.slane %v2468_v26, 2  ;;  %v2603_v16 = vrot.slane %v2595_v31, 6  ;;  %v2604_v61 = vrot.slane %v2596_v9, 6  ;;  %v2499_v48 = vpop.permute.xlu1 %2498  ;;  %3515 = vmatprep.subr.bf16.mxu1 %v3419_v41  ;;  %v2385_v54 = vpop.permute.xlu0 %2384  ;;  %v5137_v35 = vld [vmem:[%s5311_s1 + $0x6] ss:$8 sm:$0xf]  ;;  %vm5356_vm2 = vmmov %vm5355_vm5 }
 0x471   : > { %v2501_v57 = vsel %vm925_vm0, %v5010_v39, %v2499_v48  ;;  %v2502_v24 = vsel %vm925_vm0, %v2499_v48, %v5022_v19  ;;  %3516 = vmatpush1.bf16.msra.mxu1 %v3418_v29  ;;  %v2643_v39 = vrot.slane %v5036_v5, %v4009_v14  ;;  %v2647_v19 = vrot.slane %v5036_v5, %v4011_v15  ;;  %v3344_v34 = vld [vmem:[#allocation2 + $0x270] sm:$0xff] }
 0x472   : > { %2484 = vst [vmem:[#allocation2 + $0x190] ss:$12 sps:$4 sm:$0xcf] %v2476_v28   ;;  %2611 = vst [vmem:[#allocation2 + $0x278] sm:$0xfc] %v2603_v16  ;;  %v2532_v43 = vmul.f32 %v2521_v27, %v2501_v57  ;;  %v2533_v50 = vmul.f32 %v2525_v0, %v2502_v24  ;;  %v3412_v47 = vpack.c.bf16 %v3348_v42, %v3344_v34  ;;  %vm5341_vm0 = vcmask 449536  }
 0x473   : > { %2612 = vst [vmem:[#allocation2 + $0x170] sm:$0xfc] %v2604_v61  ;;  %v3349_v38 = vld [vmem:[#allocation2 + $0xb0] sm:$0xff]  ;;  %vm5342_vm3 = vmmov %vm5341_vm0  ;;  %v2285_v24 = vrot.slane %v5137_v35, %v3973_v7 }
 0x474   : > { %v2540_v12 = vrot.slane %v2532_v43, 4  ;;  %v2541_v40 = vrot.slane %v2533_v50, 4  ;;  %v5097_v25 = vpop.permute.xlu1 %2428  ;;  %v2621_v3 = vpop.permute.xlu0 %2620  ;;  %v3413_v32 = vpack.c.bf16 %v3349_v38, %v3345_v23  ;;  %v5142_v63 = vld [vmem:[%s5311_s1 + $0x60] ss:$8 sm:$0xf]  ;;  %vm5348_vm10 = vmmov %vm5341_vm0 }
 0x475   : > { %v2444_v5 = vsel %vm864_vm15, %v5097_v25, %v2432_v30  ;;  %v2623_v45 = vsel %vm1035_vm13, %v2619_v52, %v2621_v3  ;;  %v2624_v44 = vsel %vm1035_vm13, %v2621_v3, %v5046_v59  ;;  %v5151_v31 = vld [vmem:[%s5311_s1 + $0x7] ss:$8 sm:$0xf]  ;;  %v3207_v3 = vrot.slane %v5142_v63, %v4011_v15  ;;  %vm5349_vm11 = vmmov %vm5341_vm0 }
 0x476   : > { %2548 = vst [vmem:[#allocation2 + $0x278] ss:$-28 sps:$4 sm:$0xf3] %v2540_v12   ;;  %2549 = vst [vmem:[#allocation2 + $0x170] ss:$-172 sps:$4 sm:$0xf3] %v2541_v40   ;;  %v2467_v20 = vmul.f32 %v2450_v8, %v2444_v5  ;;  %v2654_v33 = vmul.f32 %v2643_v39, %v2623_v45  ;;  %v2655_v51 = vmul.f32 %v2647_v19, %v2624_v44  ;;  %3476 = vmatprep.subr.bf16.mxu0 %v3413_v32 }
 0x477   : > { %3477 = vmatpush1.bf16.msra.mxu0 %v3412_v47  ;;  %v3195_v8 = vrot.slane %v5142_v63, %v3971_v6  ;;  %v2458_v39 = vrot.slane %v5057_v22, %v4009_v14  ;;  %v2462_v19 = vrot.slane %v5057_v22, %v4011_v15  ;;  %v2348_v38 = vrot.slane %v5151_v31, %v3973_v7  ;;  %vm5351_vm13 = vmmov %vm5344_vm6 }
 0x478   : > { %v2475_v49 = vrot.slane %v2467_v20, 2  ;;  %2658 = vst [vmem:[#allocation2 + $0xa8] sm:$0x3f] %v2654_v33  ;;  %2659 = vst [vmem:[#allocation2 + $0x1f0] sm:$0x3f] %v2655_v51  ;;  %v5108_v60 = vpop.permute.xlu1 %2386  ;;  %v5110_v36 = vpop.permute.xlu0 %2199  ;;  %v2281_v40 = vrot.slane %v5137_v35, %v3971_v6  ;;  %v2218_v45 = vrot.slane %v5121_v62, %v3971_v6  ;;  %v3165_v33 = vrot.slane %v5126_v10, %v4011_v15 }
 0x479   : > { %v2390_v59 = vsel %vm5341_vm0, %v2385_v54, %v5108_v60  ;;  %v3341_v23 = vld [vmem:[#allocation2 + $0x190] sm:$0xff]  ;;  %vm5357_vm0 = vcmask 523264  }
 0x47a   : > { %2483 = vst [vmem:[#allocation2 + $0x240] ss:$-28 sps:$4 sm:$0xcf] %v2475_v49   ;;  %v2421_v52 = vmul.f32 %v2407_v46, %v2390_v59  ;;  %v3288_v1 = vmul.f32 %v3271_v55, %v2390_v59 }
 0x47c   : > { %2425 = vst [vmem:[#allocation2 + $0x198] sm:$0x3f] %v2421_v52  ;;  %v3296_v30 = vrot.slane %v3288_v1, 4  ;;  %v5128_v37 = vpop.permute.xlu1 %2381  ;;  %v5130_v27 = vpop.permute.xlu0 %2262 }
 0x47d   : > { %v2397_v4 = vsel %vm5342_vm3, %v5128_v37, %v2385_v54  ;;  %v3347_v26 = vld [vmem:[#allocation2 + $0x170] sm:$0xff]  ;;  %v3346_v41 = vld [vmem:[#allocation2 + $0x278] sm:$0xff]  ;;  %vm5358_vm3 = vmmov %vm5357_vm0 }
 0x47e   : > { %3304 = vst [vmem:[#allocation2 + $0x78] ss:$-28 sps:$4 sm:$0xf3] %v3296_v30   ;;  %v2420_v0 = vmul.f32 %v2403_v58, %v2397_v4  ;;  %v3291_v11 = vmul.f32 %v3283_v21, %v2397_v4  ;;  %v5160_v54 = vld [vmem:[%s5311_s1 + $0x61] ss:$8 sm:$0xf]  ;;  %v2411_v58 = vrot.slane %v5086_v56, %v4009_v14  ;;  %v3279_v21 = vrot.slane %v5095_v2, %v4009_v14 }
 0x47f   : > { %v3351_v9 = vld [vmem:[#allocation2 + $0x1f0] sm:$0xff]  ;;  %v3350_v13 = vld [vmem:[#allocation2 + $0xa8] sm:$0xff]  ;;  %v3225_v12 = vrot.slane %v5160_v54, %v3971_v6 }
 0x480   : > { %2424 = vst [vmem:[#allocation2 + $0x220] sm:$0x3f] %v2420_v0  ;;  %v3299_v29 = vrot.slane %v3291_v11, 4  ;;  %v5153_v28 = vpop.permute.xlu1 %2201  ;;  %v5155_v16 = vpop.permute.xlu0 %2325  ;;  %v3415_v61 = vpack.c.bf16 %v3351_v9, %v3347_v26  ;;  %v3414_v48 = vpack.c.bf16 %v3350_v13, %v3346_v41  ;;  %v2344_v9 = vrot.slane %v5151_v31, %v3971_v6 }
 0x481   : > { %v2205_v57 = vsel %vm5343_vm4, %v5110_v36, %v5153_v28  ;;  %v3340_v1 = vld [vmem:[#allocation2 + $0x240] sm:$0xff] }
 0x482   : > { %3307 = vst [vmem:[#allocation2 + $0x38] ss:$380 sps:$4 sm:$0xf3] %v3299_v29   ;;  %v2236_v43 = vmul.f32 %v2222_v18, %v2205_v57  ;;  %v3170_v50 = vmul.f32 %v3153_v17, %v2205_v57  ;;  %3517 = vmatprep.subr.bf16.mxu1 %v3415_v61  ;;  %v3199_v57 = vrot.slane %v5142_v63, %v3973_v7 }
 0x483   : > { %3518 = vmatpush1.bf16.msra.mxu1 %v3414_v48  ;;  %v3337_v34 = vld [vmem:[#allocation2 + $0x198] sm:$0xff]  ;;  %v2289_v48 = vrot.slane %v5137_v35, %v4009_v14 }
 0x484   : > { %v2244_v32 = vrot.slane %v2236_v43, 2  ;;  %v3178_v42 = vrot.slane %v3170_v50, 6  ;;  %v5181_v46 = vpop.permute.xlu1 %2264  ;;  %v2436_v22 = vpop.permute.xlu0 %2435  ;;  %v3409_v5 = vpack.c.bf16 %v3341_v23, %v3337_v34  ;;  %v2226_v34 = vrot.slane %v5121_v62, %v4009_v14 }
 0x485   : > { %v2268_v44 = vsel %vm5344_vm6, %v5130_v27, %v5181_v46  ;;  %v2438_v47 = vsel %vm864_vm15, %v5059_v53, %v2436_v22  ;;  %v2439_v20 = vsel %vm864_vm15, %v2436_v22, %v5097_v25  ;;  %v2415_v53 = vrot.slane %v5086_v56, %v4011_v15  ;;  %vm5353_vm15 = vmmov %vm5343_vm4 }
 0x486   : > { %2252 = vst [vmem:[#allocation2 + $0x210] ss:$140 sps:$4 sm:$0xcf] %v2244_v32   ;;  %3186 = vst [vmem:[#allocation2 + $0x218] sm:$0xfc] %v3178_v42  ;;  %v2299_v51 = vmul.f32 %v2285_v24, %v2268_v44  ;;  %v3212_v55 = vmul.f32 %v3195_v8, %v2268_v44  ;;  %v2469_v49 = vmul.f32 %v2458_v39, %v2438_v47  ;;  %3478 = vmatprep.subr.bf16.mxu0 %v3409_v5 }
 0x487   : > { %v2470_v59 = vmul.f32 %v2462_v19, %v2439_v20  ;;  %v3336_v52 = vld [vmem:[#allocation2 + $0x220] sm:$0xff]  ;;  %v3275_v25 = vrot.slane %v5095_v2, %v3973_v7  ;;  %v3237_v2 = vrot.slane %v5160_v54, %v4011_v15  ;;  %v3203_v24 = vrot.slane %v5142_v63, %v4009_v14  ;;  %vm5359_vm4 = vmmov %vm5357_vm0 }
 0x488   : > { %v2307_v30 = vrot.slane %v2299_v51, 4  ;;  %3216 = vst [vmem:[#allocation2 + $0x290] sm:$0x3f] %v3212_v55  ;;  %v2477_v4 = vrot.slane %v2469_v49, 2  ;;  %v5202_v11 = vpop.permute.xlu1 %2327  ;;  %v2260_v18 = vpop.permute.xlu0 %2259  ;;  %v3408_v17 = vpack.c.bf16 %v3340_v1, %v3336_v52  ;;  %v2230_v63 = vrot.slane %v5121_v62, %v4011_v15  ;;  %vm5360_vm6 = vmmov %vm5357_vm0 }
 0x489   : > { %v2478_v0 = vrot.slane %v2470_v59, 2  ;;  %v2331_v26 = vsel %vm5345_vm7, %v5155_v16, %v5202_v11  ;;  %v2275_v56 = vsel %vm5346_vm8, %v2260_v18, %v5130_v27  ;;  %v2293_v27 = vrot.slane %v5137_v35, %v4011_v15  ;;  %v5247_v1 = vld [vmem:[%s5311_s1 + $0x4] ss:$8 sm:$0xf] }
 0x48a   : > { %2315 = vst [vmem:[#allocation2 + $0x1e0] ss:$52 sps:$4 sm:$0xf3] %v2307_v30   ;;  %2485 = vst [vmem:[#allocation2 + $0x258] ss:$-468 sps:$4 sm:$0xcf] %v2477_v4   ;;  %v2362_v41 = vmul.f32 %v2348_v38, %v2331_v26  ;;  %v3242_v13 = vmul.f32 %v3225_v12, %v2331_v26  ;;  %v2298_v29 = vmul.f32 %v2281_v40, %v2275_v56  ;;  %3479 = vmatpush1.bf16.msra.mxu0 %v3408_v17 }
 0x48b   : > { %2486 = vst [vmem:[#allocation2 + $0xc0] ss:$-188 sps:$4 sm:$0xcf] %v2478_v0   ;;  %v3215_v61 = vmul.f32 %v3207_v3, %v2275_v56  ;;  %v2356_v47 = vrot.slane %v5151_v31, %v4011_v15  ;;  %v3233_v0 = vrot.slane %v5160_v54, %v4009_v14  ;;  %vm3457_vm7 = vcmask 1040384  }
 0x48c   : > { %v2370_v8 = vrot.slane %v2362_v41, 6  ;;  %v3250_v43 = vrot.slane %v3242_v13, 2  ;;  %v2306_v50 = vrot.slane %v2298_v29, 4  ;;  %v2197_v39 = vpop.permute.xlu1 %2196  ;;  %v2389_v19 = vpop.permute.xlu0 %2388 }
 0x48d   : > { %3219 = vst [vmem:[#allocation2 + $0x178] sm:$0x3f] %v3215_v61  ;;  %v2212_v23 = vsel %vm5347_vm9, %v2197_v39, %v5110_v36  ;;  %v2391_v35 = vsel %vm5348_vm10, %v5108_v60, %v2389_v19  ;;  %v2392_v38 = vsel %vm5349_vm11, %v2389_v19, %v5128_v37  ;;  %v3157_v36 = vrot.slane %v5126_v10, %v3973_v7 }
 0x48e   : > { %2378 = vst [vmem:[#allocation2 + $0x1e0] sm:$0xfc] %v2370_v8  ;;  %3258 = vst [vmem:[#allocation2 + $0x58] ss:$572 sps:$4 sm:$0xcf] %v3250_v43   ;;  %v2235_v12 = vmul.f32 %v2218_v45, %v2212_v23  ;;  %v3173_v40 = vmul.f32 %v3165_v33, %v2212_v23  ;;  %v2422_v3 = vmul.f32 %v2411_v58, %v2391_v35 }
 0x48f   : > { %2314 = vst [vmem:[#allocation2 + $0x168] ss:$-276 sps:$4 sm:$0xf3] %v2306_v50   ;;  %v2423_v32 = vmul.f32 %v2415_v53, %v2392_v38  ;;  %v3289_v42 = vmul.f32 %v3275_v25, %v2391_v35  ;;  %v3290_v22 = vmul.f32 %v3279_v21, %v2392_v38  ;;  %v3161_v60 = vrot.slane %v5126_v10, %v4009_v14 }
 0x490   : > { %v2243_v5 = vrot.slane %v2235_v12, 2  ;;  %v3181_v37 = vrot.slane %v3173_v40, 6  ;;  %2426 = vst [vmem:[#allocation2 + $0x80] sm:$0x3f] %v2422_v3  ;;  %v2323_v62 = vpop.permute.xlu1 %2322  ;;  %v2267_v44 = vpop.permute.xlu0 %2266  ;;  %v2352_v45 = vrot.slane %v5151_v31, %v4009_v14  ;;  %v2175_v8 = vrot.slane %v5247_v1, %v3973_v7 }
 0x491   : > { %2427 = vst [vmem:[#allocation2] sm:$0x3f] %v2423_v32  ;;  %v3297_v20 = vrot.slane %v3289_v42, 4  ;;  %v3298_v33 = vrot.slane %v3290_v22, 4  ;;  %v2338_v51 = vsel %vm5350_vm12, %v2323_v62, %v5155_v16  ;;  %v2269_v10 = vsel %vm5351_vm13, %v5181_v46, %v2267_v44  ;;  %v3342_v38 = vld [vmem:[#allocation2 + $0x258] sm:$0xff] }
 0x492   : > { %2251 = vst [vmem:[#allocation2 + $0x50] ss:$196 sps:$4 sm:$0xcf] %v2243_v5   ;;  %3189 = vst [vmem:[#allocation2 + $0x100] sm:$0xfc] %v3181_v37  ;;  %v2361_v55 = vmul.f32 %v2344_v9, %v2338_v51  ;;  %v3245_v49 = vmul.f32 %v3237_v2, %v2338_v51  ;;  %v2270_v59 = vsel %vm5352_vm14, %v2267_v44, %v2260_v18  ;;  %v3343_v35 = vld [vmem:[#allocation2 + $0xc0] sm:$0xff] }
 0x493   : > { %v2300_v52 = vmul.f32 %v2289_v48, %v2269_v10  ;;  %3305 = vst [vmem:[#allocation2 + $0x208] ss:$-364 sps:$4 sm:$0xf3] %v3297_v20   ;;  %3306 = vst [vmem:[#allocation2 + $0x108] ss:$132 sps:$4 sm:$0xf3] %v3298_v33   ;;  %v2301_v58 = vmul.f32 %v2293_v27, %v2270_v59  ;;  %v3213_v53 = vmul.f32 %v3199_v57, %v2269_v10 }
 0x494   : > { %v3214_v16 = vmul.f32 %v3203_v24, %v2270_v59  ;;  %v3229_v46 = vrot.slane %v5160_v54, %v3973_v7  ;;  %v2369_v25 = vrot.slane %v2361_v55, 6  ;;  %v3253_v21 = vrot.slane %v3245_v49, 2  ;;  %v5256_v18 = vld [vmem:[%s5311_s1 + $0x46] ss:$8 sm:$0xf] }
 0x495   : > { %v2308_v30 = vrot.slane %v2300_v52, 4  ;;  %v2204_v4 = vpop.permute.xlu1 %2203  ;;  %v2309_v17 = vrot.slane %v2301_v58, 4  ;;  %3217 = vst [vmem:[#allocation2 + $0x148] sm:$0x3f] %v3213_v53  ;;  %v2153_v9 = vpop.permute.xlu0 %2152  ;;  %v2171_v2 = vrot.slane %v5247_v1, %v3971_v6  ;;  %v3333_v41 = vld [vmem:[#allocation2 + $0x1e0] sm:$0xff]  ;;  %v3329_v48 = vld [vmem:[#allocation2 + $0x210] sm:$0xff]  ;;  %v3119_v27 = vrot.slane %v5256_v18, %v4011_v15 }
 0x496   : > { %3218 = vst [vmem:[#allocation2 + $0x1c8] sm:$0x3f] %v3214_v16  ;;  %v2206_v26 = vsel %vm5353_vm15, %v5153_v28, %v2204_v4  ;;  %v2207_v56 = vsel %vm5354_vm1, %v2204_v4, %v2197_v39  ;;  %2377 = vst [vmem:[#allocation2 + $0x168] sm:$0xfc] %v2369_v25  ;;  %v3405_v28 = vpack.c.bf16 %v3333_v41, %v3329_v48  ;;  %v3321_v41 = vld [vmem:[#allocation2 + $0x288] sm:$0xff] }
 0x497   : > { %3261 = vst [vmem:[#allocation2 + $0x1b0] ss:$-52 sps:$4 sm:$0xcf] %v3253_v21   ;;  %2316 = vst [vmem:[#allocation2 + $0x1a8] ss:$-276 sps:$4 sm:$0xf3] %v2308_v30   ;;  %v2237_v54 = vmul.f32 %v2226_v34, %v2206_v26  ;;  %v2238_v13 = vmul.f32 %v2230_v63, %v2207_v56  ;;  %v3171_v29 = vmul.f32 %v3157_v36, %v2206_v26 }
 0x498   : > { %v3172_v61 = vmul.f32 %v3161_v60, %v2207_v56  ;;  %2317 = vst [vmem:[#allocation2 + $0x250] ss:$-364 sps:$4 sm:$0xf3] %v2309_v17   ;;  %v3339_v57 = vld [vmem:[#allocation2] sm:$0xff]  ;;  %v3107_v43 = vrot.slane %v5256_v18, %v3971_v6  ;;  %3480 = vmatprep.subr.bf16.mxu0 %v3405_v28  ;;  %v2179_v60 = vrot.slane %v5247_v1, %v4009_v14 }
 0x499   : > { %v3338_v24 = vld [vmem:[#allocation2 + $0x80] sm:$0xff]  ;;  %v2245_v50 = vrot.slane %v2237_v54, 2  ;;  %v2246_v39 = vrot.slane %v2238_v13, 2  ;;  %v3179_v19 = vrot.slane %v3171_v29, 6  ;;  %v2330_v23 = vpop.permute.xlu1 %2329  ;;  %v2150_v40 = vpop.permute.xlu0 %2149  ;;  %v3411_v3 = vpack.c.bf16 %v3343_v35, %v3339_v57  ;;  %v3328_v10 = vld [vmem:[#allocation2 + $0x50] sm:$0xff]  ;;  %v3312_v35 = vld [vmem:[#allocation2 + $0xc8] sm:$0xff] }
 0x49a   : > { %v3180_v34 = vrot.slane %v3172_v61, 6  ;;  %v2332_v63 = vsel %vm5355_vm5, %v5202_v11, %v2330_v23  ;;  %v2333_v12 = vsel %vm5356_vm2, %v2330_v23, %v2323_v62  ;;  %v3410_v32 = vpack.c.bf16 %v3342_v38, %v3338_v24  ;;  %v3317_v13 = vld [vmem:[#allocation2 + $0xf0] sm:$0xff]  ;;  %v3320_v61 = vld [vmem:[#allocation2 + $0xd8] sm:$0xff]  ;;  %v3323_v28 = vld [vmem:[#allocation2 + $0x160] sm:$0xff] }
 0x49b   : > { %2253 = vst [vmem:[#allocation2 + $0x90] ss:$420 sps:$4 sm:$0xcf] %v2245_v50   ;;  %2254 = vst [vmem:[#allocation2 + $0xe0] ss:$-12 sps:$4 sm:$0xcf] %v2246_v39   ;;  %v2363_v6 = vmul.f32 %v2352_v45, %v2332_v63  ;;  %v2364_v42 = vmul.f32 %v2356_v47, %v2333_v12  ;;  %v3243_v22 = vmul.f32 %v3229_v46, %v2332_v63  ;;  %3519 = vmatprep.subr.bf16.mxu1 %v3411_v3 }
 0x49c   : > { %3187 = vst [vmem:[#allocation2 + $0x30] sm:$0xfc] %v3179_v19  ;;  %3188 = vst [vmem:[#allocation2 + $0xb8] sm:$0xfc] %v3180_v34  ;;  %v3244_v11 = vmul.f32 %v3233_v0, %v2333_v12  ;;  %v2165_v36 = vsel %vm5357_vm0, %v2150_v40, %v2153_v9  ;;  %v2183_v5 = vrot.slane %v5247_v1, %v4011_v15  ;;  %3520 = vmatpush1.bf16.msra.mxu1 %v3410_v32  ;;  %v3322_v57 = vld [vmem:[#allocation2 + $0x150] sm:$0xff]  ;;  %v3315_v12 = vld [vmem:[#allocation2 + $0x28] sm:$0xff] }
 0x49d   : > { %v2371_v37 = vrot.slane %v2363_v6, 6  ;;  %v2372_v62 = vrot.slane %v2364_v42, 6  ;;  %v3251_v44 = vrot.slane %v3243_v22, 2  ;;  %v2155_v45 = vpop.permute.xlu1 %2154  ;;  %v2188_v33 = vmul.f32 %v2171_v2, %v2165_v36  ;;  %v3332_v55 = vld [vmem:[#allocation2 + $0x168] sm:$0xff]  ;;  %v3392_v50 = vld [vmem:[#allocation2 + $0x78] sm:$0x3] }
 0x49e   : > { %v3252_v20 = vrot.slane %v3244_v11, 2  ;;  %v3127_v31 = vmul.f32 %v3119_v27, %v2165_v36  ;;  %v2158_v47 = vsel %vm5358_vm3, %v2153_v9, %v2155_v45  ;;  %v3111_v51 = vrot.slane %v5256_v18, %v3973_v7  ;;  %v3313_v27 = vld [vmem:[#allocation2 + $0x8] sm:$0xff]  ;;  %v3318_v6 = vld [vmem:[#allocation2 + $0x70] sm:$0xff]  ;;  %v3395_v42 = vld [vmem:[#allocation2 + $0x38] sm:$0x3] }
 0x49f   : > { %2379 = vst [vmem:[#allocation2 + $0x1a8] sm:$0xfc] %v2371_v37  ;;  %2380 = vst [vmem:[#allocation2 + $0x250] sm:$0xfc] %v2372_v62  ;;  %v2189_v15 = vmul.f32 %v2175_v8, %v2158_v47  ;;  %v3124_v49 = vmul.f32 %v3107_v43, %v2158_v47  ;;  %v3115_v59 = vrot.slane %v5256_v18, %v4009_v14  ;;  %v3316_v8 = vld [vmem:[#allocation2 + $0xe8] sm:$0xff]  ;;  %v3319_v43 = vld [vmem:[#allocation2 + $0x120] sm:$0xff] }
 0x4a0   : > { %3259 = vst [vmem:[#allocation2 + $0x98] ss:$180 sps:$4 sm:$0xcf] %v3251_v44   ;;  %3260 = vst [vmem:[#allocation2 + $0x188] ss:$68 sps:$4 sm:$0xcf] %v3252_v20   ;;  %v3404_v52 = vpack.c.bf16 %v3332_v55, %v3328_v10  ;;  %v3397_v24 = vpack.c.bf16 %v3317_v13, %v3313_v27  ;;  %v3396_v63 = vpack.c.bf16 %v3316_v8, %v3312_v35 }
 0x4a1   : > { %2192 = vst [vmem:[#allocation2 + $0x110] sm:$0x3f] %v2188_v33  ;;  %v3135_v1 = vrot.slane %v3127_v31, 4  ;;  %2193 = vst [vmem:[#allocation2 + $0x298] sm:$0x3f] %v2189_v15  ;;  %v3132_v58 = vrot.slane %v3124_v49, 4  ;;  %v2157_v53 = vpop.permute.xlu1 %2156  ;;  %v3399_v3 = vpack.c.bf16 %v3319_v43, %v3315_v12  ;;  %v3436_v32 = vpack.c.bf16 %v3392_v50, %v3392_v50 }
 0x4a2   : > { %3481 = vmatpush1.bf16.msra.mxu0 %v3404_v52  ;;  %v2159_v7 = vsel %vm5359_vm4, %v2155_v45, %v2157_v53  ;;  %v2160_v16 = vsel %vm5360_vm6, %v2157_v53, %v2150_v40  ;;  %v3331_v0 = vld [vmem:[#allocation2 + $0xe0] sm:$0xff]  ;;  %v3330_v17 = vld [vmem:[#allocation2 + $0x90] sm:$0xff]  ;;  %v3393_v34 = vld [vmem:[#allocation2 + $0x208] sm:$0x3]  ;;  %v3439_v44 = vpack.c.bf16 %v3395_v42, %v3395_v42 }
 0x4a3   : > { %3143 = vst [vmem:[#allocation2 + $0x100] ss:$-180 sps:$4 sm:$0xf3] %v3135_v1   ;;  %3140 = vst [vmem:[#allocation2 + $0x218] ss:$-116 sps:$4 sm:$0xf3] %v3132_v58   ;;  %v2190_v46 = vmul.f32 %v2179_v60, %v2159_v7  ;;  %v2191_v25 = vmul.f32 %v2183_v5, %v2160_v16  ;;  %v3125_v21 = vmul.f32 %v3111_v51, %v2159_v7 }
 0x4a4   : > { %v3126_v30 = vmul.f32 %v3115_v59, %v2160_v16  ;;  %v3437_v40 = vpack.c.bf16 %v3393_v34, %v3393_v34  ;;  %v3394_v36 = vld [vmem:[#allocation2 + $0x108] sm:$0x3]  ;;  %v3314_v60 = vld [vmem:[#allocation2 + $0x40] sm:$0xff]  ;;  %v3459_v37 = vsel %vm3457_vm7, %v3436_v32, 0  ;;  %v3384_v20 = vld [vmem:[#allocation2 + $0x290] sm:$0xff] }
 0x4a5   : > { %2194 = vst [vmem:[#allocation2 + $0x230] sm:$0x3f] %v2190_v46  ;;  %2195 = vst [vmem:[#allocation2 + $0xd0] sm:$0x3f] %v2191_v25  ;;  %v3133_v14 = vrot.slane %v3125_v21, 4  ;;  %v3398_v5 = vpack.c.bf16 %v3318_v6, %v3314_v60  ;;  %v3388_v45 = vld [vmem:[#allocation2 + $0x58] sm:$0xff]  ;;  %v3438_v33 = vpack.c.bf16 %v3394_v36, %v3394_v36 }
 0x4a6   : > { %v3134_v4 = vrot.slane %v3126_v30, 4  ;;  %v3335_v18 = vld [vmem:[#allocation2 + $0x250] sm:$0xff]  ;;  %v3334_v26 = vld [vmem:[#allocation2 + $0x1a8] sm:$0xff]  ;;  %v3387_v31 = vld [vmem:[#allocation2 + $0x178] sm:$0xff]  ;;  %v3432_v55 = vpack.c.bf16 %v3388_v45, %v3384_v20 }
 0x4a7   : > { %3141 = vst [vmem:[#allocation2 + $0x30] ss:$204 sps:$4 sm:$0xf3] %v3133_v14   ;;  %v3407_v56 = vpack.c.bf16 %v3335_v18, %v3331_v0  ;;  %v3406_v9 = vpack.c.bf16 %v3334_v26, %v3330_v17  ;;  %v3385_v22 = vld [vmem:[#allocation2 + $0x148] sm:$0xff]  ;;  %v3389_v11 = vld [vmem:[#allocation2 + $0x98] sm:$0xff]  ;;  %v3391_v10 = vld [vmem:[#allocation2 + $0x1b0] sm:$0xff]  ;;  %v3445_v26 = vpop.permute.xlu0 %3444 }
 0x4a8   : > { %3142 = vst [vmem:[#allocation2 + $0xb8] ss:$-20 sps:$4 sm:$0xf3] %v3134_v4   ;;  %v3324_v2 = vld [vmem:[#allocation2 + $0x110] sm:$0xff]  ;;  %v3325_v54 = vld [vmem:[#allocation2 + $0x298] sm:$0xff]  ;;  %v3433_v62 = vpack.c.bf16 %v3389_v11, %v3385_v22  ;;  %v3386_v15 = vld [vmem:[#allocation2 + $0x1c8] sm:$0xff]  ;;  %v3435_v52 = vpack.c.bf16 %v3391_v10, %v3387_v31 }
 0x4a9   : > { %3521 = vmatprep.subr.bf16.mxu1 %v3407_v56  ;;  %v3401_v29 = vpack.c.bf16 %v3325_v54, %v3321_v41  ;;  %v3400_v48 = vpack.c.bf16 %v3324_v2, %v3320_v61  ;;  %v3465_v49 = vsel %vm3457_vm7, %v3438_v33, 0  ;;  %v3390_v53 = vld [vmem:[#allocation2 + $0x188] sm:$0xff]  ;;  %v3779_v30 = vld [vmem:[%s5316_s6] sm:$0xff] }
 0x4aa   : > { %3522 = vmatpush1.bf16.msra.mxu1 %v3406_v9  ;;  %v3376_v1 = vld [vmem:[#allocation2 + $0x1a0] sm:$0xff]  ;;  %v3380_v58 = vld [vmem:[#allocation2 + $0x218] sm:$0xff]  ;;  %v3379_v7 = vld [vmem:[#allocation2 + $0x48] sm:$0xff]  ;;  %v3434_v25 = vpack.c.bf16 %v3390_v53, %v3386_v15  ;;  %v3733_v14 = vcombine.low %v3779_v30, %v3779_v30 }
 0x4ab   : > { %3482 = vmatprep.subr.bf16.mxu0 %v3401_v29  ;;  %v3383_v16 = vld [vmem:[#allocation2 + $0x100] sm:$0xff]  ;;  %v3428_v46 = vpack.c.bf16 %v3380_v58, %v3376_v1 }
 0x4ac   : > { %3483 = vmatpush1.bf16.msra.mxu0 %v3400_v48  ;;  %v3327_v39 = vld [vmem:[#allocation2 + $0xd0] sm:$0xff]  ;;  %v3431_v21 = vpack.c.bf16 %v3383_v16, %v3379_v7  ;;  %v3574_v11 = vld [vmem:[%s5318_s8] sm:$0xff] }
 0x4ad   : > { %v3326_v19 = vld [vmem:[#allocation2 + $0x230] sm:$0xff]  ;;  %3484 = vmatprep.subr.bf16.mxu0 %v3397_v24  ;;  %v3403_v23 = vpack.c.bf16 %v3327_v39, %v3323_v28 }
 0x4ae   : > { %v3402_v38 = vpack.c.bf16 %v3326_v19, %v3322_v57  ;;  %v3377_v47 = vld [vmem:[#allocation2 + $0xf8] sm:$0xff]  ;;  %v3381_v51 = vld [vmem:[#allocation2 + $0x30] sm:$0xff] }
 0x4af   : > { %3523 = vmatprep.subr.bf16.mxu1 %v3403_v23  ;;  %v3429_v59 = vpack.c.bf16 %v3381_v51, %v3377_v47  ;;  %v3378_v4 = vld [vmem:[#allocation2 + $0xa0] sm:$0xff]  ;;  %v3382_v0 = vld [vmem:[#allocation2 + $0xb8] sm:$0xff] }
 0x4b0   : > { %3485 = vmatpush1.bf16.msra.mxu0 %v3396_v63  ;;  %3524 = vmatpush1.bf16.msra.mxu1 %v3402_v38  ;;  %v3430_v18 = vpack.c.bf16 %v3382_v0, %v3378_v4 }
 0x4b1   : > { %3735 = vmatprep.subr.msk.bf16.mxu0 %vm3457_vm7, %v3437_v40  ;;  %3525 = vmatprep.subr.bf16.mxu1 %v3399_v3 }
 0x4b4   : > { %3497 = vmatpush2.bf16.msra.mxu0 %v3459_v37  ;;  %3526 = vmatpush1.bf16.msra.mxu1 %v3398_v5  ;;  %v3576_v5 = vld [vmem:[%s5319_s9] sm:$0xff] }
 0x4b5   : > { %3498 = vmatprep.subr.bf16.mxu0 %v3433_v62  ;;  %3737 = vmatprep.subr.msk.bf16.mxu1 %vm3457_vm7, %v3439_v44 }
 0x4b8   : > { %3499 = vmatpush2.bf16.msra.mxu0 %v3432_v55  ;;  %3538 = vmatpush2.bf16.msra.mxu1 %v3465_v49 }
 0x4b9   : > { %3500 = vmatprep.subr.bf16.mxu0 %v3429_v59  ;;  %3539 = vmatprep.subr.bf16.mxu1 %v3435_v52 }
 0x4bc   : > { %3501 = vmatpush2.bf16.msra.mxu0 %v3428_v46  ;;  %3540 = vmatpush2.bf16.msra.mxu1 %v3434_v25 }
 0x4bd   : > { %3541 = vmatprep.subr.bf16.mxu1 %v3431_v21 }
 0x4bf   : > { %3503 = vmatmul.mubr.bf16.vlgmr.msra.gmra.mxu0 %v3733_v14 }
 0x4c0   : > { %3542 = vmatpush2.bf16.msra.mxu1 %v3430_v18 }
 0x4c3   : > { %3544 = vmatmul.mubr.bf16.vlgmr.msra.gmra.mxu1 %v3733_v14 }
 0x57f   : > { %v3504_v17 = vpop.f32.mrf.mxu0 }
 0x580   : > { %v3505_v9 = vadd.f32 %v3504_v17, %v3445_v26 }
 0x581   : > { %v3506_v56 = vpop.f32.mrf.mxu0 }
 0x582   : > { %v3507_v2 = vadd.f32 %v3506_v56, %v3445_v26 }
 0x583   : > { %v3508_v41 = vpop.f32.mrf.mxu0  ;;  %v3545_v54 = vpop.f32.mrf.mxu1 }
 0x584   : > { %v3552_v13 = vadd.f32 %v3507_v2, %v3505_v9  ;;  %v3546_v29 = vadd.f32 %v3545_v54, %v3445_v26 }
 0x585   : > { %v3509_v61 = vpop.f32.mrf.mxu0  ;;  %v3547_v48 = vpop.f32.mrf.mxu1 }
 0x586   : > { %v3553_v27 = vadd.f32 %v3552_v13, %v3546_v29  ;;  %v3548_v28 = vadd.f32 %v3547_v48, %v3445_v26 }
 0x587   : > { %v3549_v57 = vpop.f32.mrf.mxu1 }
 0x588   : > { %v3554_v24 = vadd.f32 %v3553_v27, %v3548_v28 }
 0x589   : > { %v3550_v8 = vpop.f32.mrf.mxu1 }
 0x58a   : > { %3555 = vadd.xlane.f32.xlu1 %v3554_v24 }
 0x613   : > { %v3556_v43 = vpop.xlane.xlu1 %3555 }
 0x614   : > { %v3557_v50 = vmul.f32 0.001953125, %v3556_v43 }
 0x616   : > { %v3558_v39 = vsub.f32 %v3505_v9, %v3557_v50  ;;  %v3559_v19 = vsub.f32 %v3507_v2, %v3557_v50  ;;  %v3560_v34 = vsub.f32 %v3546_v29, %v3557_v50  ;;  %v3561_v23 = vsub.f32 %v3548_v28, %v3557_v50 }
 0x618   : > { %v3562_v35 = vmul.f32 %v3558_v39, %v3558_v39  ;;  %v3563_v38 = vmul.f32 %v3559_v19, %v3559_v19  ;;  %v3564_v63 = vmul.f32 %v3560_v34, %v3560_v34  ;;  %v3565_v40 = vmul.f32 %v3561_v23, %v3561_v23 }
 0x61a   : > { %v3566_v12 = vadd.f32 %v3563_v38, %v3562_v35 }
 0x61c   : > { %v3567_v3 = vadd.f32 %v3566_v12, %v3564_v63 }
 0x61e   : > { %v3568_v32 = vadd.f32 %v3567_v3, %v3565_v40 }
 0x620   : > { %3569 = vadd.xlane.f32.xlu0 %v3568_v32 }
 0x6a9   : > { %v3570_v6 = vpop.xlane.xlu0 %3569 }
 0x6aa   : > { %v3571_v42 = vmul.f32 0.001953125, %v3570_v6 }
 0x6ac   : > { %v3572_v22 = vadd.f32 1e-05, %v3571_v42 }
 0x6ae   : > { %3777 = vrsqrt.f32 %v3572_v22 }
 0x6bb   : > { %v3778_v36 = vpop.eup %3777 }
 0x6bc   : > { %v3575_v60 = vmul.f32 %v3778_v36, %v3574_v11 }
 0x6be   : > { %3581 = vperm.xlu0 %3769, %v3575_v60   ;;  %v3577_v37 = vmul.f32 %v3575_v60, %v3557_v50 }
 0x6c0   : > { %v3578_v62 = vsub.f32 %v3576_v5, %v3577_v37 }
 0x6c2   : > { %3590 = vperm.xlu1 %3770, %v3578_v62  }
 0x739   : > { %v3582_v44 = vpop.permute.xlu0 %3581 }
 0x73a   : > { %v3584_v20 = vmul.f32 %v3582_v44, %v3505_v9  ;;  %v3585_v45 = vmul.f32 %v3582_v44, %v3507_v2  ;;  %v3586_v33 = vmul.f32 %v3582_v44, %v3546_v29  ;;  %v3587_v31 = vmul.f32 %v3582_v44, %v3548_v28 }
 0x73d   : > { %v3591_v47 = vpop.permute.xlu1 %3590 }
 0x73e   : > { %v3593_v51 = vadd.f32 %v3591_v47, %v3584_v20  ;;  %v3594_v10 = vadd.f32 %v3591_v47, %v3585_v45  ;;  %v3595_v55 = vadd.f32 %v3591_v47, %v3586_v33  ;;  %v3596_v15 = vadd.f32 %v3591_v47, %v3587_v31 }
 0x740   : > { %vm3597_vm8 = vcmp.ge.f32.partialorder %v3593_v51, 0.0  ;;  %vm3598_vm9 = vcmp.ge.f32.partialorder %v3594_v10, 0.0  ;;  %vm3599_vm10 = vcmp.ge.f32.partialorder %v3595_v55, 0.0  ;;  %vm3600_vm11 = vcmp.ge.f32.partialorder %v3596_v15, 0.0 }
 0x741   : > { %v3601_v49 = vmul.f32 0.01, %v3593_v51  ;;  %v3602_v59 = vmul.f32 0.01, %v3594_v10  ;;  %v3603_v52 = vmul.f32 0.01, %v3595_v55 }
 0x742   : > { %v3604_v1 = vmul.f32 0.01, %v3596_v15 }
 0x743   : > { %v3605_v58 = vsel %vm3597_vm8, %v3593_v51, %v3601_v49  ;;  %v3606_v53 = vsel %vm3598_vm9, %v3594_v10, %v3602_v59  ;;  %v3607_v7 = vsel %vm3599_vm10, %v3595_v55, %v3603_v52 }
 0x744   : > { %v3608_v16 = vsel %vm3600_vm11, %v3596_v15, %v3604_v1  ;;  %3609 = vst [vmem:[%s359_s19] sm:$0xff] %v3605_v58  ;;  %3610 = vst [vmem:[%s359_s19 + $0x8] sm:$0xff] %v3606_v53 }
 0x745   : > { %3611 = vst [vmem:[%s359_s19 + $0x10] sm:$0xff] %v3607_v7  ;;  %3612 = vst [vmem:[%s359_s19 + $0x18] sm:$0xff] %v3608_v16 }
 0x746 PF: > { %s20_s13 = sadd.s32 1, %s3786_s13  }
 0x747   : > { %p17_p4 = scmp.ge.s32.totalorder %s20_s13, 4  }
 0x749   :  { %19 = sbr.rel (!%p17_p4) target bundleno = 1 (0x1), region = 116 }

</bundles_post_ra>
